<compile_context>
chip_gen: v6e
topology: v6e:2x2x1
jax: 0.10.0
libtpu: 0.0.40
codegen_flags: <defaults>
</compile_context>

<pallas_src>
import functools

import numpy as np
import jax
import jax.numpy as jnp
from jax.experimental import pallas as pl
from jax.experimental.pallas import tpu as pltpu

_BIG = 3.0e38  # finite f32 "infinity" (Python float so it traces as a literal)


# ----------------------------------------------------------------------------- kernel
def _tgtv_edge_kernel(cx_ref, bx_ref, ox_ref, cy_ref, by_ref, oy_ref, out_ref,
                      *, k, gamma):
    """Per query-tile: brute-force kNN against all candidates + weighted-L1 partial sum.

    cx_ref: (8, NX)  candidate coords, feature-major (rows 3..7 zero)
    bx_ref: (1, NX)  candidate batch ids (padded cols = -2)
    ox_ref: (8, NX)  candidate out vectors, feature-major (rows 3..7 zero)
    cy_ref: (TQ, 8)  query coords (cols 3..7 zero)
    by_ref: (TQ, 1)  query batch ids (padded rows = -1)
    oy_ref: (TQ, 8)  query out vectors (cols 3..7 zero)
    out_ref:(1, 8, 128) per-tile partials: [0,0,:]=loss sum, [0,1,:]=edge count.
    """
    cx = cx_ref[...]
    ox = ox_ref[...]
    bx = bx_ref[...]
    cy = cy_ref[...]
    oy = oy_ref[...]
    by = by_ref[...]

    tq = cy.shape[0]

    # ---- squared distances: MXU cross term + small-operand norms ------------------
    ysq = jnp.sum(cy * cy, axis=-1, keepdims=True)                    # (TQ, 1)
    xsq = jnp.sum(cx * cx, axis=0, keepdims=True)                     # (1, NX)
    # Fold the -2 into the tiny (TQ,8) operand before the matmul (saves a (TQ,NX) mul).
    cross_m2 = jnp.dot(cy * (-2.0), cx,
                       preferred_element_type=jnp.float32)            # (TQ, NX)
    # Candidate must live in the query's (flipped) frame; padded rows/cols never match.
    d2 = jnp.where(by == bx, ysq + xsq + cross_m2, _BIG)              # (TQ, NX)

    # ---- per-pair L1(out) over the 3 real axes (VPU) -------------------------------
    l1 = jnp.abs(oy[:, 0:1] - ox[0:1, :])
    for d in range(1, 3):
        l1 = l1 + jnp.abs(oy[:, d:d + 1] - ox[d:d + 1, :])

    neg_inv_g2 = -1.0 / (gamma * gamma)   # exp(-(sqrt(d2)/g)^2) == exp(-d2/g^2)

    # ---- iterative k-smallest selection (k small; unrolled) ------------------------
    q_sum = jnp.zeros((tq, 1), jnp.float32)
    q_cnt = jnp.zeros((tq, 1), jnp.float32)
    for _ in range(k):
        m = jnp.min(d2, axis=-1, keepdims=True)                       # (TQ, 1)
        valid = m < _BIG                                               # row has a neighbor
        sel = d2 == m                                                  # one-hot (exact ties rare)
        l1_sel = jnp.sum(jnp.where(sel, l1, 0.0), axis=-1, keepdims=True)
        w = jnp.exp(jnp.maximum(m, 0.0) * neg_inv_g2)                  # weight at the minimum
        q_sum = q_sum + jnp.where(valid, w * l1_sel, 0.0)
        q_cnt = q_cnt + valid.astype(jnp.float32)
        d2 = jnp.where(sel, _BIG, d2)                                  # remove selected

    tile_sum = jnp.sum(q_sum, axis=0, keepdims=True)                   # (1, 1)
    tile_cnt = jnp.sum(q_cnt, axis=0, keepdims=True)                   # (1, 1)

    sub = jax.lax.broadcasted_iota(jnp.int32, (1, 8, 128), 1)
    out_ref[...] = jnp.where(sub == 0, tile_sum,
                             jnp.where(sub == 1, tile_cnt, 0.0))


def _pallas_edge_loss(coord_x, batch_x, out_x, coord_y, batch_y, out_y, *,
                      k, gamma, tq=128):
    n = coord_x.shape[0]
    nx = ((n + 127) // 128) * 128          # candidates padded to lane multiple
    nq = ((n + tq - 1) // tq) * tq         # queries padded to tile multiple
    ntiles = nq // tq

    cx_t = jnp.zeros((8, nx), jnp.float32).at[:3, :n].set(coord_x.T.astype(jnp.float32))
    ox_t = jnp.zeros((8, nx), jnp.float32).at[:3, :n].set(out_x.T.astype(jnp.float32))
    bx = jnp.full((1, nx), -2, jnp.int32).at[0, :n].set(batch_x.astype(jnp.int32))

    cy = jnp.zeros((nq, 8), jnp.float32).at[:n, :3].set(coord_y.astype(jnp.float32))
    oy = jnp.zeros((nq, 8), jnp.float32).at[:n, :3].set(out_y.astype(jnp.float32))
    by = jnp.full((nq, 1), -1, jnp.int32).at[:n, 0].set(batch_y.astype(jnp.int32))

    kernel = functools.partial(_tgtv_edge_kernel, k=int(k), gamma=float(gamma))
    partials = pl.pallas_call(
        kernel,
        out_shape=jax.ShapeDtypeStruct((ntiles, 8, 128), jnp.float32),
        grid_spec=pltpu.PrefetchScalarGridSpec(
            num_scalar_prefetch=0,
            grid=(ntiles,),
            in_specs=[
                pl.BlockSpec((8, nx), lambda i: (0, 0)),   # candidate coords (resident)
                pl.BlockSpec((1, nx), lambda i: (0, 0)),   # candidate batch ids
                pl.BlockSpec((8, nx), lambda i: (0, 0)),   # candidate out vectors
                pl.BlockSpec((tq, 8), lambda i: (i, 0)),   # query coords tile
                pl.BlockSpec((tq, 1), lambda i: (i, 0)),   # query batch tile
                pl.BlockSpec((tq, 8), lambda i: (i, 0)),   # query out tile
            ],
            out_specs=pl.BlockSpec((1, 8, 128), lambda i: (i, 0, 0)),
        ),
        compiler_params=pltpu.CompilerParams(
            dimension_semantics=("parallel",),
        ),
    )(cx_t, bx, ox_t, cy, by, oy)

    loss_sum = jnp.sum(partials[:, 0, 0])
    edge_cnt = jnp.sum(partials[:, 1, 0])
    return loss_sum, edge_cnt


# ------------------------------------------------------------------------------- glue
def _transform(v, T):
    v_homo = jnp.concatenate([v, jnp.ones_like(v[:, 0:1])], axis=1)     # (N, 4)
    res = jnp.einsum('ikj,ij->ik', T, v_homo)                           # (N, 4)
    res = res / res[:, 3:4]
    return res[:, :3]


def _preprocess(coord, out, untransform_coord):
    batch = coord[:, 0].astype(jnp.int32)
    xyz = coord[:, 1:4].astype(jnp.float32)
    xyz_t = _transform(xyz, untransform_coord.astype(jnp.float32))

    even = (batch % 2) == 0
    flipped = jnp.where(even, batch + 1, batch - 1)
    sort_idx = jnp.argsort(flipped)                  # stable sort (matches torch.sort use)
    flipped_sorted = flipped[sort_idx]
    flipped_coord = xyz_t[sort_idx]

    # F.normalize(out): L2, dim=1, eps=1e-12
    out_n = out.astype(jnp.float32)
    out_n = out_n / jnp.maximum(jnp.linalg.norm(out_n, axis=1, keepdims=True), 1e-12)
    T2 = untransform_coord.astype(jnp.float32).at[:, :3, -1].set(0.0)   # zero translation
    out_t = _transform(out_n, T2)
    out_sorted = out_t[sort_idx]
    return xyz_t, batch, out_t, flipped_coord, flipped_sorted, out_sorted


def temporal_graph_tv_loss(coord, intensity, out, target, untransform_coord,
                           *, k=4, gamma=2.0, loss_weight=1.0):
    assert out.shape[0] == coord.shape[0] == target.shape[0] == intensity.shape[0]
    (coord_x, batch_x, out_x,
     coord_y, batch_y, out_y) = _preprocess(coord, out, untransform_coord)
    loss_sum, edge_cnt = _pallas_edge_loss(coord_x, batch_x, out_x,
                                           coord_y, batch_y, out_y,
                                           k=k, gamma=gamma)
    return (loss_sum / edge_cnt) * jnp.float32(loss_weight)


def _reference_loss(coord, intensity, out, target, untransform_coord, *, k, gamma):
    """Pure-JAX dense reference for the kNN hot path (same preprocessing)."""
    (cx, bx, ox, cy, by, oy) = _preprocess(coord, out, untransform_coord)
    d2 = jnp.sum((cy[:, None, :] - cx[None, :, :]) ** 2, axis=-1)
    d2 = jnp.where(by[:, None] == bx[None, :], d2, jnp.inf)
    neg_topk, idx = jax.lax.top_k(-d2, k)
    dist = jnp.sqrt(-neg_topk)
    w = jnp.exp(-jnp.square(dist / gamma))
    l1 = jnp.sum(jnp.abs(ox[idx] - oy[:, None, :]), axis=-1)
    return jnp.mean(w * l1)


# ------------------------------------------------------------------------------- main
if __name__ == "__main__":
    key = jax.random.PRNGKey(0)
    N = 256
    num_frames = 4                      # frames come in even/odd pairs: (0,1), (2,3)
    per = N // num_frames
    k1, k2, k3, k4 = jax.random.split(key, 4)

    batch_ids = jnp.repeat(jnp.arange(num_frames, dtype=jnp.float32), per)
    xyz = jax.random.uniform(k1, (N, 3), minval=-5.0, maxval=5.0)
    coord = jnp.concatenate([batch_ids[:, None], xyz], axis=1)          # (N, 4)
    intensity = jax.random.uniform(k2, (N, 1))
    out = jax.random.normal(k3, (N, 3))
    target = jax.random.normal(k4, (N, 3))

    # Deterministic per-point 4x4 untransform matrices: Rz(theta_i) with translation.
    theta = jnp.linspace(0.0, 0.5, N)
    c, s = jnp.cos(theta), jnp.sin(theta)
    zeros, ones = jnp.zeros_like(theta), jnp.ones_like(theta)
    R = jnp.stack([jnp.stack([c, -s, zeros], axis=-1),
                   jnp.stack([s, c, zeros], axis=-1),
                   jnp.stack([zeros, zeros, ones], axis=-1)], axis=1)   # (N, 3, 3)
    t = jnp.stack([0.1 * theta, -0.2 * theta, 0.3 * theta], axis=-1)    # (N, 3)
    top = jnp.concatenate([R, t[:, :, None]], axis=2)                   # (N, 3, 4)
    bottom = jnp.broadcast_to(jnp.array([[0.0, 0.0, 0.0, 1.0]], jnp.float32), (N, 1, 4))
    untransform_coord = jnp.concatenate([top, bottom], axis=1)          # (N, 4, 4)

    loss = temporal_graph_tv_loss(coord, intensity, out, target, untransform_coord,
                                  k=4, gamma=2.0, loss_weight=1.0)
    loss = jax.block_until_ready(loss)

    ref = _reference_loss(coord, intensity, out, target, untransform_coord, k=4, gamma=2.0)
    np.testing.assert_allclose(np.asarray(loss), np.asarray(ref), rtol=2e-3, atol=1e-5)
    print("KERNEL_OK")
</pallas_src>

<mosaic_0001>
module attributes {stable_mosaic.version = 11 : i64} {
  func.func @_tgtv_edge_kernel(%arg0: i32, %arg1: memref<8x256xf32, #tpu.memory_space<vmem>>, %arg2: memref<1x256xi32, #tpu.memory_space<vmem>>, %arg3: memref<8x256xf32, #tpu.memory_space<vmem>>, %arg4: memref<128x8xf32, #tpu.memory_space<vmem>>, %arg5: memref<128x1xi32, #tpu.memory_space<vmem>>, %arg6: memref<128x8xf32, #tpu.memory_space<vmem>>, %arg7: memref<1x8x128xf32, #tpu.memory_space<vmem>>) attributes {dimension_semantics = [#tpu.dimension_semantics<parallel>], iteration_bounds = array<i64: 2>, scalar_prefetch = 0 : i64, scratch_operands = 0 : i64, tpu.core_type = #tpu.core_type<tc>, window_params = [{pipeline_mode = #tpu.pipeline_mode<synchronous>, transform_indices = @transform_0, window_bounds = array<i64: 8, 256>}, {pipeline_mode = #tpu.pipeline_mode<synchronous>, transform_indices = @transform_1, window_bounds = array<i64: 1, 256>}, {pipeline_mode = #tpu.pipeline_mode<synchronous>, transform_indices = @transform_2, window_bounds = array<i64: 8, 256>}, {transform_indices = @transform_3, window_bounds = array<i64: 128, 8>}, {transform_indices = @transform_4, window_bounds = array<i64: 128, 1>}, {transform_indices = @transform_5, window_bounds = array<i64: 128, 8>}, {transform_indices = @transform_6, window_bounds = array<i64: 1, 8, 128>}]} {
    %c0 = arith.constant 0 : index
    %c0_0 = arith.constant 0 : index
    %0 = vector.load %arg1[%c0, %c0_0] : memref<8x256xf32, #tpu.memory_space<vmem>>, vector<8x256xf32>
    %c0_1 = arith.constant 0 : index
    %c0_2 = arith.constant 0 : index
    %1 = vector.load %arg3[%c0_1, %c0_2] : memref<8x256xf32, #tpu.memory_space<vmem>>, vector<8x256xf32>
    %c0_3 = arith.constant 0 : index
    %c0_4 = arith.constant 0 : index
    %2 = vector.load %arg2[%c0_3, %c0_4] : memref<1x256xi32, #tpu.memory_space<vmem>>, vector<1x256xi32>
    %c0_5 = arith.constant 0 : index
    %c0_6 = arith.constant 0 : index
    %3 = vector.load %arg4[%c0_5, %c0_6] : memref<128x8xf32, #tpu.memory_space<vmem>>, vector<128x8xf32>
    %c0_7 = arith.constant 0 : index
    %c0_8 = arith.constant 0 : index
    %4 = vector.load %arg6[%c0_7, %c0_8] : memref<128x8xf32, #tpu.memory_space<vmem>>, vector<128x8xf32>
    %c0_9 = arith.constant 0 : index
    %c0_10 = arith.constant 0 : index
    %5 = vector.load %arg5[%c0_9, %c0_10] : memref<128x1xi32, #tpu.memory_space<vmem>>, vector<128x1xi32>
    %6 = arith.mulf %3, %3 : vector<128x8xf32>
    %cst = arith.constant dense<0.000000e+00> : vector<128xf32>
    %7 = vector.multi_reduction <add>, %6, %cst [1] : vector<128x8xf32> to vector<128xf32>
    %8 = vector.shape_cast %7 : vector<128xf32> to vector<128x1xf32>
    %9 = arith.mulf %0, %0 : vector<8x256xf32>
    %cst_11 = arith.constant dense<0.000000e+00> : vector<256xf32>
    %10 = vector.multi_reduction <add>, %9, %cst_11 [0] : vector<8x256xf32> to vector<256xf32>
    %11 = vector.shape_cast %10 : vector<256xf32> to vector<1x256xf32>
    %cst_12 = arith.constant -2.000000e+00 : f32
    %12 = vector.broadcast %cst_12 : f32 to vector<128x8xf32>
    %13 = arith.mulf %3, %12 : vector<128x8xf32>
    %cst_13 = arith.constant dense<0.000000e+00> : vector<128x256xf32>
    %14 = tpu.matmul %13, %0, %cst_13 {dimension_numbers = #tpu.dot_dimension_numbers<[1], [0], [0], [1], [0, 0, 1, 1], [], []>} : vector<128x8xf32>, vector<8x256xf32>, vector<128x256xf32> -> vector<128x256xf32>
    %15 = vector.broadcast %5 : vector<128x1xi32> to vector<128x256xi32>
    %16 = vector.broadcast %2 : vector<1x256xi32> to vector<128x256xi32>
    %17 = arith.cmpi eq, %15, %16 : vector<128x256xi32>
    %18 = vector.broadcast %8 : vector<128x1xf32> to vector<128x256xf32>
    %19 = vector.broadcast %11 : vector<1x256xf32> to vector<128x256xf32>
    %20 = arith.addf %18, %19 : vector<128x256xf32>
    %21 = arith.addf %20, %14 : vector<128x256xf32>
    %cst_14 = arith.constant 3.000000e+38 : f32
    %22 = vector.broadcast %cst_14 : f32 to vector<128x256xf32>
    %23 = arith.select %17, %21, %22 : vector<128x256xi1>, vector<128x256xf32>
    %24 = vector.extract_strided_slice %4 {offsets = [0, 0], sizes = [128, 1], strides = [1, 1]} : vector<128x8xf32> to vector<128x1xf32>
    %25 = vector.extract_strided_slice %1 {offsets = [0, 0], sizes = [1, 256], strides = [1, 1]} : vector<8x256xf32> to vector<1x256xf32>
    %26 = vector.broadcast %24 : vector<128x1xf32> to vector<128x256xf32>
    %27 = vector.broadcast %25 : vector<1x256xf32> to vector<128x256xf32>
    %28 = arith.subf %26, %27 : vector<128x256xf32>
    %29 = math.absf %28 : vector<128x256xf32>
    %30 = vector.extract_strided_slice %4 {offsets = [0, 1], sizes = [128, 1], strides = [1, 1]} : vector<128x8xf32> to vector<128x1xf32>
    %31 = vector.extract_strided_slice %1 {offsets = [1, 0], sizes = [1, 256], strides = [1, 1]} : vector<8x256xf32> to vector<1x256xf32>
    %32 = vector.broadcast %30 : vector<128x1xf32> to vector<128x256xf32>
    %33 = vector.broadcast %31 : vector<1x256xf32> to vector<128x256xf32>
    %34 = arith.subf %32, %33 : vector<128x256xf32>
    %35 = math.absf %34 : vector<128x256xf32>
    %36 = arith.addf %29, %35 : vector<128x256xf32>
    %37 = vector.extract_strided_slice %4 {offsets = [0, 2], sizes = [128, 1], strides = [1, 1]} : vector<128x8xf32> to vector<128x1xf32>
    %38 = vector.extract_strided_slice %1 {offsets = [2, 0], sizes = [1, 256], strides = [1, 1]} : vector<8x256xf32> to vector<1x256xf32>
    %39 = vector.broadcast %37 : vector<128x1xf32> to vector<128x256xf32>
    %40 = vector.broadcast %38 : vector<1x256xf32> to vector<128x256xf32>
    %41 = arith.subf %39, %40 : vector<128x256xf32>
    %42 = math.absf %41 : vector<128x256xf32>
    %43 = arith.addf %36, %42 : vector<128x256xf32>
    %cst_15 = arith.constant 0.000000e+00 : f32
    %44 = vector.broadcast %cst_15 : f32 to vector<128x1xf32>
    %cst_16 = arith.constant 0.000000e+00 : f32
    %45 = vector.broadcast %cst_16 : f32 to vector<128x1xf32>
    %cst_17 = arith.constant dense<0x7F800000> : vector<128xf32>
    %46 = vector.multi_reduction <minimumf>, %23, %cst_17 [1] : vector<128x256xf32> to vector<128xf32>
    %47 = vector.shape_cast %46 : vector<128xf32> to vector<128x1xf32>
    %cst_18 = arith.constant 3.000000e+38 : f32
    %48 = vector.broadcast %cst_18 : f32 to vector<128x1xf32>
    %49 = arith.cmpf olt, %47, %48 : vector<128x1xf32>
    %50 = vector.broadcast %47 : vector<128x1xf32> to vector<128x256xf32>
    %51 = arith.cmpf oeq, %23, %50 : vector<128x256xf32>
    %cst_19 = arith.constant 0.000000e+00 : f32
    %52 = vector.broadcast %cst_19 : f32 to vector<128x256xf32>
    %53 = arith.select %51, %43, %52 : vector<128x256xi1>, vector<128x256xf32>
    %cst_20 = arith.constant dense<0.000000e+00> : vector<128xf32>
    %54 = vector.multi_reduction <add>, %53, %cst_20 [1] : vector<128x256xf32> to vector<128xf32>
    %55 = vector.shape_cast %54 : vector<128xf32> to vector<128x1xf32>
    %cst_21 = arith.constant 0.000000e+00 : f32
    %56 = vector.broadcast %cst_21 : f32 to vector<128x1xf32>
    %57 = arith.maximumf %47, %56 : vector<128x1xf32>
    %cst_22 = arith.constant -2.500000e-01 : f32
    %58 = vector.broadcast %cst_22 : f32 to vector<128x1xf32>
    %59 = arith.mulf %57, %58 : vector<128x1xf32>
    %60 = math.exp %59 : vector<128x1xf32>
    %61 = arith.mulf %60, %55 : vector<128x1xf32>
    %cst_23 = arith.constant 0.000000e+00 : f32
    %62 = vector.broadcast %cst_23 : f32 to vector<128x1xf32>
    %63 = arith.select %49, %61, %62 : vector<128x1xi1>, vector<128x1xf32>
    %64 = arith.addf %44, %63 : vector<128x1xf32>
    %65 = arith.extui %49 : vector<128x1xi1> to vector<128x1xi32>
    %66 = arith.sitofp %65 : vector<128x1xi32> to vector<128x1xf32>
    %67 = arith.addf %45, %66 : vector<128x1xf32>
    %cst_24 = arith.constant 3.000000e+38 : f32
    %68 = vector.broadcast %cst_24 : f32 to vector<128x256xf32>
    %69 = arith.select %51, %68, %23 : vector<128x256xi1>, vector<128x256xf32>
    %cst_25 = arith.constant dense<0x7F800000> : vector<128xf32>
    %70 = vector.multi_reduction <minimumf>, %69, %cst_25 [1] : vector<128x256xf32> to vector<128xf32>
    %71 = vector.shape_cast %70 : vector<128xf32> to vector<128x1xf32>
    %cst_26 = arith.constant 3.000000e+38 : f32
    %72 = vector.broadcast %cst_26 : f32 to vector<128x1xf32>
    %73 = arith.cmpf olt, %71, %72 : vector<128x1xf32>
    %74 = vector.broadcast %71 : vector<128x1xf32> to vector<128x256xf32>
    %75 = arith.cmpf oeq, %69, %74 : vector<128x256xf32>
    %cst_27 = arith.constant 0.000000e+00 : f32
    %76 = vector.broadcast %cst_27 : f32 to vector<128x256xf32>
    %77 = arith.select %75, %43, %76 : vector<128x256xi1>, vector<128x256xf32>
    %cst_28 = arith.constant dense<0.000000e+00> : vector<128xf32>
    %78 = vector.multi_reduction <add>, %77, %cst_28 [1] : vector<128x256xf32> to vector<128xf32>
    %79 = vector.shape_cast %78 : vector<128xf32> to vector<128x1xf32>
    %cst_29 = arith.constant 0.000000e+00 : f32
    %80 = vector.broadcast %cst_29 : f32 to vector<128x1xf32>
    %81 = arith.maximumf %71, %80 : vector<128x1xf32>
    %cst_30 = arith.constant -2.500000e-01 : f32
    %82 = vector.broadcast %cst_30 : f32 to vector<128x1xf32>
    %83 = arith.mulf %81, %82 : vector<128x1xf32>
    %84 = math.exp %83 : vector<128x1xf32>
    %85 = arith.mulf %84, %79 : vector<128x1xf32>
    %cst_31 = arith.constant 0.000000e+00 : f32
    %86 = vector.broadcast %cst_31 : f32 to vector<128x1xf32>
    %87 = arith.select %73, %85, %86 : vector<128x1xi1>, vector<128x1xf32>
    %88 = arith.addf %64, %87 : vector<128x1xf32>
    %89 = arith.extui %73 : vector<128x1xi1> to vector<128x1xi32>
    %90 = arith.sitofp %89 : vector<128x1xi32> to vector<128x1xf32>
    %91 = arith.addf %67, %90 : vector<128x1xf32>
    %cst_32 = arith.constant 3.000000e+38 : f32
    %92 = vector.broadcast %cst_32 : f32 to vector<128x256xf32>
    %93 = arith.select %75, %92, %69 : vector<128x256xi1>, vector<128x256xf32>
    %cst_33 = arith.constant dense<0x7F800000> : vector<128xf32>
    %94 = vector.multi_reduction <minimumf>, %93, %cst_33 [1] : vector<128x256xf32> to vector<128xf32>
    %95 = vector.shape_cast %94 : vector<128xf32> to vector<128x1xf32>
    %cst_34 = arith.constant 3.000000e+38 : f32
    %96 = vector.broadcast %cst_34 : f32 to vector<128x1xf32>
    %97 = arith.cmpf olt, %95, %96 : vector<128x1xf32>
    %98 = vector.broadcast %95 : vector<128x1xf32> to vector<128x256xf32>
    %99 = arith.cmpf oeq, %93, %98 : vector<128x256xf32>
    %cst_35 = arith.constant 0.000000e+00 : f32
    %100 = vector.broadcast %cst_35 : f32 to vector<128x256xf32>
    %101 = arith.select %99, %43, %100 : vector<128x256xi1>, vector<128x256xf32>
    %cst_36 = arith.constant dense<0.000000e+00> : vector<128xf32>
    %102 = vector.multi_reduction <add>, %101, %cst_36 [1] : vector<128x256xf32> to vector<128xf32>
    %103 = vector.shape_cast %102 : vector<128xf32> to vector<128x1xf32>
    %cst_37 = arith.constant 0.000000e+00 : f32
    %104 = vector.broadcast %cst_37 : f32 to vector<128x1xf32>
    %105 = arith.maximumf %95, %104 : vector<128x1xf32>
    %cst_38 = arith.constant -2.500000e-01 : f32
    %106 = vector.broadcast %cst_38 : f32 to vector<128x1xf32>
    %107 = arith.mulf %105, %106 : vector<128x1xf32>
    %108 = math.exp %107 : vector<128x1xf32>
    %109 = arith.mulf %108, %103 : vector<128x1xf32>
    %cst_39 = arith.constant 0.000000e+00 : f32
    %110 = vector.broadcast %cst_39 : f32 to vector<128x1xf32>
    %111 = arith.select %97, %109, %110 : vector<128x1xi1>, vector<128x1xf32>
    %112 = arith.addf %88, %111 : vector<128x1xf32>
    %113 = arith.extui %97 : vector<128x1xi1> to vector<128x1xi32>
    %114 = arith.sitofp %113 : vector<128x1xi32> to vector<128x1xf32>
    %115 = arith.addf %91, %114 : vector<128x1xf32>
    %cst_40 = arith.constant 3.000000e+38 : f32
    %116 = vector.broadcast %cst_40 : f32 to vector<128x256xf32>
    %117 = arith.select %99, %116, %93 : vector<128x256xi1>, vector<128x256xf32>
    %cst_41 = arith.constant dense<0x7F800000> : vector<128xf32>
    %118 = vector.multi_reduction <minimumf>, %117, %cst_41 [1] : vector<128x256xf32> to vector<128xf32>
    %119 = vector.shape_cast %118 : vector<128xf32> to vector<128x1xf32>
    %cst_42 = arith.constant 3.000000e+38 : f32
    %120 = vector.broadcast %cst_42 : f32 to vector<128x1xf32>
    %121 = arith.cmpf olt, %119, %120 : vector<128x1xf32>
    %122 = vector.broadcast %119 : vector<128x1xf32> to vector<128x256xf32>
    %123 = arith.cmpf oeq, %117, %122 : vector<128x256xf32>
    %cst_43 = arith.constant 0.000000e+00 : f32
    %124 = vector.broadcast %cst_43 : f32 to vector<128x256xf32>
    %125 = arith.select %123, %43, %124 : vector<128x256xi1>, vector<128x256xf32>
    %cst_44 = arith.constant dense<0.000000e+00> : vector<128xf32>
    %126 = vector.multi_reduction <add>, %125, %cst_44 [1] : vector<128x256xf32> to vector<128xf32>
    %127 = vector.shape_cast %126 : vector<128xf32> to vector<128x1xf32>
    %cst_45 = arith.constant 0.000000e+00 : f32
    %128 = vector.broadcast %cst_45 : f32 to vector<128x1xf32>
    %129 = arith.maximumf %119, %128 : vector<128x1xf32>
    %cst_46 = arith.constant -2.500000e-01 : f32
    %130 = vector.broadcast %cst_46 : f32 to vector<128x1xf32>
    %131 = arith.mulf %129, %130 : vector<128x1xf32>
    %132 = math.exp %131 : vector<128x1xf32>
    %133 = arith.mulf %132, %127 : vector<128x1xf32>
    %cst_47 = arith.constant 0.000000e+00 : f32
    %134 = vector.broadcast %cst_47 : f32 to vector<128x1xf32>
    %135 = arith.select %121, %133, %134 : vector<128x1xi1>, vector<128x1xf32>
    %136 = arith.addf %112, %135 : vector<128x1xf32>
    %137 = arith.extui %121 : vector<128x1xi1> to vector<128x1xi32>
    %138 = arith.sitofp %137 : vector<128x1xi32> to vector<128x1xf32>
    %139 = arith.addf %115, %138 : vector<128x1xf32>
    %cst_48 = arith.constant dense<0.000000e+00> : vector<1xf32>
    %140 = vector.multi_reduction <add>, %136, %cst_48 [0] : vector<128x1xf32> to vector<1xf32>
    %141 = vector.shape_cast %140 : vector<1xf32> to vector<1x1xf32>
    %cst_49 = arith.constant dense<0.000000e+00> : vector<1xf32>
    %142 = vector.multi_reduction <add>, %139, %cst_49 [0] : vector<128x1xf32> to vector<1xf32>
    %143 = vector.shape_cast %142 : vector<1xf32> to vector<1x1xf32>
    %144 = tpu.iota {dimensions = array<i32: 1>} : vector<1x8x128xi32>
    %c0_i32 = arith.constant 0 : i32
    %145 = vector.broadcast %c0_i32 : i32 to vector<1x8x128xi32>
    %146 = arith.cmpi eq, %144, %145 : vector<1x8x128xi32>
    %c1_i32 = arith.constant 1 : i32
    %147 = vector.broadcast %c1_i32 : i32 to vector<1x8x128xi32>
    %148 = arith.cmpi eq, %144, %147 : vector<1x8x128xi32>
    %cst_50 = arith.constant 0.000000e+00 : f32
    %149 = vector.shape_cast %143 : vector<1x1xf32> to vector<1x1x1xf32>
    %150 = vector.broadcast %149 : vector<1x1x1xf32> to vector<1x8x128xf32>
    %151 = vector.broadcast %cst_50 : f32 to vector<1x8x128xf32>
    %152 = arith.select %148, %150, %151 : vector<1x8x128xi1>, vector<1x8x128xf32>
    %153 = vector.shape_cast %141 : vector<1x1xf32> to vector<1x1x1xf32>
    %154 = vector.broadcast %153 : vector<1x1x1xf32> to vector<1x8x128xf32>
    %155 = arith.select %146, %154, %152 : vector<1x8x128xi1>, vector<1x8x128xf32>
    %c0_51 = arith.constant 0 : index
    %c0_52 = arith.constant 0 : index
    %c0_53 = arith.constant 0 : index
    %156 = vector.load %arg7[%c0_51, %c0_52, %c0_53] : memref<1x8x128xf32, #tpu.memory_space<vmem>>, vector<1x8x128xf32>
    tpu.vector_store %arg7[%c0_51, %c0_52, %c0_53], %155 {strides = array<i32>} : memref<1x8x128xf32, #tpu.memory_space<vmem>>, vector<1x8x128xf32>,
    return
  }
  func.func @transform_0(%arg0: i32) -> (i32, i32) {
    %c0_i32 = arith.constant 0 : i32
    %c0_i32_0 = arith.constant 0 : i32
    %c0_i32_1 = arith.constant 0 : i32
    return %c0_i32, %c0_i32_0 : i32, i32
  }
  func.func @transform_1(%arg0: i32) -> (i32, i32) {
    %c0_i32 = arith.constant 0 : i32
    %c0_i32_0 = arith.constant 0 : i32
    %c0_i32_1 = arith.constant 0 : i32
    return %c0_i32, %c0_i32_0 : i32, i32
  }
  func.func @transform_2(%arg0: i32) -> (i32, i32) {
    %c0_i32 = arith.constant 0 : i32
    %c0_i32_0 = arith.constant 0 : i32
    %c0_i32_1 = arith.constant 0 : i32
    return %c0_i32, %c0_i32_0 : i32, i32
  }
  func.func @transform_3(%arg0: i32) -> (i32, i32) {
    %c0_i32 = arith.constant 0 : i32
    %c0_i32_0 = arith.constant 0 : i32
    return %arg0, %c0_i32 : i32, i32
  }
  func.func @transform_4(%arg0: i32) -> (i32, i32) {
    %c0_i32 = arith.constant 0 : i32
    %c0_i32_0 = arith.constant 0 : i32
    return %arg0, %c0_i32 : i32, i32
  }
  func.func @transform_5(%arg0: i32) -> (i32, i32) {
    %c0_i32 = arith.constant 0 : i32
    %c0_i32_0 = arith.constant 0 : i32
    return %arg0, %c0_i32 : i32, i32
  }
  func.func @transform_6(%arg0: i32) -> (i32, i32, i32) {
    %c0_i32 = arith.constant 0 : i32
    %c0_i32_0 = arith.constant 0 : i32
    %c0_i32_1 = arith.constant 0 : i32
    return %arg0, %c0_i32, %c0_i32_0 : i32, i32, i32
  }
}

</mosaic_0001>

<bundles_post_ra>
// kernel: tpu_custom_call.1
= control target key start
LH: loop header
LB: loop body
LE: loop exit
PB: predicated region body
PF: predicated region fallthrough
CT: control target
= control target key end

     0   :  { %11 = vsyncpa [#allocation3], 0  ;;  %s6315_s0 = inlined_call_operand.vmem [shape: f32[8,256], index: 0, kind: input, shape index: {}]   ;;  %s6316_s1 = inlined_call_operand.vmem [shape: s32[1,256], index: 1, kind: input, shape index: {}]   ;;  %s6317_s2 = inlined_call_operand.vmem [shape: f32[8,256], index: 2, kind: input, shape index: {}]   ;;  %s6318_s3 = inlined_call_operand.vmem [shape: f32[256,8], index: 3, kind: input, shape index: {}]   ;;  %s6319_s4 = inlined_call_operand.vmem [shape: s32[256,1], index: 4, kind: input, shape index: {}]   ;;  %s6320_s5 = inlined_call_operand.vmem [shape: f32[256,8], index: 5, kind: input, shape index: {}]   ;;  %s6321_s6 = inlined_call_operand.hbm [shape: f32[2,8,128], index: 6, kind: output, shape index: {}]  }
   0x1   :  { %13 = vsyncpa [#allocation3 + $0x1], 0  ;;  %s3299_s21 = smov 0   ;;  %s3301_s22 = smov 0  }
   0x2   :  { %s3303_s23 = smov 0   ;;  %s3305_s24 = smov 0  }
   0x3 LB: > { %s3320_s25 = sadd.s32 4294967295, %s3257_s24   ;;  %s2911_s26 = sadd.s32 4294967294, %s3257_s24   ;;  %s3257_s24 = sphi %s3305_s24, %s7344_s24   ;;  %s3253_s23 = sphi %s3303_s23, %s7343_s23   ;;  %s3249_s22 = sphi %s3301_s22, %s7342_s22   ;;  %s3245_s21 = sphi %s3299_s21, %s7341_s21  }
   0x4   : > { %s3324_s27 = sadd.s32 1, %s3257_s24   ;;  %s167_s28 = sadd.s32 1, %s3253_s23 }
   0x5   : > { %s164_s29 = ssub.s32 %s3257_s24, %s3324_s27  ;;  %p177_p0 = scmp.ne.s32.totalorder %s3253_s23, %s3249_s22 }
   0x6   : > { %p165_p1 = scmp.eq.s32.totalorder %s164_s29, 0  ;;  %p178_p2 = scmp.eq.s32.totalorder %s3320_s25, 1 }
   0x7   : > { %p183_p3 = scmp.ne.s32.totalorder %s3249_s22, %s3245_s21  ;;  %p184_p4 = scmp.eq.s32.totalorder %s2911_s26, 1 }
   0x8   : > { %s3335_s30 = scalar_select %p165_p1, %s3253_s23, %s167_s28  }
   0x9   : > { %p3337_p5 = por %p178_p2, %p177_p0  ;;  %p3341_p6 = por %p184_p4, %p183_p3 }
   0xa   : > { %p2914_p7 = scmp.ge.s32.totalorder %s3257_s24, 1  ;;  %p238_p8 = scmp.lt.s32.totalorder %s3257_s24, 3 }
   0xc   : > { %p239_p9 = pnand %p2914_p7, %p238_p8 }
   0xe   : > { %242 = sbr.rel (%p239_p9) target bundleno = 1158 (0x486), region = 44 }
  0x13   : > { %v3350_v0 = vld [vmem:[%s6315_s0 + $0x8] sm:$0xff]  ;;  %v3355_v1 = vld [vmem:[%s6315_s0] sm:$0xff]  ;;  %s2916_s13 = sshll.u32 %s3320_s25, 4  ;;  %v6322_v2 = vmov 0.0   ;;  %v3260_v3 = vmov 0   ;;  %vm365_vm0 = vcmask 64512  }
  0x14   : > { %522 = vmatprep.subr.mxu0 %v3350_v0  ;;  %3006 = vmatprep.subr.mxu1 %v3350_v0  ;;  %p279_p10 = scmp.lt.s32.totalorder %s2916_s13, 31  ;;  %s275_s15 = sand.u32 1, %s3249_s22  }
  0x15   : > { %523 = vmatpush1.msra.mxu0 %v3355_v1  ;;  %3007 = vmatpush1.msra.mxu1 %v3355_v1  ;;  %s2915_s16 = sshll.u32 %s275_s15, 3 }
  0x16   : > { %556 = vmatprep.mubr.f32.mxu0 %v6322_v2  ;;  %604 = vmatprep.mubr.f32.mxu1 %v6322_v2  ;;  %s7346_s13 = smov (!%p279_p10, %s2916_s13), 31  ;;  %s277_s18 = scalar_lea.vmem [#allocation2], %s2915_s16 }
  0x17   : > { %3052 = vset.pattern.permute.xlu1 %v3260_v3  ;;  %3051 = vset.pattern.permute.xlu0 %v3260_v3  ;;  %s3364_s14 = sshll.u32 %s7346_s13, 3  ;;  %s2828_s19 = sshll.u32 %s277_s18, 4  ;;  %s2829_s19 = int_to_ptr.vmem [resolvable:$true] %s2828_s19 }
  0x18   : > { %s3370_s17 = scalar_lea.vmem %s6318_s3, %s3364_s14  ;;  %s3443_s20 = scalar_lea.vmem %s6319_s4, %s3364_s14 }
  0x19   : > { %v301_v4 = vld [vmem:[%s3370_s17] sm:$0xff]  ;;  %v303_v6 = vld [vmem:[%s3370_s17 + $0x10] sm:$0xff]  ;;  %v302_v10 = vld [vmem:[%s3370_s17 + $0x8] sm:$0xff]  ;;  %s3460_s29 = scalar_lea.vmem %s6320_s5, %s3364_s14  ;;  %s3197_s9 = scalar_lea.vmem %s2829_s19, 128 }
  0x1a   : > { %v309_v5 = vld [vmem:[%s3370_s17 + $0x40] sm:$0xff]  ;;  %v428_v7 = vmul.f32 -2.0, %v301_v4  ;;  %v351_v9 = vmul.f32 %v303_v6, %v303_v6  ;;  %v310_v11 = vld [vmem:[%s3370_s17 + $0x48] sm:$0xff]  ;;  %v304_v12 = vld [vmem:[%s3370_s17 + $0x18] sm:$0xff]  ;;  %v349_v13 = vmul.f32 %v301_v4, %v301_v4  ;;  %v429_v16 = vmul.f32 -2.0, %v302_v10  ;;  %p3198_p11 = scmp.ne.s32.totalorder %s2829_s19, %s3197_s9 }
  0x1b   : > { %v436_v8 = vmul.f32 -2.0, %v309_v5  ;;  %v306_v14 = vld [vmem:[%s3370_s17 + $0x28] sm:$0xff]  ;;  %v437_v17 = vmul.f32 -2.0, %v310_v11  ;;  %v352_v18 = vmul.f32 %v304_v12, %v304_v12  ;;  %v305_v19 = vld [vmem:[%s3370_s17 + $0x20] sm:$0xff]  ;;  %v350_v21 = vmul.f32 %v302_v10, %v302_v10  ;;  %v311_v22 = vld [vmem:[%s3370_s17 + $0x50] sm:$0xff] }
  0x1c   : > { %2922 = vmatmul.mubr.msk.f32.vlgmr.msra.gmra.mxu0 %vm365_vm0, %v428_v7  ;;  %v372_v15 = vsel %vm365_vm0, %v351_v9, 0.0  ;;  %v366_v20 = vsel %vm365_vm0, %v349_v13, 0.0  ;;  %v354_v24 = vmul.f32 %v306_v14, %v306_v14  ;;  %v353_v26 = vmul.f32 %v305_v19, %v305_v19  ;;  %v3390_v27 = vld [vmem:[%s3370_s17 + $0x38] sm:$0xff]  ;;  %v307_v30 = vld [vmem:[%s3370_s17 + $0x30] sm:$0xff]  ;;  %v313_v38 = vld [vmem:[%s3370_s17 + $0x60] sm:$0xff]  ;;  %p3199_p12 = pnand %p3198_p11, %p3337_p5 }
  0x1d   : > { %2930 = vmatmul.mubr.msk.f32.vlgmr.msra.gmra.mxu1 %vm365_vm0, %v436_v8  ;;  %373 = vadd.xlane.f32.xlu1 %v372_v15  ;;  %v375_v23 = vsel %vm365_vm0, %v352_v18, 0.0  ;;  %v369_v25 = vsel %vm365_vm0, %v350_v21, 0.0  ;;  %v430_v28 = vmul.f32 -2.0, %v303_v6  ;;  %v438_v29 = vmul.f32 -2.0, %v311_v22  ;;  %v312_v31 = vld [vmem:[%s3370_s17 + $0x58] sm:$0xff]  ;;  %v314_v45 = vld [vmem:[%s3370_s17 + $0x68] sm:$0xff] }
  0x1e   : > { %562 = vmatprep.mubr.f32.mxu0 %v6322_v2  ;;  %367 = vadd.xlane.f32.xlu0 %v366_v20  ;;  %v381_v32 = vsel %vm365_vm0, %v354_v24, 0.0  ;;  %v356_v33 = vmul.f32 %v3390_v27, %v3390_v27  ;;  %v378_v34 = vsel %vm365_vm0, %v353_v26, 0.0  ;;  %v355_v35 = vmul.f32 %v307_v30, %v307_v30  ;;  %v315_v52 = vld [vmem:[%s3370_s17 + $0x70] sm:$0xff]  ;;  %v316_v57 = vld [vmem:[%s3370_s17 + $0x78] sm:$0xff]  ;;  %v334_v7 = vld [vmem:[%s3443_s20 + $0x8] sm:$0xff]  ;;  %s3003_s17 = sshll.u32 %s3320_s25, 7  ;;  %p3200_p13 = pneg %p3199_p12 }
  0x1f   : > { %610 = vmatprep.mubr.f32.mxu1 %v6322_v2  ;;  %v431_v36 = vmul.f32 -2.0, %v304_v12  ;;  %v439_v37 = vmul.f32 -2.0, %v312_v31  ;;  %v358_v40 = vmul.f32 %v310_v11, %v310_v11  ;;  %v357_v42 = vmul.f32 %v309_v5, %v309_v5  ;;  %v335_v8 = vld [vmem:[%s3443_s20 + $0x10] sm:$0xff]  ;;  %v333_v9 = vld [vmem:[%s3443_s20] sm:$0xff]  ;;  %v336_v10 = vld [vmem:[%s3443_s20 + $0x18] sm:$0xff]  ;;  %s6280_s28 = scalar_lea.hbm %s6321_s6, %s3003_s17  ;;  %s3263_s25 = smov [#allocation2]  }
  0x20   : > { %2923 = vmatmul.mubr.msk.f32.gmra.mxu0 %vm365_vm0, %v429_v16  ;;  %v387_v39 = vsel %vm365_vm0, %v356_v33, 0.0  ;;  %v384_v41 = vsel %vm365_vm0, %v355_v35, 0.0  ;;  %v432_v43 = vmul.f32 -2.0, %v305_v19  ;;  %v440_v44 = vmul.f32 -2.0, %v313_v38  ;;  %v342_v11 = vld [vmem:[%s3443_s20 + $0x48] sm:$0xff]  ;;  %v337_v12 = vld [vmem:[%s3443_s20 + $0x20] sm:$0xff] }
  0x21   : > { %2931 = vmatmul.mubr.msk.f32.gmra.mxu1 %vm365_vm0, %v437_v17  ;;  %376 = vadd.xlane.f32.xlu1 %v375_v23  ;;  %v393_v46 = vsel %vm365_vm0, %v358_v40, 0.0  ;;  %v360_v47 = vmul.f32 %v312_v31, %v312_v31  ;;  %v390_v48 = vsel %vm365_vm0, %v357_v42, 0.0  ;;  %v359_v49 = vmul.f32 %v311_v22, %v311_v22  ;;  %v344_v13 = vld [vmem:[%s3443_s20 + $0x58] sm:$0xff]  ;;  %v346_v15 = vld [vmem:[%s3443_s20 + $0x68] sm:$0xff]  ;;  %v339_v16 = vld [vmem:[%s3443_s20 + $0x30] sm:$0xff]  ;;  %s3201_s10 = sshll.u32 %s3263_s25, 4  ;;  %s3202_s10 = int_to_ptr.vmem [resolvable:$false] %s3201_s10 }
  0x22   : > { %568 = vmatprep.mubr.f32.mxu0 %v6322_v2  ;;  %370 = vadd.xlane.f32.xlu0 %v369_v25  ;;  %v433_v50 = vmul.f32 -2.0, %v306_v14  ;;  %v441_v51 = vmul.f32 -2.0, %v314_v45  ;;  %v362_v54 = vmul.f32 %v314_v45, %v314_v45  ;;  %v361_v56 = vmul.f32 %v313_v38, %v313_v38  ;;  %v338_v14 = vld [vmem:[%s3443_s20 + $0x28] sm:$0xff]  ;;  %v348_v17 = vld [vmem:[%s3443_s20 + $0x78] sm:$0xff]  ;;  %v341_v20 = vld [vmem:[%s3443_s20 + $0x40] sm:$0xff]  ;;  %s3203_s11 = scalar_lea.vmem %s3202_s10, 256  ;;  %p3204_p0 = scmp.lt.s32.totalorder %s2829_s19, %s3202_s10 }
  0x23   : > { %616 = vmatprep.mubr.f32.mxu1 %v6322_v2  ;;  %v399_v53 = vsel %vm365_vm0, %v360_v47, 0.0  ;;  %v396_v55 = vsel %vm365_vm0, %v359_v49, 0.0  ;;  %v434_v58 = vmul.f32 -2.0, %v307_v30  ;;  %v442_v59 = vmul.f32 -2.0, %v315_v52  ;;  %v340_v18 = vld [vmem:[%s3443_s20 + $0x38] sm:$0xff]  ;;  %v3464_v19 = vld [vmem:[%s3460_s29 + $0x8] sm:$0xff]  ;;  %p3205_p1 = scmp.lt.s32.totalorder %s3203_s11, %s3197_s9 }
  0x24   : > { %2924 = vmatmul.mubr.msk.f32.gmra.mxu0 %vm365_vm0, %v430_v28  ;;  %v405_v60 = vsel %vm365_vm0, %v362_v54, 0.0  ;;  %v364_v61 = vmul.f32 %v316_v57, %v316_v57  ;;  %v402_v62 = vsel %vm365_vm0, %v361_v56, 0.0  ;;  %v363_v63 = vmul.f32 %v315_v52, %v315_v52  ;;  %v3469_v21 = vld [vmem:[%s3460_s29 + $0x18] sm:$0xff]  ;;  %v343_v22 = vld [vmem:[%s3443_s20 + $0x50] sm:$0xff]  ;;  %v3474_v23 = vld [vmem:[%s3460_s29 + $0x28] sm:$0xff] }
  0x25   : > { %2932 = vmatmul.mubr.msk.f32.gmra.mxu1 %vm365_vm0, %v438_v29  ;;  %382 = vadd.xlane.f32.xlu1 %v381_v32  ;;  %v435_v3 = vmul.f32 -2.0, %v3390_v27  ;;  %v443_v4 = vmul.f32 -2.0, %v316_v57  ;;  %v345_v24 = vld [vmem:[%s3443_s20 + $0x60] sm:$0xff]  ;;  %v324_v25 = vld [vmem:[%s3460_s29 + $0x38] sm:$0xff]  ;;  %v347_v26 = vld [vmem:[%s3443_s20 + $0x70] sm:$0xff]  ;;  %v414_v52 = vmul.f32 %v3355_v1, %v3355_v1  ;;  %v701_v1 = vlaneseq  ;;  %p3206_p2 = por %p3205_p1, %p3204_p0 }
  0x26   : > { %574 = vmatprep.mubr.f32.mxu0 %v6322_v2  ;;  %379 = vadd.xlane.f32.xlu0 %v378_v34  ;;  %v411_v5 = vsel %vm365_vm0, %v364_v61, 0.0  ;;  %v408_v6 = vsel %vm365_vm0, %v363_v63, 0.0  ;;  %v3481_v27 = vld [vmem:[%s3460_s29 + $0x48] sm:$0xff]  ;;  %v3484_v28 = vld [vmem:[%s3460_s29] sm:$0xff]  ;;  %v3488_v29 = vld [vmem:[%s3460_s29 + $0x58] sm:$0xff] }
  0x27   : > { %622 = vmatprep.mubr.f32.mxu1 %v6322_v2  ;;  %6750 = vst [vmem:[#allocation5_spill] sm:$0xff] %v3481_v27  ;;  %6751 = vst [vmem:[#allocation6_spill] sm:$0xff] %v3488_v29  ;;  %v3492_v30 = vld [vmem:[%s3460_s29 + $0x10] sm:$0xff]  ;;  %v3496_v31 = vld [vmem:[%s3460_s29 + $0x60] sm:$0xff]  ;;  %v416_v56 = vrot.slane %v414_v52, 4  ;;  %p3207_p3 = pnand %p3206_p2, %p3200_p13 }
  0x28   : > { %2925 = vmatmul.mubr.msk.f32.gmra.mxu0 %vm365_vm0, %v431_v36  ;;  %6752 = vst [vmem:[#allocation7_spill] sm:$0xff] %v3496_v31  ;;  %v3500_v32 = vld [vmem:[%s3460_s29 + $0x20] sm:$0xff]  ;;  %v3505_v33 = vld [vmem:[%s3460_s29 + $0x30] sm:$0xff]  ;;  %v330_v36 = vld [vmem:[%s3460_s29 + $0x68] sm:$0xff] }
  0x29   : > { %2933 = vmatmul.mubr.msk.f32.gmra.mxu1 %vm365_vm0, %v439_v37  ;;  %388 = vadd.xlane.f32.xlu1 %v387_v39  ;;  %v3509_v34 = vld [vmem:[%s3460_s29 + $0x40] sm:$0xff]  ;;  %v3513_v35 = vld [vmem:[%s3460_s29 + $0x50] sm:$0xff]  ;;  %v6324_v37 = vmov 1   ;;  %v332_v39 = vld [vmem:[%s3460_s29 + $0x78] sm:$0xff] }
  0x2a   : > { %580 = vmatprep.mubr.f32.mxu0 %v6322_v2  ;;  %385 = vadd.xlane.f32.xlu0 %v384_v41  ;;  %6753 = vst [vmem:[#allocation8_spill] sm:$0xff] %v3509_v34  ;;  %6754 = vst [vmem:[#allocation9_spill] sm:$0xff] %v3513_v35  ;;  %v331_v38 = vld [vmem:[%s3460_s29 + $0x70] sm:$0xff] }
  0x2b   : > { %628 = vmatprep.mubr.f32.mxu1 %v6322_v2 }
  0x2c   : > { %2926 = vmatmul.mubr.msk.f32.gmra.mxu0 %vm365_vm0, %v432_v43 }
  0x2d   : > { %2934 = vmatmul.mubr.msk.f32.gmra.mxu1 %vm365_vm0, %v440_v44  ;;  %394 = vadd.xlane.f32.xlu1 %v393_v46 }
  0x2e   : > { %586 = vmatprep.mubr.f32.mxu0 %v6322_v2  ;;  %391 = vadd.xlane.f32.xlu0 %v390_v48 }
  0x2f   : > { %634 = vmatprep.mubr.f32.mxu1 %v6322_v2 }
  0x30   : > { %2927 = vmatmul.mubr.msk.f32.gmra.mxu0 %vm365_vm0, %v433_v50 }
  0x31   : > { %2935 = vmatmul.mubr.msk.f32.gmra.mxu1 %vm365_vm0, %v441_v51  ;;  %400 = vadd.xlane.f32.xlu1 %v399_v53  ;;  %v415_v51 = vmul.f32 %v3350_v0, %v3350_v0 }
  0x32   : > { %592 = vmatprep.mubr.f32.mxu0 %v6322_v2  ;;  %397 = vadd.xlane.f32.xlu0 %v396_v55 }
  0x33   : > { %640 = vmatprep.mubr.f32.mxu1 %v6322_v2  ;;  %v422_v55 = vrot.slane %v415_v51, 4 }
  0x34   : > { %2928 = vmatmul.mubr.msk.f32.gmra.mxu0 %vm365_vm0, %v434_v58 }
  0x35   : > { %2936 = vmatmul.mubr.msk.f32.gmra.mxu1 %vm365_vm0, %v442_v59  ;;  %406 = vadd.xlane.f32.xlu1 %v405_v60  ;;  %v423_v59 = vadd.f32 %v422_v55, %v415_v51  ;;  %v417_v60 = vadd.f32 %v416_v56, %v414_v52 }
  0x36   : > { %598 = vmatprep.mubr.f32.mxu0 %v6322_v2  ;;  %403 = vadd.xlane.f32.xlu0 %v402_v62 }
  0x37   : > { %646 = vmatprep.mubr.f32.mxu1 %v6322_v2  ;;  %v424_v62 = vrot.slane %v423_v59, 2  ;;  %v418_v63 = vrot.slane %v417_v60, 2 }
  0x38   : > { %2929 = vmatmul.mubr.msk.f32.gmra.mxu0 %vm365_vm0, %v435_v3 }
  0x39   : > { %2937 = vmatmul.mubr.msk.f32.gmra.mxu1 %vm365_vm0, %v443_v4  ;;  %412 = vadd.xlane.f32.xlu1 %v411_v5  ;;  %v425_v4 = vadd.f32 %v424_v62, %v423_v59  ;;  %v419_v5 = vadd.f32 %v418_v63, %v417_v60 }
  0x3a   : > { %409 = vadd.xlane.f32.xlu0 %v408_v6 }
  0x4a   : > { %657 = vperm.xlu1 %3052, %v334_v7  }
  0x4e   : > { %660 = vperm.xlu1 %3052, %v335_v8   ;;  %v3555_v8 = vshrl.u32 %v701_v1, 7 }
  0x50   : > { %654 = vperm.xlu0 %3051, %v333_v9   ;;  %6755 = vst [vmem:[#allocation10_spill] sm:$0xff] %v3555_v8  ;;  %v426_v9 = vrot.slane %v425_v4, 1 }
  0x52   : > { %663 = vperm.xlu1 %3052, %v336_v10   ;;  %v420_v10 = vrot.slane %v419_v5, 1 }
  0x54   : > { %681 = vperm.xlu0 %3051, %v342_v11  }
  0x56   : > { %666 = vperm.xlu1 %3052, %v337_v12   ;;  %v3560_v12 = vsub.s32 0, %v3555_v8 }
  0x58   : > { %687 = vperm.xlu0 %3051, %v344_v13   ;;  %6756 = vst [vmem:[#allocation11_spill] sm:$0xff] %v3560_v12  ;;  %v3563_v13 = vsub.s32 1, %v3555_v8 }
  0x5a   : > { %669 = vperm.xlu1 %3052, %v338_v14   ;;  %6757 = vst [vmem:[#allocation12_spill] sm:$0xff] %v3563_v13  ;;  %v3565_v14 = vadd.f32 %v426_v9, %v425_v4 }
  0x5c   : > { %693 = vperm.xlu0 %3051, %v346_v15   ;;  %v3567_v15 = vadd.f32 %v420_v10, %v419_v5 }
  0x5e   : > { %672 = vperm.xlu1 %3052, %v339_v16  }
  0x60   : > { %699 = vperm.xlu0 %3051, %v348_v17   ;;  %v300_v17 = vld [vmem:[%s6316_s1] sm:$0x3] }
  0x62   : > { %675 = vperm.xlu1 %3052, %v340_v18  }
  0x64   : > { %844 = vperm.xlu0 %3051, %v3464_v19  }
  0x66   : > { %678 = vperm.xlu1 %3052, %v341_v20  }
  0x68   : > { %854 = vperm.xlu0 %3051, %v3469_v21  }
  0x6a   : > { %684 = vperm.xlu1 %3052, %v343_v22  }
  0x6c   : > { %864 = vperm.xlu0 %3051, %v3474_v23  }
  0x6e   : > { %690 = vperm.xlu1 %3052, %v345_v24   ;;  %v3575_v24 = vrot.slane %v300_v17, %v3560_v12 }
  0x70   : > { %874 = vperm.xlu0 %3051, %v324_v25   ;;  %v3578_v25 = vrot.slane %v300_v17, %v3563_v13 }
  0x72   : > { %696 = vperm.xlu1 %3052, %v347_v26  }
  0x74   : > { %884 = vperm.xlu0 %3051, %v3481_v27  }
  0x76   : > { %839 = vperm.xlu1 %3052, %v3484_v28  }
  0x78   : > { %894 = vperm.xlu0 %3051, %v3488_v29  }
  0x7a   : > { %849 = vperm.xlu1 %3052, %v3492_v30  }
  0x7c   : > { %899 = vperm.xlu0 %3051, %v3496_v31  }
  0x7e   : > { %859 = vperm.xlu1 %3052, %v3500_v32  }
  0x80   : > { %3053 = vset.pattern.permute.xlu0 %v6324_v37 }
  0x82   : > { %869 = vperm.xlu1 %3052, %v3505_v33  }
  0x86   : > { %879 = vperm.xlu1 %3052, %v3509_v34  }
  0x8a   : > { %889 = vperm.xlu1 %3052, %v3513_v35  }
  0x8e   : > { %904 = vperm.xlu1 %3052, %v330_v36  }
  0x92   : > { %909 = vperm.xlu1 %3052, %v331_v38  }
  0x96   : > { %914 = vperm.xlu1 %3052, %v332_v39  }
  0x9a   : > { %3054 = vset.pattern.permute.xlu1 %v6324_v37 }
  0xa6   : > { %v374_v40 = vpop.xlane.xlu1 %373 }
  0xa7   : > { %v368_v42 = vpop.xlane.xlu0 %367  ;;  %v3585_v51 = vadd.f32 %v3567_v15, %v374_v40  ;;  %v746_v52 = vadd.f32 %v3565_v14, %v374_v40 }
  0xa8   : > { %v741_v26 = vadd.f32 %v3567_v15, %v368_v42  ;;  %v742_v39 = vadd.f32 %v3565_v14, %v368_v42 }
  0xaa   : > { %v377_v41 = vpop.xlane.xlu1 %376 }
  0xab   : > { %v371_v44 = vpop.xlane.xlu0 %370  ;;  %v747_v59 = vadd.f32 %v3567_v15, %v377_v41  ;;  %v3592_v60 = vadd.f32 %v3565_v14, %v377_v41 }
  0xac   : > { %v743_v56 = vadd.f32 %v3567_v15, %v371_v44  ;;  %v744_v42 = vadd.f32 %v3565_v14, %v371_v44 }
  0xae   : > { %v3521_v43 = vpop.xlane.xlu1 %382 }
  0xaf   : > { %v3527_v47 = vpop.xlane.xlu0 %379  ;;  %v3597_v4 = vadd.f32 %v3567_v15, %v3521_v43  ;;  %v3608_v10 = vadd.f32 %v3565_v14, %v3521_v43 }
  0xb0   : > { %v3604_v41 = vadd.f32 %v3567_v15, %v3527_v47 }
  0xb2   : > { %v3523_v45 = vpop.xlane.xlu1 %388 }
  0xb3   : > { %v3531_v49 = vpop.xlane.xlu0 %385 }
  0xb6   : > { %v3525_v46 = vpop.xlane.xlu1 %394 }
  0xb7   : > { %v392_v54 = vpop.xlane.xlu0 %391  ;;  %v760_v9 = vadd.f32 %v3565_v14, %v3525_v46 }
  0xb8   : > { %v757_v44 = vadd.f32 %v3567_v15, %v392_v54  ;;  %v758_v2 = vadd.f32 %v3565_v14, %v392_v54 }
  0xba   : > { %v3529_v48 = vpop.xlane.xlu1 %400 }
  0xbb   : > { %v3543_v58 = vpop.xlane.xlu0 %397 }
  0xbe   : > { %v3533_v50 = vpop.xlane.xlu1 %406 }
  0xbf   : > { %v3549_v0 = vpop.xlane.xlu0 %403  ;;  %v3678_v27 = vadd.f32 %v3567_v15, %v3533_v50 }
  0xc0   : > { %v3684_v13 = vadd.f32 %v3567_v15, %v3549_v0 }
  0xc2   : > { %v3539_v53 = vpop.xlane.xlu1 %412 }
  0xc3   : > { %v3553_v7 = vpop.xlane.xlu0 %409 }
  0xc6   : > { %v3541_v57 = vpop.permute.xlu1 %657 }
  0xc7   : > { %vm712_vm7 = vcmp.eq.s32.totalorder %v3541_v57, %v3578_v25  ;;  %vm711_vm8 = vcmp.eq.s32.totalorder %v3541_v57, %v3575_v24 }
  0xca   : > { %v3545_v61 = vpop.permute.xlu1 %660 }
  0xcb   : > { %v655_v18 = vpop.permute.xlu0 %654  ;;  %vm714_vm9 = vcmp.eq.s32.totalorder %v3545_v61, %v3578_v25  ;;  %vm713_vm12 = vcmp.eq.s32.totalorder %v3545_v61, %v3575_v24  ;;  %v771_v61 = vadd.f32 %v3567_v15, %v3539_v53 }
  0xcc   : > { %vm710_vm1 = vcmp.eq.s32.totalorder %v655_v18, %v3578_v25  ;;  %vm709_vm2 = vcmp.eq.s32.totalorder %v655_v18, %v3575_v24 }
  0xce   : > { %v3547_v3 = vpop.permute.xlu1 %663 }
  0xcf   : > { %v682_v40 = vpop.permute.xlu0 %681  ;;  %vm715_vm10 = vcmp.eq.s32.totalorder %v3547_v3, %v3575_v24  ;;  %vm716_vm11 = vcmp.eq.s32.totalorder %v3547_v3, %v3578_v25 }
  0xd0   : > { %vm728_vm3 = vcmp.eq.s32.totalorder %v682_v40, %v3578_v25  ;;  %vm727_vm6 = vcmp.eq.s32.totalorder %v682_v40, %v3575_v24 }
  0xd2   : > { %v3551_v6 = vpop.permute.xlu1 %666 }
  0xd6   : > { %v3557_v11 = vpop.permute.xlu1 %669 }
  0xda   : > { %v3569_v16 = vpop.permute.xlu1 %672 }
  0xdc   : > { %v558_v20 = vpop.f32.mrf.mxu0 }
  0xdd   : > { %v606_v22 = vpop.f32.mrf.mxu1  ;;  %v773_v62 = vadd.f32 %v741_v26, %v558_v20  ;;  %v759_v20 = vadd.f32 %v3567_v15, %v3525_v46 }
  0xde   : > { %v3581_v38 = vpop.permute.xlu1 %675  ;;  %v560_v55 = vpop.f32.mrf.mxu0  ;;  %v789_v31 = vadd.f32 %v757_v44, %v606_v22  ;;  %v763_v44 = vadd.f32 %v3567_v15, %v3529_v48 }
  0xdf   : > { %v608_v36 = vpop.f32.mrf.mxu1  ;;  %v774_v63 = vadd.f32 %v742_v39, %v560_v55  ;;  %v3619_v55 = vadd.f32 %v3565_v14, %v3527_v47 }
  0xe0   : > { %v564_v5 = vpop.f32.mrf.mxu0  ;;  %v790_v34 = vadd.f32 %v758_v2, %v608_v36 }
  0xe1   : > { %v612_v1 = vpop.f32.mrf.mxu1  ;;  %v3613_v17 = vsel %vm710_vm1, %v774_v63, 3e+38  ;;  %v3626_v63 = vsel %vm709_vm2, %v773_v62, 3e+38  ;;  %vm717_vm1 = vcmp.eq.s32.totalorder %v3551_v6, %v3575_v24  ;;  %vm718_vm2 = vcmp.eq.s32.totalorder %v3551_v6, %v3578_v25 }
  0xe2   : > { %v679_v39 = vpop.permute.xlu1 %678  ;;  %v566_v37 = vpop.f32.mrf.mxu0  ;;  %v791_v46 = vadd.f32 %v759_v20, %v612_v1  ;;  %v1325_v54 = vmin.f32 %v3626_v63, %v3613_v17  ;;  %v3642_v1 = vadd.f32 %v3565_v14, %v3523_v45  ;;  %v3650_v20 = vadd.f32 %v3567_v15, %v3531_v49 }
  0xe3   : > { %v614_v26 = vpop.f32.mrf.mxu1  ;;  %vm725_vm4 = vcmp.eq.s32.totalorder %v679_v39, %v3575_v24  ;;  %vm726_vm5 = vcmp.eq.s32.totalorder %v679_v39, %v3578_v25  ;;  %v776_v18 = vadd.f32 %v744_v42, %v566_v37  ;;  %v3654_v37 = vadd.f32 %v3565_v14, %v3531_v49 }
  0xe4   : > { %v792_v43 = vadd.f32 %v760_v9, %v614_v26  ;;  %v570_v47 = vpop.f32.mrf.mxu0  ;;  %v3634_v9 = vadd.f32 %v3567_v15, %v3523_v45  ;;  %v3638_v22 = vsel %vm725_vm4, %v789_v31, 3e+38  ;;  %1326 = vmin.xlane.f32.xlu1 %v1325_v54  ;;  %v3644_v36 = vsel %vm726_vm5, %v790_v34, 3e+38 }
  0xe5   : > { %v618_v29 = vpop.f32.mrf.mxu1  ;;  %6759 = vst [vmem:[#allocation14_spill] sm:$0xff] %v3638_v22  ;;  %6760 = vst [vmem:[#allocation15_spill] sm:$0xff] %v3644_v36  ;;  %v775_v31 = vadd.f32 %v743_v56, %v564_v5  ;;  %v3658_v45 = vsel %vm727_vm6, %v791_v46, 3e+38  ;;  %v761_v34 = vadd.f32 %v3567_v15, %v3543_v58  ;;  %v764_v39 = vadd.f32 %v3565_v14, %v3529_v48  ;;  %v3672_v5 = vpop.permute.xlu0 %687 }
  0xe6   : > { %v3636_v26 = vsel %vm728_vm3, %v792_v43, 3e+38  ;;  %v572_v2 = vpop.f32.mrf.mxu0  ;;  %6761 = vst [vmem:[#allocation16_spill] sm:$0xff] %v3658_v45  ;;  %v762_v43 = vadd.f32 %v3565_v14, %v3543_v58  ;;  %v1349_v49 = vmin.f32 %v3638_v22, %v3644_v36  ;;  %v3674_v46 = vsel %vm712_vm7, %v776_v18, 3e+38 }
  0xe7   : > { %6758 = vst [vmem:[#allocation13_spill] sm:$0xff] %v3636_v26  ;;  %v620_v62 = vpop.f32.mrf.mxu1  ;;  %v1352_v40 = vmin.f32 %v3658_v45, %v3636_v26  ;;  %6762 = vst [vmem:[#allocation17_spill] sm:$0xff] %v3674_v46  ;;  %v778_v54 = vadd.f32 %v746_v52, %v572_v2  ;;  %v3688_v18 = vadd.f32 %v3565_v14, %v3533_v50  ;;  %v3690_v52 = vsel %vm711_vm8, %v775_v31, 3e+38  ;;  %v685_v2 = vpop.permute.xlu1 %684 }
  0xe8   : > { %v576_v56 = vpop.f32.mrf.mxu0  ;;  %1350 = vmin.xlane.f32.xlu0 %v1349_v49  ;;  %v1328_v50 = vmin.f32 %v3690_v52, %v3674_v46  ;;  %vm729_vm13 = vcmp.eq.s32.totalorder %v685_v2, %v3575_v24  ;;  %vm730_vm14 = vcmp.eq.s32.totalorder %v685_v2, %v3578_v25  ;;  %vm731_vm15 = vcmp.eq.s32.totalorder %v3672_v5, %v3575_v24 }
  0xe9   : > { %v624_v42 = vpop.f32.mrf.mxu1  ;;  %v779_v35 = vadd.f32 %v747_v59, %v576_v56  ;;  %1353 = vmin.xlane.f32.xlu1 %v1352_v40  ;;  %v777_v59 = vadd.f32 %v3585_v51, %v570_v47  ;;  %v793_v56 = vadd.f32 %v761_v34, %v618_v29  ;;  %v794_v40 = vadd.f32 %v762_v43, %v620_v62  ;;  %v3714_v62 = vpop.permute.xlu0 %693 }
  0xea   : > { %v578_v58 = vpop.f32.mrf.mxu0  ;;  %v3702_v51 = vsel %vm714_vm9, %v778_v54, 3e+38  ;;  %v766_v43 = vadd.f32 %v3565_v14, %v3549_v0  ;;  %v772_v0 = vadd.f32 %v3565_v14, %v3539_v53  ;;  %vm732_vm0 = vcmp.eq.s32.totalorder %v3672_v5, %v3578_v25 }
  0xeb   : > { %v626_v48 = vpop.f32.mrf.mxu1  ;;  %v780_v57 = vadd.f32 %v3592_v60, %v578_v58  ;;  %6763 = vst [vmem:[#allocation18_spill] sm:$0xff] %v3702_v51  ;;  %v3704_v47 = vsel %vm715_vm10, %v779_v35, 3e+38  ;;  %v3716_v34 = vsel %vm713_vm12, %v777_v59, 3e+38  ;;  %v3730_v59 = vadd.f32 %v3565_v14, %v3553_v7 }
  0xec   : > { %v582_v31 = vpop.f32.mrf.mxu0  ;;  %6764 = vst [vmem:[#allocation19_spill] sm:$0xff] %v3704_v47  ;;  %1329 = vmin.xlane.f32.xlu0 %v1328_v50  ;;  %6766 = vst [vmem:[#allocation21_spill] sm:$0xff] %v3716_v34  ;;  %v796_v35 = vadd.f32 %v764_v39, %v626_v48  ;;  %v1331_v58 = vmin.f32 %v3716_v34, %v3702_v51  ;;  %v3726_v50 = vadd.f32 %v3567_v15, %v3553_v7 }
  0xed   : > { %v630_v49 = vpop.f32.mrf.mxu1  ;;  %v3706_v12 = vsel %vm716_vm11, %v780_v57, 3e+38  ;;  %v795_v39 = vadd.f32 %v763_v44, %v624_v42  ;;  %v3737_v46 = vsel %vm729_vm13, %v793_v56, 3e+38  ;;  %v781_v14 = vadd.f32 %v3604_v41, %v582_v31  ;;  %v691_v44 = vpop.permute.xlu1 %690 }
  0xee   : > { %6765 = vst [vmem:[#allocation20_spill] sm:$0xff] %v3706_v12  ;;  %v584_v29 = vpop.f32.mrf.mxu0  ;;  %v1334_v3 = vmin.f32 %v3704_v47, %v3706_v12  ;;  %6767 = vst [vmem:[#allocation22_spill] sm:$0xff] %v3737_v46  ;;  %v3751_v7 = vsel %vm732_vm0, %v796_v35, 3e+38  ;;  %vm719_vm3 = vcmp.eq.s32.totalorder %v3557_v11, %v3575_v24  ;;  %vm735_vm4 = vcmp.eq.s32.totalorder %v3714_v62, %v3575_v24 }
  0xef   : > { %v632_v60 = vpop.f32.mrf.mxu1  ;;  %v782_v48 = vadd.f32 %v3619_v55, %v584_v29  ;;  %6769 = vst [vmem:[#allocation24_spill] sm:$0xff] %v3751_v7  ;;  %vm720_vm5 = vcmp.eq.s32.totalorder %v3557_v11, %v3578_v25  ;;  %v3766_v41 = vsel %vm731_vm15, %v795_v39, 3e+38  ;;  %vm736_vm6 = vcmp.eq.s32.totalorder %v3714_v62, %v3578_v25 }
  0xf0   : > { %v588_v57 = vpop.f32.mrf.mxu0  ;;  %1335 = vmin.xlane.f32.xlu1 %v1334_v3  ;;  %v3741_v3 = vsel %vm730_vm14, %v794_v40, 3e+38  ;;  %1332 = vmin.xlane.f32.xlu0 %v1331_v58  ;;  %v798_v42 = vadd.f32 %v766_v43, %v632_v60  ;;  %v700_v40 = vpop.permute.xlu0 %699  ;;  %6770 = vst [vmem:[#allocation25_spill] sm:$0xff] %v3766_v41  ;;  %v797_v29 = vadd.f32 %v3684_v13, %v630_v49 }
  0xf1   : > { %v636_v54 = vpop.f32.mrf.mxu1  ;;  %6768 = vst [vmem:[#allocation23_spill] sm:$0xff] %v3741_v3  ;;  %v1355_v2 = vmin.f32 %v3737_v46, %v3741_v3  ;;  %v783_v31 = vadd.f32 %v3597_v4, %v588_v57  ;;  %v1358_v35 = vmin.f32 %v3766_v41, %v3751_v7  ;;  %vm722_vm7 = vcmp.eq.s32.totalorder %v3569_v16, %v3578_v25 }
  0xf2   : > { %v590_v53 = vpop.f32.mrf.mxu0  ;;  %vm739_vm8 = vcmp.eq.s32.totalorder %v700_v40, %v3575_v24  ;;  %v3785_v4 = vsel %vm717_vm1, %v781_v14, 3e+38  ;;  %vm734_vm9 = vcmp.eq.s32.totalorder %v691_v44, %v3578_v25  ;;  %vm733_vm10 = vcmp.eq.s32.totalorder %v691_v44, %v3575_v24 }
  0xf3   : > { %v638_v8 = vpop.f32.mrf.mxu1  ;;  %v784_v15 = vadd.f32 %v3608_v10, %v590_v53  ;;  %v3771_v10 = vsel %vm718_vm2, %v782_v48, 3e+38  ;;  %6772 = vst [vmem:[#allocation27_spill] sm:$0xff] %v3785_v4  ;;  %v3795_v58 = vsel %vm734_vm9, %v798_v42, 3e+38  ;;  %vm740_vm11 = vcmp.eq.s32.totalorder %v700_v40, %v3578_v25 }
  0xf4   : > { %v594_v56 = vpop.f32.mrf.mxu0  ;;  %6771 = vst [vmem:[#allocation26_spill] sm:$0xff] %v3771_v10  ;;  %1356 = vmin.xlane.f32.xlu0 %v1355_v2  ;;  %v800_v43 = vadd.f32 %v3688_v18, %v638_v8  ;;  %6774 = vst [vmem:[#allocation29_spill] sm:$0xff] %v3795_v58  ;;  %1359 = vmin.xlane.f32.xlu1 %v1358_v35  ;;  %v1337_v6 = vmin.f32 %v3785_v4, %v3771_v10  ;;  %v3803_v8 = vsel %vm719_vm3, %v783_v31, 3e+38  ;;  %v697_v31 = vpop.permute.xlu1 %696 }
  0xf5   : > { %v642_v55 = vpop.f32.mrf.mxu1  ;;  %v3792_v13 = vsel %vm720_vm5, %v784_v15, 3e+38  ;;  %6775 = vst [vmem:[#allocation30_spill] sm:$0xff] %v3803_v8  ;;  %v799_v18 = vadd.f32 %v3678_v27, %v636_v54  ;;  %v3808_v14 = vsel %vm733_vm10, %v797_v29, 3e+38  ;;  %vm723_vm12 = vcmp.eq.s32.totalorder %v3581_v38, %v3575_v24 }
  0xf6   : > { %v596_v5 = vpop.f32.mrf.mxu0  ;;  %6773 = vst [vmem:[#allocation28_spill] sm:$0xff] %v3792_v13  ;;  %6776 = vst [vmem:[#allocation31_spill] sm:$0xff] %v3808_v14  ;;  %v1340_v44 = vmin.f32 %v3803_v8, %v3792_v13  ;;  %v3817_v27 = vsel %vm736_vm6, %v800_v43, 3e+38  ;;  %vm724_vm13 = vcmp.eq.s32.totalorder %v3581_v38, %v3578_v25  ;;  %v1361_v2 = vmin.f32 %v3808_v14, %v3795_v58 }
  0xf7   : > { %v644_v60 = vpop.f32.mrf.mxu1  ;;  %v786_v39 = vadd.f32 %v3654_v37, %v596_v5  ;;  %6777 = vst [vmem:[#allocation32_spill] sm:$0xff] %v3817_v27  ;;  %v785_v37 = vadd.f32 %v3650_v20, %v594_v56  ;;  %v3834_v20 = vsel %vm735_vm4, %v799_v18, 3e+38  ;;  %vm721_vm14 = vcmp.eq.s32.totalorder %v3569_v16, %v3575_v24 }
  0xf8   : > { %v600_v57 = vpop.f32.mrf.mxu0  ;;  %1338 = vmin.xlane.f32.xlu0 %v1337_v6  ;;  %1341 = vmin.xlane.f32.xlu1 %v1340_v44  ;;  %6780 = vst [vmem:[#allocation35_spill] sm:$0xff] %v3834_v20  ;;  %v1364_v62 = vmin.f32 %v3834_v20, %v3817_v27  ;;  %vm738_vm15 = vcmp.eq.s32.totalorder %v697_v31, %v3578_v25 }
  0xf9   : > { %v648_v49 = vpop.f32.mrf.mxu1  ;;  %v787_v48 = vadd.f32 %v3634_v9, %v600_v57  ;;  %v3840_v56 = vsel %vm722_vm7, %v786_v39, 3e+38  ;;  %v3852_v29 = vsel %vm721_vm14, %v785_v37, 3e+38  ;;  %vm737_vm0 = vcmp.eq.s32.totalorder %v697_v31, %v3575_v24  ;;  %v3874_v24 = vpop.permute.xlu1 %839 }
  0xfa   : > { %v803_v15 = vadd.f32 %v771_v61, %v648_v49  ;;  %v602_v11 = vpop.f32.mrf.mxu0  ;;  %v1343_v40 = vmin.f32 %v3852_v29, %v3840_v56 }
  0xfb   : > { %v650_v53 = vpop.f32.mrf.mxu1  ;;  %v3820_v9 = vsel %vm723_vm12, %v787_v48, 3e+38  ;;  %v788_v61 = vadd.f32 %v3642_v1, %v602_v11 }
  0xfc   : > { %6778 = vst [vmem:[#allocation33_spill] sm:$0xff] %v3820_v9  ;;  %v804_v54 = vadd.f32 %v772_v0, %v650_v53  ;;  %v3824_v42 = vsel %vm739_vm8, %v803_v15, 3e+38  ;;  %v802_v0 = vadd.f32 %v3730_v59, %v644_v60  ;;  %1362 = vmin.xlane.f32.xlu0 %v1361_v2  ;;  %v801_v59 = vadd.f32 %v3726_v50, %v642_v55 }
  0xfd   : > { %6779 = vst [vmem:[#allocation34_spill] sm:$0xff] %v3824_v42  ;;  %v3848_v1 = vsel %vm724_vm13, %v788_v61, 3e+38  ;;  %1365 = vmin.xlane.f32.xlu1 %v1364_v62  ;;  %v6338_v50 = vmov 2   ;;  %v3880_v5 = vpop.permute.xlu1 %849 }
  0xfe   : > { %v3844_v38 = vsel %vm740_vm11, %v804_v54, 3e+38  ;;  %6782 = vst [vmem:[#allocation37_spill] sm:$0xff] %v3848_v1  ;;  %v3858_v60 = vsel %vm738_vm15, %v802_v0, 3e+38  ;;  %v1346_v25 = vmin.f32 %v3820_v9, %v3848_v1 }
  0xff   : > { %6781 = vst [vmem:[#allocation36_spill] sm:$0xff] %v3844_v38  ;;  %6783 = vst [vmem:[#allocation38_spill] sm:$0xff] %v3858_v60  ;;  %v3861_v16 = vsel %vm737_vm0, %v801_v59, 3e+38  ;;  %v1370_v55 = vmin.f32 %v3824_v42, %v3844_v38 }
 0x100   : > { %1344 = vmin.xlane.f32.xlu0 %v1343_v40  ;;  %6784 = vst [vmem:[#allocation39_spill] sm:$0xff] %v3861_v16  ;;  %v1367_v35 = vmin.f32 %v3861_v16, %v3858_v60 }
 0x104   : > { %1368 = vmin.xlane.f32.xlu0 %v1367_v35 }
 0x10e   : > { %998 = vperm.xlu1 %3054, %v3492_v30  }
 0x112   : > { %3055 = vset.pattern.permute.xlu1 %v6338_v50 }
 0x113   : > { %1158 = vperm.xlu1 %3055, %v3484_v28  }
 0x117   : > { %1162 = vperm.xlu1 %3055, %v3464_v19  }
 0x11a   : > { %990 = vperm.xlu0 %3053, %v3484_v28   ;;  %v3882_v28 = vpop.permute.xlu1 %859 }
 0x11e   : > { %994 = vperm.xlu0 %3053, %v3464_v19   ;;  %v3884_v19 = vpop.permute.xlu0 %844  ;;  %v3886_v43 = vpop.permute.xlu1 %869 }
 0x122   : > { %1002 = vperm.xlu0 %3053, %v3469_v21   ;;  %v3888_v49 = vpop.permute.xlu0 %854  ;;  %v3890_v6 = vpop.permute.xlu1 %879 }
 0x123   : > { %6785 = vst [vmem:[#allocation40_spill] sm:$0xff] %v3890_v6 }
 0x126   : > { %1006 = vperm.xlu0 %3053, %v3500_v32   ;;  %v3893_v57 = vpop.permute.xlu0 %864  ;;  %v3896_v18 = vpop.permute.xlu1 %889 }
 0x127   : > { %6786 = vst [vmem:[#allocation41_spill] sm:$0xff] %v3893_v57  ;;  %6787 = vst [vmem:[#allocation42_spill] sm:$0xff] %v3896_v18 }
 0x12a   : > { %1014 = vperm.xlu0 %3053, %v3505_v33   ;;  %v3899_v39 = vpop.permute.xlu0 %874  ;;  %v3901_v48 = vpop.permute.xlu1 %904 }
 0x12b   : > { %6788 = vst [vmem:[#allocation43_spill] sm:$0xff] %v3899_v39  ;;  %6789 = vst [vmem:[#allocation44_spill] sm:$0xff] %v3901_v48 }
 0x12e   : > { %v3904_v53 = vpop.permute.xlu0 %884  ;;  %v3907_v15 = vpop.permute.xlu1 %909 }
 0x12f   : > { %6790 = vst [vmem:[#allocation45_spill] sm:$0xff] %v3904_v53  ;;  %6791 = vst [vmem:[#allocation46_spill] sm:$0xff] %v3907_v15 }
 0x132   : > { %v3911_v44 = vpop.permute.xlu1 %914 }
 0x133   : > { %6793 = vst [vmem:[#allocation48_spill] sm:$0xff] %v3911_v44 }
 0x13b   : > { %1347 = vmin.xlane.f32.xlu1 %v1346_v25 }
 0x13f   : > { %1371 = vmin.xlane.f32.xlu1 %v1370_v55 }
 0x150   : > { %1166 = vperm.xlu1 %3055, %v3492_v30   ;;  %v3909_v30 = vpop.permute.xlu0 %894 }
 0x151   : > { %6792 = vst [vmem:[#allocation47_spill] sm:$0xff] %v3909_v30 }
 0x154   : > { %1170 = vperm.xlu1 %3055, %v3469_v21   ;;  %v3913_v21 = vpop.permute.xlu0 %899 }
 0x155   : > { %6794 = vst [vmem:[#allocation49_spill] sm:$0xff] %v3913_v21 }
 0x158   : > { %1174 = vperm.xlu1 %3055, %v3500_v32  }
 0x15c   : > { %1178 = vperm.xlu1 %3055, %v3474_v23  }
 0x160   : > { %1182 = vperm.xlu1 %3055, %v3505_v33  }
 0x16d   : > { %v3915_v11 = vpop.xlane.xlu1 %1326 }
 0x16e   : > { %6795 = vst [vmem:[#allocation50_spill] sm:$0xff] %v3915_v11  ;;  %vm1389_vm1 = vcmp.eq.f32.partialorder %v3626_v63, %v3915_v11  ;;  %vm1390_vm2 = vcmp.eq.f32.partialorder %v3613_v17, %v3915_v11 }
 0x16f   : > { %v3925_v23 = vsel %vm1389_vm1, 3e+38, %v3626_v63  ;;  %v3931_v32 = vsel %vm1390_vm2, 3e+38, %v3613_v17  ;;  %v6839_v17 = vld [vmem:[#allocation5_spill] sm:$0xff] }
 0x170   : > { %v1693_v33 = vmin.f32 %v3925_v23, %v3931_v32 }
 0x171   : > { %v3935_v37 = vpop.xlane.xlu0 %1350 }
 0x172   : > { %6796 = vst [vmem:[#allocation51_spill] sm:$0xff] %v3935_v37  ;;  %v3937_v54 = vpop.xlane.xlu1 %1353  ;;  %1694 = vmin.xlane.f32.xlu0 %v1693_v33  ;;  %vm6363_vm9 = vcmp.eq.f32.partialorder %v3638_v22, %v3935_v37  ;;  %vm6361_vm10 = vcmp.eq.f32.partialorder %v3644_v36, %v3935_v37 }
 0x173   : > { %6797 = vst [vmem:[#allocation52_spill] sm:$0xff] %v3937_v54  ;;  %vm6398_vm3 = vcmp.eq.f32.partialorder %v3658_v45, %v3937_v54  ;;  %vm6365_vm4 = vcmp.eq.f32.partialorder %v3636_v26, %v3937_v54 }
 0x174   : > { %v3947_v61 = vsel %vm6398_vm3, 3e+38, %v3658_v45  ;;  %v3953_v2 = vsel %vm6365_vm4, 3e+38, %v3636_v26  ;;  %v4009_v26 = vsel %vm6363_vm9, 3e+38, %v3638_v22 }
 0x175   : > { %6798 = vst [vmem:[#allocation53_spill] sm:$0xff] %v3947_v61  ;;  %6799 = vst [vmem:[#allocation54_spill] sm:$0xff] %v3953_v2  ;;  %v3955_v31 = vpop.xlane.xlu0 %1329  ;;  %v1720_v0 = vmin.f32 %v3947_v61, %v3953_v2  ;;  %v4015_v45 = vsel %vm6361_vm10, 3e+38, %v3644_v36  ;;  %v6808_v22 = vld [vmem:[#allocation17_spill] sm:$0xff] }
 0x176   : > { %6800 = vst [vmem:[#allocation55_spill] sm:$0xff] %v3955_v31  ;;  %6805 = vst [vmem:[#allocation60_spill] sm:$0xff] %v4009_v26  ;;  %vm1391_vm13 = vcmp.eq.f32.partialorder %v3690_v52, %v3955_v31  ;;  %vm1392_vm14 = vcmp.eq.f32.partialorder %v6808_v22, %v3955_v31  ;;  %v6849_v31 = vld [vmem:[#allocation8_spill] sm:$0xff] }
 0x177   : > { %1721 = vmin.xlane.f32.xlu0 %v1720_v0  ;;  %6806 = vst [vmem:[#allocation61_spill] sm:$0xff] %v4015_v45 }
 0x179   : > { %v3959_v62 = vpop.xlane.xlu1 %1335  ;;  %v3961_v59 = vpop.xlane.xlu0 %1332 }
 0x17a   : > { %6801 = vst [vmem:[#allocation56_spill] sm:$0xff] %v3959_v62  ;;  %6802 = vst [vmem:[#allocation57_spill] sm:$0xff] %v3961_v59  ;;  %vm1393_vm5 = vcmp.eq.f32.partialorder %v3716_v34, %v3961_v59  ;;  %vm1394_vm6 = vcmp.eq.f32.partialorder %v3702_v51, %v3961_v59  ;;  %vm1395_vm7 = vcmp.eq.f32.partialorder %v3704_v47, %v3959_v62 }
 0x17b   : > { %v3971_v40 = vsel %vm1393_vm5, 3e+38, %v3716_v34  ;;  %vm1396_vm8 = vcmp.eq.f32.partialorder %v3706_v12, %v3959_v62  ;;  %v3981_v35 = vsel %vm1394_vm6, 3e+38, %v3702_v51  ;;  %v3995_v33 = vsel %vm1395_vm7, 3e+38, %v3704_v47 }
 0x17c   : > { %v1699_v55 = vmin.f32 %v3971_v40, %v3981_v35  ;;  %v4001_v0 = vsel %vm1396_vm8, 3e+38, %v3706_v12  ;;  %v1717_v62 = vmin.f32 %v4009_v26, %v4015_v45  ;;  %v4049_v47 = vsel %vm1391_vm13, 3e+38, %v3690_v52 }
 0x17d   : > { %v3983_v25 = vpop.xlane.xlu0 %1356  ;;  %v4003_v50 = vpop.xlane.xlu1 %1359 }
 0x17e   : > { %6803 = vst [vmem:[#allocation58_spill] sm:$0xff] %v3983_v25  ;;  %6804 = vst [vmem:[#allocation59_spill] sm:$0xff] %v4003_v50  ;;  %1700 = vmin.xlane.f32.xlu0 %v1699_v55  ;;  %vm6355_vm11 = vcmp.eq.f32.partialorder %v3766_v41, %v4003_v50  ;;  %v1702_v55 = vmin.f32 %v3995_v33, %v4001_v0  ;;  %vm6354_vm12 = vcmp.eq.f32.partialorder %v3751_v7, %v4003_v50 }
 0x17f   : > { %v4033_v36 = vsel %vm6355_vm11, 3e+38, %v3766_v41  ;;  %v4039_v37 = vsel %vm6354_vm12, 3e+38, %v3751_v7  ;;  %v4055_v41 = vsel %vm1392_vm14, 3e+38, %v6808_v22  ;;  %vm6364_vm15 = vcmp.eq.f32.partialorder %v3737_v46, %v3983_v25 }
 0x180   : > { %6809 = vst [vmem:[#allocation17_spill] sm:$0xff] %v4033_v36  ;;  %6810 = vst [vmem:[#allocation63_spill] sm:$0xff] %v4039_v37  ;;  %v1726_v7 = vmin.f32 %v4033_v36, %v4039_v37  ;;  %vm6390_vm11 = vcmp.eq.f32.partialorder %v3741_v3, %v3983_v25 }
 0x181   : > { %v4019_v54 = vpop.xlane.xlu0 %1338  ;;  %v4041_v12 = vpop.xlane.xlu1 %1341  ;;  %v4095_v48 = vsel %vm6390_vm11, 3e+38, %v3741_v3 }
 0x182   : > { %6807 = vst [vmem:[#allocation62_spill] sm:$0xff] %v4019_v54  ;;  %6811 = vst [vmem:[#allocation64_spill] sm:$0xff] %v4041_v12  ;;  %1703 = vmin.xlane.f32.xlu0 %v1702_v55  ;;  %vm1399_vm0 = vcmp.eq.f32.partialorder %v3803_v8, %v4041_v12  ;;  %vm1400_vm12 = vcmp.eq.f32.partialorder %v3792_v13, %v4041_v12  ;;  %vm1397_vm10 = vcmp.eq.f32.partialorder %v3785_v4, %v4019_v54 }
 0x183   : > { %v4077_v44 = vsel %vm1399_vm0, 3e+38, %v3803_v8  ;;  %v4083_v15 = vsel %vm1400_vm12, 3e+38, %v3792_v13  ;;  %6817 = vst [vmem:[#allocation70_spill] sm:$0xff] %v4095_v48  ;;  %vm1398_vm4 = vcmp.eq.f32.partialorder %v3771_v10, %v4019_v54  ;;  %v6824_v54 = vld [vmem:[#allocation11_spill] sm:$0xff] }
 0x184   : > { %1718 = vmin.xlane.f32.xlu1 %v1717_v62  ;;  %v1696_v62 = vmin.f32 %v4049_v47, %v4055_v41  ;;  %6814 = vst [vmem:[#allocation67_spill] sm:$0xff] %v4077_v44  ;;  %6815 = vst [vmem:[#allocation68_spill] sm:$0xff] %v4083_v15  ;;  %v1708_v13 = vmin.f32 %v4077_v44, %v4083_v15  ;;  %v4135_v12 = vsel %vm1398_vm4, 3e+38, %v3771_v10 }
 0x185   : > { %v4059_v55 = vpop.xlane.xlu0 %1362  ;;  %6822 = vst [vmem:[#allocation75_spill] sm:$0xff] %v4135_v12 }
 0x186   : > { %6812 = vst [vmem:[#allocation65_spill] sm:$0xff] %v4059_v55  ;;  %v4069_v50 = vpop.xlane.xlu1 %1365  ;;  %1727 = vmin.xlane.f32.xlu0 %v1726_v7  ;;  %v4089_v7 = vsel %vm6364_vm15, 3e+38, %v3737_v46 }
 0x187   : > { %6813 = vst [vmem:[#allocation66_spill] sm:$0xff] %v4069_v50  ;;  %6816 = vst [vmem:[#allocation69_spill] sm:$0xff] %v4089_v7  ;;  %vm6380_vm9 = vcmp.eq.f32.partialorder %v3834_v20, %v4069_v50  ;;  %vm6379_vm15 = vcmp.eq.f32.partialorder %v3817_v27, %v4069_v50  ;;  %v6823_v50 = vld [vmem:[#allocation10_spill] sm:$0xff] }
 0x188   : > { %1697 = vmin.xlane.f32.xlu1 %v1696_v62  ;;  %v1723_v62 = vmin.f32 %v4089_v7, %v4095_v48  ;;  %v4117_v8 = vsel %vm6380_vm9, 3e+38, %v3834_v20  ;;  %v4123_v25 = vsel %vm6379_vm15, 3e+38, %v3817_v27  ;;  %v298_v20 = vld [vmem:[%s6317_s2] sm:$0xff]  ;;  %v299_v27 = vld [vmem:[%s6317_s2 + $0x8] sm:$0xff]  ;;  %vm6391_vm15 = vcmp.eq.f32.partialorder %v3808_v14, %v4059_v55 }
 0x189   : > { %v4107_v46 = vpop.xlane.xlu0 %1344  ;;  %6819 = vst [vmem:[#allocation72_spill] sm:$0xff] %v4117_v8  ;;  %6820 = vst [vmem:[#allocation73_spill] sm:$0xff] %v4123_v25  ;;  %v1223_v18 = vsub.s32 2, %v6823_v50  ;;  %vm6397_vm9 = vcmp.eq.f32.partialorder %v3795_v58, %v4059_v55  ;;  %v4153_v6 = vrot.slane %v298_v20, %v6824_v54  ;;  %v4162_v21 = vsel %vm6391_vm15, 3e+38, %v3808_v14  ;;  %v6830_v14 = vld [vmem:[#allocation12_spill] sm:$0xff] }
 0x18a   : > { %6818 = vst [vmem:[#allocation71_spill] sm:$0xff] %v4107_v46  ;;  %v4109_v3 = vpop.permute.xlu1 %998  ;;  %1709 = vmin.xlane.f32.xlu0 %v1708_v13  ;;  %v4129_v13 = vsel %vm1397_vm10, 3e+38, %v3785_v4  ;;  %v1732_v4 = vmin.f32 %v4117_v8, %v4123_v25  ;;  %6825 = vst [vmem:[#allocation11_spill] sm:$0xff] %v4162_v21  ;;  %vm1401_vm11 = vcmp.eq.f32.partialorder %v3852_v29, %v4107_v46 }
 0x18b   : > { %6821 = vst [vmem:[#allocation74_spill] sm:$0xff] %v4129_v13  ;;  %v1705_v10 = vmin.f32 %v4129_v13, %v4135_v12  ;;  %v4172_v51 = vrot.slane %v298_v20, %v1223_v18  ;;  %v4174_v59 = vrot.slane %v299_v27, %v1223_v18  ;;  %vm1402_vm15 = vcmp.eq.f32.partialorder %v3840_v56, %v4107_v46 }
 0x18c   : > { %1724 = vmin.xlane.f32.xlu1 %v1723_v62  ;;  %v4156_v62 = vrot.slane %v299_v27, %v6824_v54  ;;  %v925_v54 = vsub.f32 %v3874_v24, %v4153_v6  ;;  %v4185_v55 = vrot.slane %v298_v20, %v6830_v14  ;;  %v4196_v34 = vsel %vm1401_vm11, 3e+38, %v3852_v29 }
 0x18d   : > { %v4170_v30 = vpop.xlane.xlu0 %1368  ;;  %6828 = vst [vmem:[#allocation78_spill] sm:$0xff] %v4172_v51  ;;  %6829 = vst [vmem:[#allocation79_spill] sm:$0xff] %v4174_v59  ;;  %v927_v53 = vsub.f32 %v3884_v19, %v4153_v6 }
 0x18e   : > { %1733 = vmin.xlane.f32.xlu0 %v1732_v4  ;;  %v1159_v50 = vpop.permute.xlu1 %1158  ;;  %v4168_v4 = vsel %vm6397_vm9, 3e+38, %v3795_v58  ;;  %6827 = vst [vmem:[#allocation77_spill] sm:$0xff] %v4170_v30  ;;  %v926_v58 = vsub.f32 %v3874_v24, %v4156_v62  ;;  %6831 = vst [vmem:[#allocation12_spill] sm:$0xff] %v4185_v55  ;;  %v4202_v24 = vsel %vm1402_vm15, 3e+38, %v3840_v56  ;;  %vm6468_vm9 = vcmp.eq.f32.partialorder %v3861_v16, %v4170_v30 }
 0x18f   : > { %6826 = vst [vmem:[#allocation76_spill] sm:$0xff] %v4168_v4  ;;  %v1729_v18 = vmin.f32 %v4162_v21, %v4168_v4  ;;  %6833 = vst [vmem:[#allocation81_spill] sm:$0xff] %v4196_v34  ;;  %v1229_v20 = vsub.f32 %v1159_v50, %v4172_v51  ;;  %vm6465_vm3 = vcmp.eq.f32.partialorder %v3858_v60, %v4170_v30  ;;  %v957_v4 = vand.u32 2147483647, %v925_v54 }
 0x190   : > { %1706 = vmin.xlane.f32.xlu1 %v1705_v10  ;;  %v4190_v10 = vrot.slane %v299_v27, %v6830_v14  ;;  %6834 = vst [vmem:[#allocation82_spill] sm:$0xff] %v4202_v24  ;;  %v1230_v14 = vsub.f32 %v1159_v50, %v4174_v59  ;;  %v928_v39 = vsub.f32 %v3884_v19, %v4156_v62  ;;  %v958_v21 = vand.u32 2147483647, %v926_v58 }
 0x191   : > { %v1711_v50 = vmin.f32 %v4196_v34, %v4202_v24  ;;  %v4228_v19 = vsel %vm6465_vm3, 3e+38, %v3858_v60 }
 0x192   : > { %6832 = vst [vmem:[#allocation80_spill] sm:$0xff] %v4190_v10  ;;  %v1163_v57 = vpop.permute.xlu1 %1162  ;;  %6836 = vst [vmem:[#allocation84_spill] sm:$0xff] %v4228_v19  ;;  %v1262_v54 = vand.u32 2147483647, %v1230_v14  ;;  %v960_v48 = vand.u32 2147483647, %v928_v39 }
 0x193   : > { %v1231_v58 = vsub.f32 %v1163_v57, %v4172_v51  ;;  %v1232_v24 = vsub.f32 %v1163_v57, %v4174_v59 }
 0x194   : > { %1730 = vmin.xlane.f32.xlu1 %v1729_v18  ;;  %v4222_v18 = vsel %vm6468_vm9, 3e+38, %v3861_v16 }
 0x195   : > { %v991_v27 = vpop.permute.xlu0 %990  ;;  %6835 = vst [vmem:[#allocation83_spill] sm:$0xff] %v4222_v18  ;;  %v1735_v60 = vmin.f32 %v4222_v18, %v4228_v19  ;;  %v1263_v57 = vand.u32 2147483647, %v1231_v58 }
 0x196   : > { %v1061_v25 = vsub.f32 %v991_v27, %v4185_v55  ;;  %v1062_v8 = vsub.f32 %v991_v27, %v4190_v10  ;;  %v1261_v27 = vand.u32 2147483647, %v1229_v20 }
 0x198   : > { %v1093_v15 = vand.u32 2147483647, %v1061_v25  ;;  %v1094_v44 = vand.u32 2147483647, %v1062_v8  ;;  %1712 = vmin.xlane.f32.xlu1 %v1711_v50  ;;  %v959_v25 = vand.u32 2147483647, %v927_v53 }
 0x199   : > { %v995_v34 = vpop.permute.xlu0 %994  ;;  %v1264_v50 = vand.u32 2147483647, %v1232_v24 }
 0x19a   : > { %v1125_v12 = vadd.f32 %v1093_v15, %v957_v4  ;;  %v1126_v13 = vadd.f32 %v1094_v44, %v958_v21  ;;  %v1063_v16 = vsub.f32 %v995_v34, %v4185_v55  ;;  %v1064_v8 = vsub.f32 %v995_v34, %v4190_v10  ;;  %v6840_v21 = vld [vmem:[#allocation9_spill] sm:$0xff] }
 0x19c   : > { %v4236_v30 = vadd.f32 %v1261_v27, %v1125_v12  ;;  %v4238_v20 = vadd.f32 %v1262_v54, %v1126_v13  ;;  %v1095_v14 = vand.u32 2147483647, %v1063_v16  ;;  %v1096_v7 = vand.u32 2147483647, %v1064_v8  ;;  %1736 = vmin.xlane.f32.xlu1 %v1735_v60 }
 0x19d   : > { %v4287_v24 = vpop.permute.xlu0 %1002 }
 0x19e   : > { %6837 = vst [vmem:[#allocation85_spill] sm:$0xff] %v4236_v30  ;;  %6838 = vst [vmem:[#allocation86_spill] sm:$0xff] %v4238_v20  ;;  %v1127_v15 = vadd.f32 %v1095_v14, %v959_v25  ;;  %v1128_v44 = vadd.f32 %v1096_v7, %v960_v48  ;;  %v1421_v34 = vsel %vm1389_vm1, %v4236_v30, 0.0  ;;  %v1422_v12 = vsel %vm1390_vm2, %v4238_v20, 0.0 }
 0x19f   : > { %v4252_v16 = vadd.f32 %v1422_v12, %v1421_v34  ;;  %v6841_v7 = vmov 1  }
 0x1a0   : > { %v4248_v39 = vadd.f32 %v1263_v57, %v1127_v15  ;;  %v4250_v53 = vadd.f32 %v1264_v50, %v1128_v44 }
 0x1a1   : > { %v4309_v14 = vpop.permute.xlu0 %1006 }
 0x1a2   : > { %v1423_v60 = vsel %vm1391_vm13, %v4248_v39, 0.0  ;;  %v1424_v63 = vsel %vm1392_vm14, %v4250_v53, 0.0 }
 0x1a3   : > { %v4262_v48 = vadd.f32 %v1424_v63, %v1423_v60  ;;  %v937_v60 = vsub.f32 %v3886_v43, %v4153_v6  ;;  %v938_v63 = vsub.f32 %v3886_v43, %v4156_v62 }
 0x1a5   : > { %v1015_v50 = vpop.permute.xlu0 %1014 }
 0x1a6   : > { %v1073_v44 = vsub.f32 %v1015_v50, %v4185_v55  ;;  %v1074_v34 = vsub.f32 %v1015_v50, %v4190_v10 }
 0x1ad   : > { %1194 = vperm.xlu1 %3055, %v6839_v17   ;;  %v1105_v17 = vand.u32 2147483647, %v1073_v44 }
 0x1b1   : > { %1198 = vperm.xlu1 %3055, %v6840_v21   ;;  %v1106_v21 = vand.u32 2147483647, %v1074_v34 }
 0x1b5   : > { %3056 = vset.pattern.permute.xlu1 %v6841_v7 }
 0x1c4   : > { %v4267_v13 = vpop.xlane.xlu1 %1347 }
 0x1c5   : > { %6842 = vst [vmem:[#allocation5_spill] sm:$0xff] %v4267_v13  ;;  %vm6454_vm1 = vcmp.eq.f32.partialorder %v3820_v9, %v4267_v13  ;;  %vm6453_vm2 = vcmp.eq.f32.partialorder %v3848_v1, %v4267_v13 }
 0x1c6   : > { %v4277_v22 = vsel %vm6454_vm1, 3e+38, %v3820_v9  ;;  %v4283_v52 = vsel %vm6453_vm2, 3e+38, %v3848_v1 }
 0x1c7   : > { %6843 = vst [vmem:[#allocation9_spill] sm:$0xff] %v4277_v22  ;;  %6844 = vst [vmem:[#allocation87_spill] sm:$0xff] %v4283_v52  ;;  %v1714_v4 = vmin.f32 %v4277_v22, %v4283_v52 }
 0x1c8   : > { %v4289_v27 = vpop.xlane.xlu1 %1371 }
 0x1c9   : > { %6845 = vst [vmem:[#allocation88_spill] sm:$0xff] %v4289_v27  ;;  %1715 = vmin.xlane.f32.xlu0 %v1714_v4  ;;  %vm6452_vm13 = vcmp.eq.f32.partialorder %v3824_v42, %v4289_v27  ;;  %vm6441_vm14 = vcmp.eq.f32.partialorder %v3844_v38, %v4289_v27  ;;  %v969_v4 = vand.u32 2147483647, %v937_v60  ;;  %v1066_v60 = vsub.f32 %v4109_v3, %v4190_v10 }
 0x1ca   : > { %v4299_v54 = vsel %vm6452_vm13, 3e+38, %v3824_v42  ;;  %v4305_v58 = vsel %vm6441_vm14, 3e+38, %v3844_v38 }
 0x1cb   : > { %6846 = vst [vmem:[#allocation89_spill] sm:$0xff] %v4299_v54  ;;  %6847 = vst [vmem:[#allocation90_spill] sm:$0xff] %v4305_v58  ;;  %v1738_v8 = vmin.f32 %v4299_v54, %v4305_v58  ;;  %v1137_v42 = vadd.f32 %v1105_v17, %v969_v4 }
 0x1cc   : > { %v1167_v25 = vpop.permute.xlu1 %1166 }
 0x1cd   : > { %1739 = vmin.xlane.f32.xlu0 %v1738_v8  ;;  %v970_v8 = vand.u32 2147483647, %v938_v63  ;;  %v1234_v4 = vsub.f32 %v1167_v25, %v4174_v59 }
 0x1cf   : > { %v1138_v1 = vadd.f32 %v1106_v21, %v970_v8  ;;  %v929_v21 = vsub.f32 %v3880_v5, %v4153_v6 }
 0x1d0   : > { %v4311_v57 = vpop.permute.xlu1 %1170 }
 0x1d4   : > { %v4313_v15 = vpop.permute.xlu1 %1174 }
 0x1d8   : > { %v4317_v12 = vpop.permute.xlu1 %1178 }
 0x1d9   : > { %6848 = vst [vmem:[#allocation91_spill] sm:$0xff] %v4317_v12 }
 0x1dc   : > { %v1183_v7 = vpop.permute.xlu1 %1182 }
 0x1dd   : > { %v1241_v38 = vsub.f32 %v1183_v7, %v4172_v51  ;;  %v1242_v27 = vsub.f32 %v1183_v7, %v4174_v59  ;;  %v1233_v7 = vsub.f32 %v1167_v25, %v4172_v51 }
 0x1df   : > { %v1273_v50 = vand.u32 2147483647, %v1241_v38  ;;  %v1274_v9 = vand.u32 2147483647, %v1242_v27  ;;  %v6851_v38 = vld [vmem:[#allocation6_spill] sm:$0xff] }
 0x1e1   : > { %v4325_v13 = vadd.f32 %v1273_v50, %v1137_v42  ;;  %v4327_v12 = vadd.f32 %v1274_v9, %v1138_v1  ;;  %v6852_v42 = vld [vmem:[#allocation7_spill] sm:$0xff]  ;;  %v1065_v1 = vsub.f32 %v4109_v3, %v4185_v55  ;;  %v1067_v3 = vsub.f32 %v4287_v24, %v4185_v55 }
 0x1e2   : > { %v1068_v50 = vsub.f32 %v4287_v24, %v4190_v10 }
 0x1e3   : > { %1022 = vperm.xlu0 %3053, %v6849_v31   ;;  %v1433_v43 = vsel %vm1401_vm11, %v4325_v13, 0.0  ;;  %v1434_v44 = vsel %vm1402_vm15, %v4327_v12, 0.0 }
 0x1e4   : > { %v4338_v34 = vadd.f32 %v1434_v44, %v1433_v43  ;;  %v1098_v43 = vand.u32 2147483647, %v1066_v60  ;;  %v932_v44 = vsub.f32 %v3888_v49, %v4156_v62  ;;  %v1235_v60 = vsub.f32 %v4311_v57, %v4172_v51 }
 0x1e6   : > { %6850 = vst [vmem:[#allocation8_spill] sm:$0xff] %v4338_v34  ;;  %v1099_v34 = vand.u32 2147483647, %v1067_v3 }
 0x1e7   : > { %1034 = vperm.xlu0 %3053, %v6851_v38   ;;  %v961_v38 = vand.u32 2147483647, %v929_v21 }
 0x1eb   : > { %1038 = vperm.xlu0 %3053, %v6852_v42  }
 0x1fb   : > { %v4342_v9 = vpop.xlane.xlu0 %1694 }
 0x1fc   : > { %6853 = vst [vmem:[#allocation6_spill] sm:$0xff] %v4342_v9  ;;  %vm1757_vm14 = vcmp.eq.f32.partialorder %v3925_v23, %v4342_v9  ;;  %vm1758_vm11 = vcmp.eq.f32.partialorder %v3931_v32, %v4342_v9  ;;  %v1267_v9 = vand.u32 2147483647, %v1235_v60  ;;  %v933_v60 = vsub.f32 %v3882_v28, %v4153_v6 }
 0x1fd   : > { %v4351_v56 = vsel %vm1757_vm14, 3e+38, %v3925_v23  ;;  %v4354_v29 = vsel %vm1758_vm11, 3e+38, %v3931_v32  ;;  %v1789_v31 = vsel %vm1757_vm14, %v4236_v30, 0.0  ;;  %v1790_v27 = vsel %vm1758_vm11, %v4238_v20, 0.0 }
 0x1fe   : > { %v2061_v63 = vmin.f32 %v4351_v56, %v4354_v29  ;;  %v4362_v17 = vadd.f32 %v1790_v27, %v1789_v31  ;;  %v930_v23 = vsub.f32 %v3880_v5, %v4156_v62  ;;  %v1097_v32 = vand.u32 2147483647, %v1065_v1 }
 0x1ff   : > { %v931_v5 = vsub.f32 %v3888_v49, %v4153_v6  ;;  %v1265_v31 = vand.u32 2147483647, %v1233_v7  ;;  %v1266_v27 = vand.u32 2147483647, %v1234_v4  ;;  %v964_v49 = vand.u32 2147483647, %v932_v44 }
 0x200   : > { %6854 = vst [vmem:[#allocation7_spill] sm:$0xff] %v4362_v17  ;;  %v4370_v8 = vpop.xlane.xlu0 %1721  ;;  %2062 = vmin.xlane.f32.xlu1 %v2061_v63  ;;  %v962_v42 = vand.u32 2147483647, %v930_v23  ;;  %v1236_v63 = vsub.f32 %v4311_v57, %v4174_v59 }
 0x201   : > { %6855 = vst [vmem:[#allocation92_spill] sm:$0xff] %v4370_v8  ;;  %vm6482_vm15 = vcmp.eq.f32.partialorder %v3947_v61, %v4370_v8  ;;  %vm6473_vm14 = vcmp.eq.f32.partialorder %v3953_v2, %v4370_v8  ;;  %v963_v46 = vand.u32 2147483647, %v931_v5 }
 0x202   : > { %v4386_v25 = vsel %vm6482_vm15, 3e+38, %v3947_v61  ;;  %v4392_v24 = vsel %vm6473_vm14, 3e+38, %v3953_v2  ;;  %v1100_v61 = vand.u32 2147483647, %v1068_v50  ;;  %v1129_v2 = vadd.f32 %v1097_v32, %v961_v38 }
 0x203   : > { %6856 = vst [vmem:[#allocation93_spill] sm:$0xff] %v4386_v25  ;;  %6857 = vst [vmem:[#allocation94_spill] sm:$0xff] %v4392_v24  ;;  %v2088_v1 = vmin.f32 %v4386_v25, %v4392_v24  ;;  %v1130_v8 = vadd.f32 %v1098_v43, %v962_v42  ;;  %v1268_v7 = vand.u32 2147483647, %v1236_v63  ;;  %v1131_v11 = vadd.f32 %v1099_v34, %v963_v46 }
 0x204   : > { %v4402_v21 = vadd.f32 %v1265_v31, %v1129_v2  ;;  %v1132_v17 = vadd.f32 %v1100_v61, %v964_v49  ;;  %v1069_v42 = vsub.f32 %v4309_v14, %v4185_v55  ;;  %v1070_v63 = vsub.f32 %v4309_v14, %v4190_v10  ;;  %v6882_v55 = vld [vmem:[#allocation11_spill] sm:$0xff] }
 0x205   : > { %2089 = vmin.xlane.f32.xlu1 %v2088_v1  ;;  %v4404_v23 = vadd.f32 %v1266_v27, %v1130_v8  ;;  %v4424_v34 = vadd.f32 %v1267_v9, %v1131_v11  ;;  %v1237_v49 = vsub.f32 %v4313_v15, %v4172_v51  ;;  %v934_v14 = vsub.f32 %v3882_v28, %v4156_v62 }
 0x206   : > { %v4426_v3 = vadd.f32 %v1268_v7, %v1132_v17  ;;  %v1238_v28 = vsub.f32 %v4313_v15, %v4174_v59  ;;  %v6879_v59 = vld [vmem:[#allocation68_spill] sm:$0xff] }
 0x207   : > { %v4406_v4 = vpop.xlane.xlu0 %1700 }
 0x208   : > { %6858 = vst [vmem:[#allocation95_spill] sm:$0xff] %v4406_v4  ;;  %vm1761_vm11 = vcmp.eq.f32.partialorder %v3971_v40, %v4406_v4  ;;  %vm1762_vm13 = vcmp.eq.f32.partialorder %v3981_v35, %v4406_v4 }
 0x209   : > { %v4413_v57 = vsel %vm1761_vm11, 3e+38, %v3971_v40  ;;  %v4416_v2 = vsel %vm1762_vm13, 3e+38, %v3981_v35  ;;  %v1793_v32 = vsel %vm1761_vm11, %v4402_v21, 0.0  ;;  %v1794_v8 = vsel %vm1762_vm13, %v4404_v23, 0.0 }
 0x20a   : > { %v2067_v46 = vmin.f32 %v4413_v57, %v4416_v2  ;;  %v4422_v61 = vadd.f32 %v1794_v8, %v1793_v32 }
 0x20b   : > { %v4428_v50 = vpop.xlane.xlu0 %1703 }
 0x20c   : > { %6859 = vst [vmem:[#allocation96_spill] sm:$0xff] %v4422_v61  ;;  %6860 = vst [vmem:[#allocation97_spill] sm:$0xff] %v4428_v50  ;;  %2068 = vmin.xlane.f32.xlu1 %v2067_v46  ;;  %vm1763_vm2 = vcmp.eq.f32.partialorder %v3995_v33, %v4428_v50  ;;  %vm1764_vm11 = vcmp.eq.f32.partialorder %v4001_v0, %v4428_v50  ;;  %v1101_v46 = vand.u32 2147483647, %v1069_v42 }
 0x20d   : > { %v4434_v40 = vpop.xlane.xlu1 %1718  ;;  %v4437_v35 = vsel %vm1763_vm2, 3e+38, %v3995_v33  ;;  %v4440_v5 = vsel %vm1764_vm11, 3e+38, %v4001_v0  ;;  %v1795_v11 = vsel %vm1763_vm2, %v4424_v34, 0.0  ;;  %v1796_v9 = vsel %vm1764_vm11, %v4426_v3, 0.0 }
 0x20e   : > { %6861 = vst [vmem:[#allocation98_spill] sm:$0xff] %v4434_v40  ;;  %v2070_v17 = vmin.f32 %v4437_v35, %v4440_v5  ;;  %vm6458_vm13 = vcmp.eq.f32.partialorder %v4009_v26, %v4434_v40  ;;  %vm6455_vm1 = vcmp.eq.f32.partialorder %v4015_v45, %v4434_v40  ;;  %v4452_v33 = vadd.f32 %v1796_v9, %v1795_v11  ;;  %v6877_v40 = vld [vmem:[#allocation75_spill] sm:$0xff] }
 0x20f   : > { %v4446_v43 = vpop.xlane.xlu0 %1727  ;;  %v4458_v0 = vsel %vm6458_vm13, 3e+38, %v4009_v26  ;;  %v4466_v38 = vsel %vm6455_vm1, 3e+38, %v4015_v45 }
 0x210   : > { %6862 = vst [vmem:[#allocation99_spill] sm:$0xff] %v4446_v43  ;;  %6863 = vst [vmem:[#allocation100_spill] sm:$0xff] %v4452_v33  ;;  %2071 = vmin.xlane.f32.xlu1 %v2070_v17  ;;  %vm6457_vm2 = vcmp.eq.f32.partialorder %v4033_v36, %v4446_v43  ;;  %vm6456_vm11 = vcmp.eq.f32.partialorder %v4039_v37, %v4446_v43  ;;  %v2085_v1 = vmin.f32 %v4458_v0, %v4466_v38  ;;  %v6871_v17 = vld [vmem:[#allocation69_spill] sm:$0xff]  ;;  %v6876_v43 = vld [vmem:[#allocation74_spill] sm:$0xff] }
 0x211   : > { %6864 = vst [vmem:[#allocation101_spill] sm:$0xff] %v4458_v0  ;;  %v4460_v44 = vpop.xlane.xlu1 %1697  ;;  %6866 = vst [vmem:[#allocation103_spill] sm:$0xff] %v4466_v38  ;;  %v4480_v31 = vsel %vm6457_vm2, 3e+38, %v4033_v36  ;;  %v4486_v27 = vsel %vm6456_vm11, 3e+38, %v4039_v37 }
 0x212   : > { %6865 = vst [vmem:[#allocation102_spill] sm:$0xff] %v4460_v44  ;;  %6867 = vst [vmem:[#allocation104_spill] sm:$0xff] %v4480_v31  ;;  %vm1759_vm1 = vcmp.eq.f32.partialorder %v4049_v47, %v4460_v44  ;;  %2086 = vmin.xlane.f32.xlu0 %v2085_v1  ;;  %v2094_v7 = vmin.f32 %v4480_v31, %v4486_v27  ;;  %vm1760_vm11 = vcmp.eq.f32.partialorder %v4055_v41, %v4460_v44  ;;  %v6872_v1 = vld [vmem:[#allocation70_spill] sm:$0xff]  ;;  %v6883_v33 = vld [vmem:[#allocation76_spill] sm:$0xff] }
 0x213   : > { %6868 = vst [vmem:[#allocation105_spill] sm:$0xff] %v4486_v27  ;;  %v4506_v8 = vsel %vm1759_vm1, 3e+38, %v4049_v47  ;;  %v4510_v11 = vpop.xlane.xlu0 %1709  ;;  %v4516_v9 = vsel %vm1760_vm11, 3e+38, %v4055_v41  ;;  %v6893_v41 = vld [vmem:[#allocation81_spill] sm:$0xff] }
 0x214   : > { %6870 = vst [vmem:[#allocation107_spill] sm:$0xff] %v4510_v11  ;;  %2095 = vmin.xlane.f32.xlu1 %v2094_v7  ;;  %v965_v37 = vand.u32 2147483647, %v933_v60  ;;  %v1102_v36 = vand.u32 2147483647, %v1070_v63  ;;  %v2064_v42 = vmin.f32 %v4506_v8, %v4516_v9  ;;  %vm6486_vm14 = vcmp.eq.f32.partialorder %v6879_v59, %v4510_v11 }
 0x215   : > { %v4498_v32 = vpop.xlane.xlu1 %1724  ;;  %v1269_v7 = vand.u32 2147483647, %v1237_v49  ;;  %v966_v63 = vand.u32 2147483647, %v934_v14 }
 0x216   : > { %6869 = vst [vmem:[#allocation106_spill] sm:$0xff] %v4498_v32  ;;  %vm6470_vm2 = vcmp.eq.f32.partialorder %v6871_v17, %v4498_v32  ;;  %vm6481_vm13 = vcmp.eq.f32.partialorder %v6872_v1, %v4498_v32  ;;  %v1133_v15 = vadd.f32 %v1101_v46, %v965_v37  ;;  %2065 = vmin.xlane.f32.xlu0 %v2064_v42 }
 0x217   : > { %v4532_v26 = vsel %vm6470_vm2, 3e+38, %v6871_v17  ;;  %v4538_v60 = vsel %vm6481_vm13, 3e+38, %v6872_v1  ;;  %v6878_v17 = vld [vmem:[#allocation67_spill] sm:$0xff]  ;;  %v4550_v51 = vpop.xlane.xlu0 %1733  ;;  %v1134_v46 = vadd.f32 %v1102_v36, %v966_v63 }
 0x218   : > { %6874 = vst [vmem:[#allocation109_spill] sm:$0xff] %v4532_v26  ;;  %6875 = vst [vmem:[#allocation110_spill] sm:$0xff] %v4538_v60  ;;  %v2091_v49 = vmin.f32 %v4532_v26, %v4538_v60  ;;  %vm6485_vm2 = vcmp.eq.f32.partialorder %v6878_v17, %v4510_v11  ;;  %v1270_v1 = vand.u32 2147483647, %v1238_v28  ;;  %v4564_v42 = vadd.f32 %v1269_v7, %v1133_v15  ;;  %v6888_v15 = vld [vmem:[#allocation72_spill] sm:$0xff] }
 0x219   : > { %v4526_v45 = vpop.xlane.xlu1 %1706  ;;  %6880 = vst [vmem:[#allocation74_spill] sm:$0xff] %v4550_v51  ;;  %v4578_v32 = vsel %vm6485_vm2, 3e+38, %v6878_v17  ;;  %v4584_v36 = vsel %vm6486_vm14, 3e+38, %v6879_v59  ;;  %vm6500_vm2 = vcmp.eq.f32.partialorder %v6888_v15, %v4550_v51 }
 0x21a   : > { %6873 = vst [vmem:[#allocation108_spill] sm:$0xff] %v4526_v45  ;;  %vm1765_vm3 = vcmp.eq.f32.partialorder %v6876_v43, %v4526_v45  ;;  %vm1766_vm9 = vcmp.eq.f32.partialorder %v6877_v40, %v4526_v45  ;;  %2092 = vmin.xlane.f32.xlu0 %v2091_v49  ;;  %6884 = vst [vmem:[#allocation111_spill] sm:$0xff] %v4578_v32  ;;  %v6889_v49 = vld [vmem:[#allocation73_spill] sm:$0xff]  ;;  %v4602_v59 = vadd.f32 %v1270_v1, %v1134_v46 }
 0x21b   : > { %v4556_v37 = vsel %vm1765_vm3, 3e+38, %v6876_v43  ;;  %v4562_v14 = vsel %vm1766_vm9, 3e+38, %v6877_v40  ;;  %6885 = vst [vmem:[#allocation112_spill] sm:$0xff] %v4584_v36  ;;  %vm6499_vm14 = vcmp.eq.f32.partialorder %v6889_v49, %v4550_v51  ;;  %v1797_v1 = vsel %vm1765_vm3, %v4564_v42, 0.0 }
 0x21c   : > { %v2073_v28 = vmin.f32 %v4556_v37, %v4562_v14  ;;  %v4626_v46 = vsel %vm6500_vm2, 3e+38, %v6888_v15  ;;  %v4632_v47 = vsel %vm6499_vm14, 3e+38, %v6889_v49  ;;  %v6894_v43 = vld [vmem:[#allocation82_spill] sm:$0xff]  ;;  %v1798_v15 = vsel %vm1766_vm9, %v4602_v59, 0.0 }
 0x21d   : > { %v4566_v10 = vpop.xlane.xlu1 %1730  ;;  %6891 = vst [vmem:[#allocation116_spill] sm:$0xff] %v4626_v46  ;;  %6892 = vst [vmem:[#allocation117_spill] sm:$0xff] %v4632_v47  ;;  %v4644_v11 = vadd.f32 %v1798_v15, %v1797_v1  ;;  %v2100_v49 = vmin.f32 %v4626_v46, %v4632_v47 }
 0x21e   : > { %6881 = vst [vmem:[#allocation75_spill] sm:$0xff] %v4566_v10  ;;  %vm6524_vm13 = vcmp.eq.f32.partialorder %v6882_v55, %v4566_v10  ;;  %vm6508_vm15 = vcmp.eq.f32.partialorder %v6883_v33, %v4566_v10  ;;  %2074 = vmin.xlane.f32.xlu1 %v2073_v28  ;;  %v1792_v10 = vsel %vm1760_vm11, %v4250_v53, 0.0 }
 0x21f   : > { %v4590_v7 = vsel %vm6524_vm13, 3e+38, %v6882_v55  ;;  %v4596_v63 = vsel %vm6508_vm15, 3e+38, %v6883_v33  ;;  %v2076_v55 = vmin.f32 %v4578_v32, %v4584_v36  ;;  %v1791_v33 = vsel %vm1759_vm1, %v4248_v39, 0.0 }
 0x220   : > { %6886 = vst [vmem:[#allocation113_spill] sm:$0xff] %v4590_v7  ;;  %6887 = vst [vmem:[#allocation114_spill] sm:$0xff] %v4596_v63  ;;  %v2097_v28 = vmin.f32 %v4590_v7, %v4596_v63 }
 0x221   : > { %v4606_v17 = vpop.xlane.xlu1 %1712 }
 0x222   : > { %6890 = vst [vmem:[#allocation115_spill] sm:$0xff] %v4606_v17  ;;  %2098 = vmin.xlane.f32.xlu0 %v2097_v28  ;;  %vm1769_vm1 = vcmp.eq.f32.partialorder %v6893_v41, %v4606_v17  ;;  %2077 = vmin.xlane.f32.xlu1 %v2076_v55  ;;  %vm1770_vm3 = vcmp.eq.f32.partialorder %v6894_v43, %v4606_v17 }
 0x223   : > { %v4638_v28 = vadd.f32 %v1792_v10, %v1791_v33  ;;  %v1801_v51 = vsel %vm1769_vm1, %v4325_v13, 0.0  ;;  %v1802_v55 = vsel %vm1770_vm3, %v4327_v12, 0.0  ;;  %v4657_v10 = vsel %vm1769_vm1, 3e+38, %v6893_v41 }
 0x224   : > { %v4660_v40 = vsel %vm1770_vm3, 3e+38, %v6894_v43  ;;  %v4674_v1 = vadd.f32 %v1802_v55, %v1801_v51 }
 0x225   : > { %v4646_v61 = vpop.xlane.xlu1 %1736 }
 0x226   : > { %6895 = vst [vmem:[#allocation81_spill] sm:$0xff] %v4646_v61  ;;  %vm6541_vm11 = vcmp.eq.f32.partialorder %v4222_v18, %v4646_v61  ;;  %vm6540_vm14 = vcmp.eq.f32.partialorder %v4228_v19, %v4646_v61  ;;  %2101 = vmin.xlane.f32.xlu1 %v2100_v49  ;;  %6896 = vst [vmem:[#allocation82_spill] sm:$0xff] %v4674_v1  ;;  %v2079_v49 = vmin.f32 %v4657_v10, %v4660_v40 }
 0x227   : > { %v4666_v33 = vsel %vm6541_vm11, 3e+38, %v4222_v18  ;;  %v4672_v15 = vsel %vm6540_vm14, 3e+38, %v4228_v19 }
 0x228   : > { %v2103_v41 = vmin.f32 %v4666_v33, %v4672_v15 }
 0x229   : > { %v4720_v19 = vpop.permute.xlu1 %1194 }
 0x22a   : > { %2104 = vmin.xlane.f32.xlu0 %v2103_v41  ;;  %2080 = vmin.xlane.f32.xlu1 %v2079_v49  ;;  %6903 = vst [vmem:[#allocation124_spill] sm:$0xff] %v4720_v19 }
 0x22d   : > { %v4722_v61 = vpop.permute.xlu1 %1198 }
 0x22e   : > { %6904 = vst [vmem:[#allocation125_spill] sm:$0xff] %v4722_v61 }
 0x252   : > { %v4680_v43 = vpop.xlane.xlu0 %1715 }
 0x253   : > { %6897 = vst [vmem:[#allocation118_spill] sm:$0xff] %v4680_v43  ;;  %vm6527_vm9 = vcmp.eq.f32.partialorder %v4277_v22, %v4680_v43  ;;  %vm6525_vm1 = vcmp.eq.f32.partialorder %v4283_v52, %v4680_v43 }
 0x254   : > { %v4690_v51 = vsel %vm6527_vm9, 3e+38, %v4277_v22  ;;  %v4696_v55 = vsel %vm6525_vm1, 3e+38, %v4283_v52 }
 0x255   : > { %6898 = vst [vmem:[#allocation119_spill] sm:$0xff] %v4690_v51  ;;  %6899 = vst [vmem:[#allocation120_spill] sm:$0xff] %v4696_v55  ;;  %v2082_v41 = vmin.f32 %v4690_v51, %v4696_v55 }
 0x256   : > { %v4700_v49 = vpop.xlane.xlu0 %1739 }
 0x257   : > { %6900 = vst [vmem:[#allocation121_spill] sm:$0xff] %v4700_v49  ;;  %2083 = vmin.xlane.f32.xlu1 %v2082_v41  ;;  %vm6507_vm3 = vcmp.eq.f32.partialorder %v4299_v54, %v4700_v49  ;;  %vm6519_vm2 = vcmp.eq.f32.partialorder %v4305_v58, %v4700_v49 }
 0x258   : > { %v4710_v22 = vsel %vm6507_vm3, 3e+38, %v4299_v54  ;;  %v4716_v52 = vsel %vm6519_vm2, 3e+38, %v4305_v58 }
 0x259   : > { %6901 = vst [vmem:[#allocation122_spill] sm:$0xff] %v4710_v22  ;;  %6902 = vst [vmem:[#allocation123_spill] sm:$0xff] %v4716_v52  ;;  %v2106_v41 = vmin.f32 %v4710_v22, %v4716_v52 }
 0x25b   : > { %2107 = vmin.xlane.f32.xlu1 %v2106_v41 }
 0x25e   : > { %v4742_v61 = vpop.permute.xlu0 %1022 }
 0x25f   : > { %6905 = vst [vmem:[#allocation126_spill] sm:$0xff] %v4742_v61 }
 0x262   : > { %v4746_v17 = vpop.permute.xlu0 %1034 }
 0x263   : > { %6907 = vst [vmem:[#allocation128_spill] sm:$0xff] %v4746_v17 }
 0x289   : > { %v4724_v18 = vpop.xlane.xlu1 %2062 }
 0x28a   : > { %vm2125_vm3 = vcmp.eq.f32.partialorder %v4351_v56, %v4724_v18  ;;  %vm2126_vm15 = vcmp.eq.f32.partialorder %v4354_v29, %v4724_v18 }
 0x28b   : > { %v4731_v49 = vsel %vm2125_vm3, 3e+38, %v4351_v56  ;;  %v4734_v58 = vsel %vm2126_vm15, 3e+38, %v4354_v29  ;;  %v2157_v41 = vsel %vm2125_vm3, %v4236_v30, 0.0  ;;  %v2158_v54 = vsel %vm2126_vm15, %v4238_v20, 0.0  ;;  %v4768_v30 = vpop.permute.xlu0 %1038 }
 0x28c   : > { %v2429_v1 = vmin.f32 %v4731_v49, %v4734_v58  ;;  %v4740_v43 = vadd.f32 %v2158_v54, %v2157_v41  ;;  %6910 = vst [vmem:[#allocation131_spill] sm:$0xff] %v4768_v30 }
 0x28e   : > { %2430 = vmin.xlane.f32.xlu0 %v2429_v1  ;;  %v4744_v19 = vpop.xlane.xlu1 %2089 }
 0x28f   : > { %6906 = vst [vmem:[#allocation127_spill] sm:$0xff] %v4744_v19  ;;  %vm2143_vm1 = vcmp.eq.f32.partialorder %v4386_v25, %v4744_v19  ;;  %vm6627_vm9 = vcmp.eq.f32.partialorder %v4392_v24, %v4744_v19 }
 0x295   : > { %v4748_v56 = vpop.xlane.xlu1 %2068 }
 0x296   : > { %6908 = vst [vmem:[#allocation129_spill] sm:$0xff] %v4748_v56  ;;  %vm2129_vm2 = vcmp.eq.f32.partialorder %v4413_v57, %v4748_v56  ;;  %vm2130_vm15 = vcmp.eq.f32.partialorder %v4416_v2, %v4748_v56 }
 0x297   : > { %v4755_v29 = vsel %vm2129_vm2, 3e+38, %v4413_v57  ;;  %v4758_v54 = vsel %vm2130_vm15, 3e+38, %v4416_v2  ;;  %v2161_v1 = vsel %vm2129_vm2, %v4402_v21, 0.0  ;;  %v2162_v41 = vsel %vm2130_vm15, %v4404_v23, 0.0 }
 0x298   : > { %v2435_v17 = vmin.f32 %v4755_v29, %v4758_v54  ;;  %v4764_v61 = vadd.f32 %v2162_v41, %v2161_v1 }
 0x299   : > { %v4766_v20 = vpop.xlane.xlu1 %2071 }
 0x29a   : > { %6909 = vst [vmem:[#allocation130_spill] sm:$0xff] %v4766_v20  ;;  %2436 = vmin.xlane.f32.xlu0 %v2435_v17  ;;  %vm2131_vm3 = vcmp.eq.f32.partialorder %v4437_v35, %v4766_v20  ;;  %vm2132_vm13 = vcmp.eq.f32.partialorder %v4440_v5, %v4766_v20 }
 0x29b   : > { %v2163_v57 = vsel %vm2131_vm3, %v4424_v34, 0.0  ;;  %v2164_v2 = vsel %vm2132_vm13, %v4426_v3, 0.0  ;;  %v4784_v41 = vpop.xlane.xlu0 %2086 }
 0x29c   : > { %v4782_v1 = vadd.f32 %v2164_v2, %v2163_v57  ;;  %6912 = vst [vmem:[#allocation133_spill] sm:$0xff] %v4784_v41  ;;  %vm6529_vm2 = vcmp.eq.f32.partialorder %v4458_v0, %v4784_v41  ;;  %vm6530_vm15 = vcmp.eq.f32.partialorder %v4466_v38, %v4784_v41  ;;  %v4834_v41 = vsel %vm6627_vm9, 3e+38, %v4392_v24 }
 0x29d   : > { %v4794_v17 = vsel %vm6529_vm2, 3e+38, %v4458_v0  ;;  %v4800_v57 = vsel %vm6530_vm15, 3e+38, %v4466_v38  ;;  %v4810_v0 = vpop.xlane.xlu1 %2095  ;;  %6918 = vst [vmem:[#allocation139_spill] sm:$0xff] %v4834_v41 }
 0x29e   : > { %6911 = vst [vmem:[#allocation132_spill] sm:$0xff] %v4782_v1  ;;  %6913 = vst [vmem:[#allocation134_spill] sm:$0xff] %v4794_v17  ;;  %v2453_v2 = vmin.f32 %v4794_v17, %v4800_v57 }
 0x29f   : > { %6914 = vst [vmem:[#allocation135_spill] sm:$0xff] %v4800_v57  ;;  %v4806_v30 = vpop.xlane.xlu0 %2065  ;;  %6916 = vst [vmem:[#allocation137_spill] sm:$0xff] %v4810_v0 }
 0x2a0   : > { %6915 = vst [vmem:[#allocation136_spill] sm:$0xff] %v4806_v30  ;;  %2454 = vmin.xlane.f32.xlu1 %v2453_v2  ;;  %vm2127_vm2 = vcmp.eq.f32.partialorder %v4506_v8, %v4806_v30  ;;  %vm2128_vm15 = vcmp.eq.f32.partialorder %v4516_v9, %v4806_v30  ;;  %v4826_v2 = vsel %vm2143_vm1, 3e+38, %v4386_v25 }
 0x2a1   : > { %v4817_v38 = vsel %vm2127_vm2, 3e+38, %v4506_v8  ;;  %v4820_v57 = vsel %vm2128_vm15, 3e+38, %v4516_v9  ;;  %6917 = vst [vmem:[#allocation138_spill] sm:$0xff] %v4826_v2  ;;  %v2159_v8 = vsel %vm2127_vm2, %v4248_v39, 0.0  ;;  %v2456_v24 = vmin.f32 %v4826_v2, %v4834_v41 }
 0x2a2   : > { %v2432_v17 = vmin.f32 %v4817_v38, %v4820_v57  ;;  %v2160_v9 = vsel %vm2128_vm15, %v4250_v53, 0.0 }
 0x2a3   : > { %v4838_v1 = vpop.xlane.xlu0 %2092  ;;  %v4840_v45 = vadd.f32 %v2160_v9, %v2159_v8  ;;  %v4870_v9 = vsel %vm2131_vm3, 3e+38, %v4437_v35  ;;  %vm6556_vm3 = vcmp.eq.f32.partialorder %v4486_v27, %v4810_v0 }
 0x2a4   : > { %6919 = vst [vmem:[#allocation140_spill] sm:$0xff] %v4838_v1  ;;  %vm6571_vm14 = vcmp.eq.f32.partialorder %v4532_v26, %v4838_v1  ;;  %vm6551_vm11 = vcmp.eq.f32.partialorder %v4538_v60, %v4838_v1  ;;  %2433 = vmin.xlane.f32.xlu1 %v2432_v17 }
 0x2a5   : > { %v4854_v19 = vsel %vm6571_vm14, 3e+38, %v4532_v26  ;;  %v4860_v8 = vsel %vm6551_vm11, 3e+38, %v4538_v60  ;;  %v4876_v26 = vsel %vm2132_vm13, 3e+38, %v4440_v5  ;;  %vm6570_vm13 = vcmp.eq.f32.partialorder %v4480_v31, %v4810_v0 }
 0x2a6   : > { %6921 = vst [vmem:[#allocation142_spill] sm:$0xff] %v4854_v19  ;;  %6922 = vst [vmem:[#allocation143_spill] sm:$0xff] %v4860_v8  ;;  %v2459_v17 = vmin.f32 %v4854_v19, %v4860_v8 }
 0x2a7   : > { %v4846_v25 = vpop.xlane.xlu1 %2074 }
 0x2a8   : > { %6920 = vst [vmem:[#allocation141_spill] sm:$0xff] %v4846_v25  ;;  %vm2133_vm2 = vcmp.eq.f32.partialorder %v4556_v37, %v4846_v25  ;;  %vm2134_vm15 = vcmp.eq.f32.partialorder %v4562_v14, %v4846_v25  ;;  %2457 = vmin.xlane.f32.xlu1 %v2456_v24  ;;  %2460 = vmin.xlane.f32.xlu0 %v2459_v17  ;;  %v4904_v24 = vsel %vm6570_vm13, 3e+38, %v4480_v31  ;;  %v4910_v17 = vsel %vm6556_vm3, 3e+38, %v4486_v27 }
 0x2a9   : > { %v4881_v60 = vsel %vm2133_vm2, 3e+38, %v4556_v37  ;;  %v4887_v8 = vsel %vm2134_vm15, 3e+38, %v4562_v14  ;;  %v2165_v35 = vsel %vm2133_vm2, %v4564_v42, 0.0  ;;  %v2438_v37 = vmin.f32 %v4870_v9, %v4876_v26  ;;  %6926 = vst [vmem:[#allocation147_spill] sm:$0xff] %v4904_v24 }
 0x2aa   : > { %6923 = vst [vmem:[#allocation144_spill] sm:$0xff] %v4881_v60  ;;  %6924 = vst [vmem:[#allocation145_spill] sm:$0xff] %v4887_v8  ;;  %v2441_v5 = vmin.f32 %v4881_v60, %v4887_v8  ;;  %v2166_v31 = vsel %vm2134_vm15, %v4602_v59, 0.0  ;;  %v2462_v0 = vmin.f32 %v4904_v24, %v4910_v17  ;;  %v3187_v8 = vld [vmem:[%s3460_s29 + $0x70] sm:$0xff]  ;;  %v3189_v60 = vld [vmem:[%s3460_s29 + $0x38] sm:$0xff] }
 0x2ab   : > { %v4890_v19 = vpop.xlane.xlu1 %2077  ;;  %6927 = vst [vmem:[#allocation148_spill] sm:$0xff] %v4910_v17  ;;  %v4924_v27 = vadd.f32 %v2166_v31, %v2165_v35 }
 0x2ac   : > { %6925 = vst [vmem:[#allocation146_spill] sm:$0xff] %v4890_v19  ;;  %2439 = vmin.xlane.f32.xlu1 %v2438_v37  ;;  %2442 = vmin.xlane.f32.xlu0 %v2441_v5  ;;  %vm2135_vm2 = vcmp.eq.f32.partialorder %v4578_v32, %v4890_v19  ;;  %vm2136_vm11 = vcmp.eq.f32.partialorder %v4584_v36, %v4890_v19 }
 0x2ad   : > { %6929 = vst [vmem:[#allocation150_spill] sm:$0xff] %v4924_v27  ;;  %v4930_v5 = vsel %vm2135_vm2, 3e+38, %v4578_v32  ;;  %v4936_v37 = vsel %vm2136_vm11, 3e+38, %v4584_v36  ;;  %v3190_v36 = vld [vmem:[%s3460_s29 + $0x48] sm:$0xff] }
 0x2ae   : > { %6930 = vst [vmem:[#allocation151_spill] sm:$0xff] %v4936_v37  ;;  %v2444_v31 = vmin.f32 %v4930_v5, %v4936_v37  ;;  %v3192_v32 = vld [vmem:[%s3460_s29 + $0x68] sm:$0xff]  ;;  %v4965_v37 = vpop.xlane.xlu0 %2098 }
 0x2af   : > { %v4912_v41 = vpop.xlane.xlu1 %2101  ;;  %6934 = vst [vmem:[#allocation154_spill] sm:$0xff] %v4965_v37 }
 0x2b0   : > { %6928 = vst [vmem:[#allocation149_spill] sm:$0xff] %v4912_v41  ;;  %2463 = vmin.xlane.f32.xlu1 %v2462_v0 }
 0x2b3   : > { %v4938_v14 = vpop.xlane.xlu1 %2080 }
 0x2b4   : > { %6931 = vst [vmem:[#allocation152_spill] sm:$0xff] %v4938_v14  ;;  %vm2137_vm15 = vcmp.eq.f32.partialorder %v4657_v10, %v4938_v14  ;;  %vm2138_vm3 = vcmp.eq.f32.partialorder %v4660_v40, %v4938_v14  ;;  %2445 = vmin.xlane.f32.xlu1 %v2444_v31  ;;  %v3191_v31 = vld [vmem:[%s3460_s29 + $0x50] sm:$0xff] }
 0x2b5   : > { %v4947_v35 = vsel %vm2137_vm15, 3e+38, %v4657_v10  ;;  %v4950_v17 = vsel %vm2138_vm3, 3e+38, %v4660_v40  ;;  %v2169_v0 = vsel %vm2137_vm15, %v4325_v13, 0.0  ;;  %v2170_v2 = vsel %vm2138_vm3, %v4327_v12, 0.0 }
 0x2b6   : > { %v2447_v24 = vmin.f32 %v4947_v35, %v4950_v17  ;;  %v4956_v27 = vadd.f32 %v2170_v2, %v2169_v0  ;;  %v6933_v10 = vmov 2   ;;  %v3188_v40 = vld [vmem:[%s3460_s29 + $0x28] sm:$0xff]  ;;  %vm6573_vm3 = vcmp.eq.f32.partialorder %v4590_v7, %v4965_v37 }
 0x2b7   : > { %vm6577_vm15 = vcmp.eq.f32.partialorder %v4596_v63, %v4965_v37 }
 0x2b8   : > { %6932 = vst [vmem:[#allocation153_spill] sm:$0xff] %v4956_v27  ;;  %2448 = vmin.xlane.f32.xlu1 %v2447_v24  ;;  %v3193_v24 = vld [vmem:[%s3460_s29 + $0x78] sm:$0xff]  ;;  %v5002_v27 = vsel %vm6577_vm15, 3e+38, %v4596_v63  ;;  %v3194_v63 = vld [vmem:[%s3460_s29 + $0x40] sm:$0xff] }
 0x2b9   : > { %6939 = vst [vmem:[#allocation159_spill] sm:$0xff] %v5002_v27 }
 0x2c2   : > { %1046 = vperm.xlu0 %3053, %v3187_v8  }
 0x2c6   : > { %3057 = vset.pattern.permute.xlu0 %v6933_v10 }
 0x2c9   : > { %1010 = vperm.xlu1 %3056, %v3188_v40  }
 0x2cd   : > { %1018 = vperm.xlu1 %3056, %v3189_v60  }
 0x2d1   : > { %1026 = vperm.xlu1 %3056, %v3190_v36  }
 0x2d5   : > { %1030 = vperm.xlu1 %3056, %v3191_v31   ;;  %v4996_v31 = vsel %vm6573_vm3, 3e+38, %v4590_v7  ;;  %vm6609_vm3 = vcmp.eq.f32.partialorder %v4626_v46, %v4912_v41 }
 0x2d6   : > { %6938 = vst [vmem:[#allocation158_spill] sm:$0xff] %v4996_v31 }
 0x2d9   : > { %1042 = vperm.xlu1 %3056, %v3192_v32  }
 0x2dd   : > { %1050 = vperm.xlu1 %3056, %v3193_v24  }
 0x2e0   : > { %v4967_v2 = vpop.xlane.xlu1 %2083 }
 0x2e1   : > { %6935 = vst [vmem:[#allocation155_spill] sm:$0xff] %v4967_v2  ;;  %vm6578_vm13 = vcmp.eq.f32.partialorder %v4690_v51, %v4967_v2  ;;  %vm6574_vm14 = vcmp.eq.f32.partialorder %v4696_v55, %v4967_v2  ;;  %3058 = vset.pattern.permute.xlu1 %v6933_v10  ;;  %v6962_v2 = vld [vmem:[#allocation50_spill] sm:$0xff] }
 0x2e2   : > { %v4982_v36 = vsel %vm6578_vm13, 3e+38, %v4690_v51  ;;  %v4988_v0 = vsel %vm6574_vm14, 3e+38, %v4696_v55  ;;  %1214 = vperm.xlu1 %3058, %v3187_v8   ;;  %v2465_v55 = vmin.f32 %v4996_v31, %v5002_v27  ;;  %vm6608_vm14 = vcmp.eq.f32.partialorder %v4632_v47, %v4912_v41  ;;  %v6954_v31 = vld [vmem:[#allocation49_spill] sm:$0xff] }
 0x2e3   : > { %6936 = vst [vmem:[#allocation156_spill] sm:$0xff] %v4982_v36  ;;  %6937 = vst [vmem:[#allocation157_spill] sm:$0xff] %v4988_v0  ;;  %v2450_v40 = vmin.f32 %v4982_v36, %v4988_v0  ;;  %v5018_v8 = vsel %vm6609_vm3, 3e+38, %v4626_v46  ;;  %v6946_v46 = vld [vmem:[#allocation7_spill] sm:$0xff]  ;;  %v949_v41 = vsub.f32 %v6954_v31, %v4153_v6 }
 0x2e4   : > { %v5011_v7 = vpop.xlane.xlu1 %2107  ;;  %6941 = vst [vmem:[#allocation161_spill] sm:$0xff] %v5018_v8  ;;  %vm6624_vm3 = vcmp.lt.f32.partialorder %v4806_v30, 3e+38 }
 0x2e5   : > { %2451 = vmin.xlane.f32.xlu0 %v2450_v40  ;;  %6940 = vst [vmem:[#allocation160_spill] sm:$0xff] %v5011_v7  ;;  %vm6607_vm15 = vcmp.eq.f32.partialorder %v4710_v22, %v5011_v7  ;;  %vm6606_vm13 = vcmp.eq.f32.partialorder %v4716_v52, %v5011_v7  ;;  %v6950_v7 = vld [vmem:[#allocation57_spill] sm:$0xff] }
 0x2e6   : > { %v5037_v10 = vsel %vm6607_vm15, 3e+38, %v4710_v22  ;;  %v5043_v40 = vsel %vm6606_vm13, 3e+38, %v4716_v52  ;;  %v6945_v22 = vld [vmem:[#allocation41_spill] sm:$0xff] }
 0x2e7   : > { %6943 = vst [vmem:[#allocation163_spill] sm:$0xff] %v5037_v10  ;;  %6944 = vst [vmem:[#allocation164_spill] sm:$0xff] %v5043_v40 }
 0x2e9   : > { %2466 = vmin.xlane.f32.xlu0 %v2465_v55  ;;  %v3195_v55 = vld [vmem:[%s3460_s29 + $0x58] sm:$0xff] }
 0x2ff   : > { %1186 = vperm.xlu0 %3057, %v3189_v60   ;;  %v5024_v60 = vsel %vm6608_vm14, 3e+38, %v4632_v47  ;;  %v3196_v47 = vld [vmem:[%s3460_s29 + $0x60] sm:$0xff]  ;;  %vm6621_vm14 = vcmp.lt.f32.partialorder %v4406_v4, 3e+38  ;;  %s2815_s29 = scalar_lea.sflag [#allocation3], %s275_s15 }
 0x300   : > { %6942 = vst [vmem:[#allocation162_spill] sm:$0xff] %v5024_v60 }
 0x303   : > { %1190 = vperm.xlu0 %3057, %v3194_v63   ;;  %v2468_v63 = vmin.f32 %v5018_v8, %v5024_v60  ;;  %v935_v60 = vsub.f32 %v6945_v22, %v4153_v6 }
 0x306   : > { %2469 = vmin.xlane.f32.xlu1 %v2468_v63  ;;  %v936_v63 = vsub.f32 %v6945_v22, %v4156_v62  ;;  %v1426_v22 = vsel %vm1394_vm6, %v4404_v23, 0.0 }
 0x307   : > { %1202 = vperm.xlu0 %3057, %v3195_v55   ;;  %v2474_v55 = vmin.f32 %v5037_v10, %v5043_v40  ;;  %v5071_v10 = vand.u32 2147483647, %v935_v60  ;;  %v950_v60 = vsub.f32 %v6954_v31, %v4156_v62  ;;  %v6956_v40 = vld [vmem:[#allocation40_spill] sm:$0xff] }
 0x308   : > { %v5076_v27 = vand.u32 2147483647, %v936_v63  ;;  %v941_v0 = vsub.f32 %v6956_v40, %v4153_v6  ;;  %v6961_v31 = vld [vmem:[#allocation44_spill] sm:$0xff] }
 0x30a   : > { %2475 = vmin.xlane.f32.xlu1 %v2474_v55 }
 0x30b   : > { %1206 = vperm.xlu0 %3057, %v3196_v47   ;;  %v6947_v47 = vld [vmem:[#allocation43_spill] sm:$0xff] }
 0x30c   : > { %v939_v52 = vsub.f32 %v6947_v47, %v4153_v6  ;;  %v940_v55 = vsub.f32 %v6947_v47, %v4156_v62  ;;  %v6952_v47 = vld [vmem:[#allocation47_spill] sm:$0xff] }
 0x30d   : > { %v947_v8 = vsub.f32 %v6952_v47, %v4153_v6 }
 0x30e   : > { %1454 = vadd.xlane.f32.xlu1 %v4252_v16  ;;  %v5084_v51 = vand.u32 2147483647, %v940_v55 }
 0x30f   : > { %1210 = vperm.xlu0 %3057, %v3192_v32   ;;  %v6948_v32 = vld [vmem:[#allocation45_spill] sm:$0xff]  ;;  %v5098_v37 = vand.u32 2147483647, %v947_v8 }
 0x310   : > { %v943_v16 = vsub.f32 %v6948_v32, %v4153_v6  ;;  %6955 = vst [vmem:[#allocation7_spill] sm:$0xff] %v5084_v51  ;;  %v951_v51 = vsub.f32 %v6961_v31, %v4153_v6 }
 0x311   : > { %6960 = vst [vmem:[#allocation21_spill] sm:$0xff] %v5098_v37  ;;  %v5113_v37 = vand.u32 2147483647, %v950_v60 }
 0x312   : > { %1457 = vadd.xlane.f32.xlu1 %v4262_v48  ;;  %v944_v48 = vsub.f32 %v6948_v32, %v4156_v62  ;;  %v5078_v32 = vand.u32 2147483647, %v939_v52  ;;  %v942_v52 = vsub.f32 %v6956_v40, %v4156_v62  ;;  %v6965_v40 = vld [vmem:[#allocation46_spill] sm:$0xff] }
 0x313   : > { %1218 = vperm.xlu0 %3057, %v3193_v24   ;;  %v948_v24 = vsub.f32 %v6952_v47, %v4156_v62  ;;  %v6959_v47 = vld [vmem:[#allocation42_spill] sm:$0xff]  ;;  %v953_v8 = vsub.f32 %v6965_v40, %v4153_v6  ;;  %6966 = vst [vmem:[#allocation49_spill] sm:$0xff] %v5113_v37 }
 0x314   : > { %6953 = vst [vmem:[#allocation41_spill] sm:$0xff] %v5078_v32  ;;  %v5092_v63 = vand.u32 2147483647, %v944_v48  ;;  %v945_v32 = vsub.f32 %v6959_v47, %v4153_v6  ;;  %v946_v55 = vsub.f32 %v6959_v47, %v4156_v62  ;;  %v5107_v48 = vand.u32 2147483647, %v949_v41 }
 0x315   : > { %v954_v47 = vsub.f32 %v6965_v40, %v4156_v62  ;;  %v5135_v40 = vand.u32 2147483647, %v951_v51 }
 0x316   : > { %1822 = vadd.xlane.f32.xlu1 %v6946_v46  ;;  %v1425_v46 = vsel %vm1393_vm5, %v4402_v21, 0.0  ;;  %6958 = vst [vmem:[#allocation45_spill] sm:$0xff] %v5092_v63  ;;  %6964 = vst [vmem:[#allocation47_spill] sm:$0xff] %v5107_v48  ;;  %v5115_v63 = vand.u32 2147483647, %v941_v0  ;;  %v1428_v0 = vsel %vm1396_vm8, %v4426_v3, 0.0 }
 0x317   : > { %v1459_v36 = vadd.f32 %v1426_v22, %v1425_v46  ;;  %v1501_v46 = vmax.f32 %v6962_v2, 0.0  ;;  %v952_v22 = vsub.f32 %v6961_v31, %v4156_v62  ;;  %v5123_v41 = vand.u32 2147483647, %v945_v32  ;;  %v6972_v31 = vld [vmem:[#allocation56_spill] sm:$0xff]  ;;  %6974 = vst [vmem:[#allocation46_spill] sm:$0xff] %v5135_v40  ;;  %v5139_v32 = vpop.xlane.xlu0 %2104 }
 0x318   : > { %6967 = vst [vmem:[#allocation40_spill] sm:$0xff] %v5115_v63  ;;  %v5133_v37 = vand.u32 2147483647, %v946_v55  ;;  %v5144_v48 = vand.u32 2147483647, %v953_v8  ;;  %v6977_v63 = vld [vmem:[#allocation55_spill] sm:$0xff]  ;;  %vm6617_vm13 = vcmp.eq.f32.partialorder %v4666_v33, %v5139_v32  ;;  %vm6616_vm15 = vcmp.eq.f32.partialorder %v4672_v15, %v5139_v32 }
 0x319   : > { %6970 = vst [vmem:[#allocation44_spill] sm:$0xff] %v5123_v41  ;;  %v1502_v41 = vmax.f32 %v6977_v63, 0.0  ;;  %v5147_v60 = vand.u32 2147483647, %v954_v47  ;;  %vm6610_vm5 = vcmp.lt.f32.partialorder %v6962_v2, 3e+38 }
 0x31a   : > { %1825 = vadd.xlane.f32.xlu1 %v4638_v28  ;;  %v5090_v28 = vand.u32 2147483647, %v943_v16  ;;  %v5105_v16 = vand.u32 2147483647, %v948_v24  ;;  %v5121_v24 = vand.u32 2147483647, %v942_v52 }
 0x31b   : > { %v1517_v52 = vmul.f32 -0.25, %v1501_v46  ;;  %vm6611_vm6 = vcmp.lt.f32.partialorder %v6977_v63, 3e+38  ;;  %vm6612_vm8 = vcmp.lt.f32.partialorder %v4460_v44, 3e+38  ;;  %v5163_v46 = vpop.xlane.xlu0 %2430 }
 0x31c   : > { %6957 = vst [vmem:[#allocation43_spill] sm:$0xff] %v5090_v28  ;;  %6963 = vst [vmem:[#allocation18_spill] sm:$0xff] %v5105_v16  ;;  %v6968_v28 = vld [vmem:[#allocation48_spill] sm:$0xff]  ;;  %v1427_v16 = vsel %vm1395_vm7, %v4424_v34, 0.0 }
 0x31d   : > { %6969 = vst [vmem:[#allocation42_spill] sm:$0xff] %v5121_v24  ;;  %6975 = vst [vmem:[#allocation48_spill] sm:$0xff] %v5139_v32  ;;  %v5142_v24 = vand.u32 2147483647, %v952_v22  ;;  %v1462_v51 = vadd.f32 %v1428_v0, %v1427_v16  ;;  %v5165_v16 = vmul.f32 -0.25, %v1502_v41  ;;  %v6982_v22 = vmov 0.0  }
 0x31e   : > { %1460 = vadd.xlane.f32.xlu1 %v1459_v36  ;;  %v955_v36 = vsub.f32 %v6968_v28, %v4153_v6  ;;  %v956_v6 = vsub.f32 %v6968_v28, %v4156_v62  ;;  %v6979_v62 = vld [vmem:[#allocation6_spill] sm:$0xff]  ;;  %v5157_v28 = vmul.f32 1.442695, %v1517_v52  ;;  %6981 = vst [vmem:[#allocation166_spill] sm:$0xff] %v5163_v46  ;;  %v2938_v8 = vsel %vm6610_vm5, 1.0, %v6982_v22 }
 0x31f   : > { %6976 = vst [vmem:[#allocation19_spill] sm:$0xff] %v5142_v24  ;;  %vm6613_vm7 = vcmp.lt.f32.partialorder %v6979_v62, 3e+38  ;;  %v2955_v41 = vsel %vm6612_vm8, 1.0, %v6982_v22  ;;  %vm6626_vm5 = vcmp.lt.f32.partialorder %v6950_v7, 3e+38 }
 0x320   : > { %v5149_v55 = vand.u32 2147483647, %v955_v36  ;;  %v2939_v36 = vsel %vm6611_vm6, 1.0, %v6982_v22  ;;  %v2954_v0 = vsel %vm6613_vm7, 1.0, %v6982_v22  ;;  %v5194_v52 = vsel %vm6616_vm15, 3e+38, %v4672_v15 }
 0x321   : > { %6985 = vst [vmem:[#allocation169_spill] sm:$0xff] %v5194_v52  ;;  %vm6628_vm6 = vcmp.lt.f32.partialorder %v4724_v18, 3e+38  ;;  %vm6635_vm8 = vcmp.lt.f32.partialorder %v6972_v31, 3e+38  ;;  %v2956_v63 = vsel %vm6621_vm14, 1.0, %v6982_v22  ;;  %v2013_v40 = vadd.f32 %v2954_v0, %v2938_v8 }
 0x322   : > { %2190 = vadd.xlane.f32.xlu1 %v4740_v43  ;;  %6978 = vst [vmem:[#allocation20_spill] sm:$0xff] %v5149_v55  ;;  %v5155_v43 = vand.u32 2147483647, %v956_v6  ;;  %v5188_v6 = vsel %vm6617_vm13, 3e+38, %v4666_v33  ;;  %v2971_v2 = vsel %vm6624_vm3, 1.0, %v6982_v22  ;;  %3059 = vpow2.f32 %v5157_v28 }
 0x323   : > { %6984 = vst [vmem:[#allocation168_spill] sm:$0xff] %v5188_v6  ;;  %vm6629_vm7 = vcmp.lt.f32.partialorder %v4748_v56, 3e+38  ;;  %v2940_v55 = vsel %vm6626_vm5, 1.0, %v6982_v22  ;;  %vm6632_vm15 = vcmp.lt.f32.partialorder %v5163_v46, 3e+38  ;;  %v2471_v24 = vmin.f32 %v5188_v6, %v5194_v52 }
 0x324   : > { %6980 = vst [vmem:[#allocation165_spill] sm:$0xff] %v5155_v43  ;;  %v2014_v43 = vadd.f32 %v2955_v41, %v2939_v36  ;;  %v2970_v4 = vsel %vm6628_vm6, 1.0, %v6982_v22  ;;  %v2972_v36 = vsel %vm6629_vm7, 1.0, %v6982_v22  ;;  %v2015_v41 = vadd.f32 %v2956_v63, %v2940_v55  ;;  %v7002_v28 = vld [vmem:[#allocation85_spill] sm:$0xff] }
 0x325   : > { %v2986_v8 = vsel %vm6632_vm15, 1.0, %v6982_v22  ;;  %v2381_v55 = vadd.f32 %v2970_v4, %v2013_v40  ;;  %v6993_v4 = vld [vmem:[#allocation96_spill] sm:$0xff] }
 0x326   : > { %1463 = vadd.xlane.f32.xlu1 %v1462_v51  ;;  %v5197_v51 = vpop.xlane.xlu0 %2436  ;;  %v2382_v7 = vadd.f32 %v2971_v2, %v2014_v43  ;;  %v6990_v43 = vld [vmem:[#allocation71_spill] sm:$0xff]  ;;  %v2383_v6 = vadd.f32 %v2972_v36, %v2015_v41 }
 0x327   : > { %6986 = vst [vmem:[#allocation170_spill] sm:$0xff] %v5197_v51  ;;  %vm6634_vm3 = vcmp.lt.f32.partialorder %v5197_v51, 3e+38  ;;  %vm6637_vm7 = vcmp.lt.f32.partialorder %v6990_v43, 3e+38  ;;  %vm2497_vm15 = vcmp.eq.f32.partialorder %v4755_v29, %v5197_v51  ;;  %v1429_v29 = vsel %vm1397_vm10, %v4564_v42, 0.0 }
 0x329   : > { %v5172_v47 = vpop.xlane.xlu1 %2454 }
 0x32a   : > { %6983 = vst [vmem:[#allocation167_spill] sm:$0xff] %v5172_v47  ;;  %2196 = vadd.xlane.f32.xlu1 %v4764_v61  ;;  %v6987_v61 = vld [vmem:[#allocation62_spill] sm:$0xff]  ;;  %v6988_v47 = vld [vmem:[#allocation64_spill] sm:$0xff] }
 0x32b   : > { %vm6639_vm13 = vcmp.lt.f32.partialorder %v6987_v61, 3e+38  ;;  %vm6636_vm14 = vcmp.lt.f32.partialorder %v6988_v47, 3e+38 }
 0x32c   : > { %v2942_v40 = vsel %vm6639_vm13, 1.0, %v6982_v22 }
 0x32d   : > { %v5219_v30 = vpop.xlane.xlu1 %2433 }
 0x32e   : > { %6989 = vst [vmem:[#allocation171_spill] sm:$0xff] %v5219_v30  ;;  %vm2495_vm5 = vcmp.eq.f32.partialorder %v4817_v38, %v5219_v30  ;;  %vm2496_vm9 = vcmp.eq.f32.partialorder %v4820_v57, %v5219_v30  ;;  %vm6633_vm6 = vcmp.lt.f32.partialorder %v5219_v30, 3e+38  ;;  %v2988_v57 = vsel %vm6634_vm3, 1.0, %v6982_v22 }
 0x32f   : > { %v2527_v0 = vsel %vm2495_vm5, %v4248_v39, 0.0  ;;  %v2528_v63 = vsel %vm2496_vm9, %v4250_v53, 0.0  ;;  %v2987_v2 = vsel %vm6633_vm6, 1.0, %v6982_v22  ;;  %vm1744_vm5 = vcmp.lt.f32.partialorder %v4428_v50, 3e+38  ;;  %v6992_v53 = vld [vmem:[#allocation58_spill] sm:$0xff] }
 0x330   : > { %v2560_v38 = vadd.f32 %v2528_v63, %v2527_v0  ;;  %v2749_v39 = vadd.f32 %v2986_v8, %v2381_v55  ;;  %vm6638_vm9 = vcmp.lt.f32.partialorder %v6992_v53, 3e+38  ;;  %vm2498_vm6 = vcmp.eq.f32.partialorder %v4758_v54, %v5197_v51  ;;  %v6995_v63 = vld [vmem:[#allocation106_spill] sm:$0xff]  ;;  %v6998_v54 = vld [vmem:[#allocation108_spill] sm:$0xff] }
 0x331   : > { %v5242_v52 = vpop.xlane.xlu1 %2457  ;;  %v5257_v36 = vpop.xlane.xlu0 %2460  ;;  %v2751_v41 = vadd.f32 %v2988_v57, %v2383_v6  ;;  %v2943_v0 = vsel %vm6636_vm14, 1.0, %v6982_v22  ;;  %vm6648_vm3 = vcmp.lt.f32.partialorder %v6995_v63, 3e+38  ;;  %v2957_v55 = vsel %vm1744_vm5, 1.0, %v6982_v22  ;;  %v7003_v50 = vld [vmem:[#allocation86_spill] sm:$0xff] }
 0x332   : > { %2472 = vmin.xlane.f32.xlu0 %v2471_v24  ;;  %v2750_v24 = vadd.f32 %v2987_v2, %v2382_v7  ;;  %6991 = vst [vmem:[#allocation172_spill] sm:$0xff] %v5242_v52  ;;  %2561 = vadd.xlane.f32.xlu1 %v2560_v38  ;;  %v2941_v7 = vsel %vm6635_vm8, 1.0, %v6982_v22  ;;  %6994 = vst [vmem:[#allocation96_spill] sm:$0xff] %v5257_v36  ;;  %vm2112_vm8 = vcmp.lt.f32.partialorder %v4766_v20, 3e+38  ;;  %v2944_v2 = vsel %vm6637_vm7, 1.0, %v6982_v22 }
 0x333   : > { %v2948_v6 = vsel %vm6638_vm9, 1.0, %v6982_v22  ;;  %v2529_v57 = vsel %vm2497_vm15, %v4402_v21, 0.0  ;;  %vm6647_vm14 = vcmp.lt.f32.partialorder %v4838_v1, 3e+38  ;;  %vm2493_vm7 = vcmp.eq.f32.partialorder %v4731_v49, %v5163_v46 }
 0x334   : > { %v2786_v8 = vadd.f32 %v2750_v24, %v2749_v39  ;;  %v2530_v24 = vsel %vm2498_vm6, %v4404_v23, 0.0  ;;  %vm2494_vm9 = vcmp.eq.f32.partialorder %v4734_v58, %v5163_v46  ;;  %v2964_v23 = vsel %vm6648_vm3, 1.0, %v6982_v22 }
 0x335   : > { %v5273_v38 = vpop.xlane.xlu1 %2439  ;;  %vm1745_vm15 = vcmp.lt.f32.partialorder %v6998_v54, 3e+38  ;;  %vm6653_vm13 = vcmp.lt.f32.partialorder %v5257_v36, 3e+38  ;;  %v5307_v21 = vpop.xlane.xlu0 %2442  ;;  %v2525_v51 = vsel %vm2493_vm7, %v7002_v28, 0.0 }
 0x336   : > { %1828 = vadd.xlane.f32.xlu0 %v6993_v4  ;;  %6996 = vst [vmem:[#allocation173_spill] sm:$0xff] %v5273_v38  ;;  %v2787_v39 = vadd.f32 %v2786_v8, %v2751_v41  ;;  %1834 = vadd.xlane.f32.xlu1 %v4644_v11  ;;  %v6999_v4 = vld [vmem:[#allocation107_spill] sm:$0xff]  ;;  %v2563_v11 = vadd.f32 %v2530_v24, %v2529_v57  ;;  %v2980_v8 = vsel %vm6647_vm14, 1.0, %v6982_v22  ;;  %7000 = vst [vmem:[#allocation27_spill] sm:$0xff] %v5307_v21  ;;  %v7005_v24 = vld [vmem:[#allocation100_spill] sm:$0xff] }
 0x337   : > { %vm6687_vm6 = vcmp.lt.f32.partialorder %v6999_v4, 3e+38  ;;  %v2016_v41 = vadd.f32 %v2957_v55, %v2941_v7  ;;  %v2526_v7 = vsel %vm2494_vm9, %v7003_v50, 0.0  ;;  %v7004_v55 = vld [vmem:[#allocation115_spill] sm:$0xff]  ;;  %v2023_v57 = vadd.f32 %v2964_v23, %v2948_v6 }
 0x338   : > { %vm6660_vm10 = vcmp.lt.f32.partialorder %v7004_v55, 3e+38  ;;  %v2958_v20 = vsel %vm1745_vm15, 1.0, %v6982_v22  ;;  %v2959_v49 = vsel %vm6687_vm6, 1.0, %v6982_v22  ;;  %vm6683_vm7 = vcmp.lt.f32.partialorder %v4846_v25, 3e+38 }
 0x339   : > { %v5309_v43 = vpop.xlane.xlu1 %2463  ;;  %v2996_v58 = vsel %vm6653_vm13, 1.0, %v6982_v22  ;;  %vm6682_vm9 = vcmp.lt.f32.partialorder %v5273_v38, 3e+38  ;;  %vm6663_vm14 = vcmp.lt.f32.partialorder %v4890_v19, 3e+38  ;;  %v7006_v6 = vld [vmem:[#allocation51_spill] sm:$0xff]  ;;  %v2391_v23 = vadd.f32 %v2980_v8, %v2023_v57 }
 0x33a   : > { %2193 = vadd.xlane.f32.xlu0 %v4840_v45  ;;  %v2973_v45 = vsel %vm2112_vm8, 1.0, %v6982_v22  ;;  %7001 = vst [vmem:[#allocation174_spill] sm:$0xff] %v5309_v43  ;;  %2564 = vadd.xlane.f32.xlu1 %v2563_v11  ;;  %vm6666_vm3 = vcmp.lt.f32.partialorder %v7006_v6, 3e+38  ;;  %v2557_v11 = vadd.f32 %v2526_v7, %v2525_v51  ;;  %v2989_v54 = vsel %vm6682_vm9, 1.0, %v6982_v22  ;;  %v7009_v55 = vld [vmem:[#allocation12_spill] sm:$0xff] }
 0x33b   : > { %v2384_v50 = vadd.f32 %v2973_v45, %v2016_v41  ;;  %v2960_v41 = vsel %vm6660_vm10, 1.0, %v6982_v22  ;;  %v2974_v51 = vsel %vm6683_vm7, 1.0, %v6982_v22  ;;  %vm6664_vm13 = vcmp.lt.f32.partialorder %v5307_v21, 3e+38  ;;  %v7060_v19 = vld [vmem:[#allocation118_spill] sm:$0xff] }
 0x33c   : > { %v5350_v8 = vadd.f32 %v2996_v58, %v2391_v23  ;;  %v2017_v7 = vadd.f32 %v2958_v20, %v2942_v40  ;;  %v2018_v57 = vadd.f32 %v2959_v49, %v2943_v0  ;;  %v2975_v28 = vsel %vm6663_vm14, 1.0, %v6982_v22 }
 0x33d   : > { %v5344_v45 = vpop.xlane.xlu1 %2445  ;;  %v1047_v46 = vpop.permute.xlu0 %1046  ;;  %v2752_v31 = vadd.f32 %v2989_v54, %v2384_v50  ;;  %v7010_v54 = vld [vmem:[#allocation80_spill] sm:$0xff]  ;;  %v2990_v25 = vsel %vm6664_vm13, 1.0, %v6982_v22 }
 0x33e   : > { %1831 = vadd.xlane.f32.xlu0 %v7005_v24  ;;  %v1430_v24 = vsel %vm1398_vm4, %v4602_v59, 0.0  ;;  %7008 = vst [vmem:[#allocation85_spill] sm:$0xff] %v5344_v45  ;;  %vm6665_vm4 = vcmp.lt.f32.partialorder %v4938_v14, 3e+38  ;;  %v1089_v61 = vsub.f32 %v1047_v46, %v7009_v55  ;;  %v1090_v50 = vsub.f32 %v1047_v46, %v7010_v54 }
 0x33f   : > { %v2788_v30 = vadd.f32 %v2787_v39, %v2752_v31  ;;  %v1465_v58 = vadd.f32 %v1430_v24, %v1429_v29  ;;  %v2385_v23 = vadd.f32 %v2974_v51, %v2017_v7  ;;  %vm6668_vm10 = vcmp.lt.f32.partialorder %v5344_v45, 3e+38  ;;  %v7013_v24 = vld [vmem:[#allocation78_spill] sm:$0xff] }
 0x340   : > { %v1121_v20 = vand.u32 2147483647, %v1089_v61  ;;  %v1122_v40 = vand.u32 2147483647, %v1090_v50  ;;  %v2386_v49 = vadd.f32 %v2975_v28, %v2018_v57  ;;  %v2976_v56 = vsel %vm6665_vm4, 1.0, %v6982_v22  ;;  %v7016_v57 = vld [vmem:[#allocation79_spill] sm:$0xff] }
 0x341   : > { %v5362_v0 = vpop.xlane.xlu1 %2448  ;;  %v2753_v31 = vadd.f32 %v2990_v25, %v2385_v23  ;;  %v2991_v46 = vsel %vm6668_vm10, 1.0, %v6982_v22  ;;  %v7014_v25 = vld [vmem:[#allocation91_spill] sm:$0xff] }
 0x342   : > { %2558 = vadd.xlane.f32.xlu0 %v2557_v11  ;;  %v2019_v11 = vadd.f32 %v2960_v41, %v2944_v2  ;;  %7011 = vst [vmem:[#allocation86_spill] sm:$0xff] %v5362_v0  ;;  %vm2505_vm14 = vcmp.eq.f32.partialorder %v4947_v35, %v5362_v0  ;;  %vm2506_vm13 = vcmp.eq.f32.partialorder %v4950_v17, %v5362_v0  ;;  %v5382_v35 = vpop.eup %3059  ;;  %v1535_v17 = vmul.f32 1.442695, %v5165_v16 }
 0x343   : > { %v5375_v61 = vadd.f32 %v1121_v20, %v5144_v48  ;;  %v5378_v2 = vadd.f32 %v1122_v40, %v5147_v60  ;;  %v2537_v39 = vsel %vm2505_vm14, %v4325_v13, 0.0  ;;  %v2538_v29 = vsel %vm2506_vm13, %v4327_v12, 0.0  ;;  %7012 = vst [vmem:[#allocation100_spill] sm:$0xff] %v5382_v35  ;;  %v7020_v40 = vld [vmem:[#allocation124_spill] sm:$0xff] }
 0x344   : > { %v1239_v41 = vsub.f32 %v7014_v25, %v7013_v24  ;;  %v5387_v51 = vadd.f32 %v2538_v29, %v2537_v39  ;;  %v2789_v7 = vadd.f32 %v2788_v30, %v2753_v31  ;;  %v1240_v48 = vsub.f32 %v7014_v25, %v7016_v57 }
 0x345   : > { %v1011_v28 = vpop.permute.xlu1 %1010  ;;  %v2754_v60 = vadd.f32 %v2991_v46, %v2386_v49  ;;  %v2387_v50 = vadd.f32 %v2976_v56, %v2019_v11  ;;  %vm6667_vm14 = vcmp.lt.f32.partialorder %v5362_v0, 3e+38  ;;  %v5398_v16 = vsel %vm6666_vm3, 1.0, %v6982_v22  ;;  %v7018_v56 = vld [vmem:[#allocation52_spill] sm:$0xff]  ;;  %v7019_v11 = vld [vmem:[#allocation59_spill] sm:$0xff] }
 0x346   : > { %1466 = vadd.xlane.f32.xlu0 %v1465_v58  ;;  %7015 = vst [vmem:[#allocation51_spill] sm:$0xff] %v5387_v51  ;;  %v1071_v13 = vsub.f32 %v1011_v28, %v7009_v55  ;;  %v1072_v12 = vsub.f32 %v1011_v28, %v7010_v54  ;;  %v7017_v58 = vld [vmem:[#allocation132_spill] sm:$0xff]  ;;  %v2992_v30 = vsel %vm6667_vm14, 1.0, %v6982_v22  ;;  %vm6670_vm13 = vcmp.lt.f32.partialorder %v7018_v56, 3e+38  ;;  %v7033_v51 = vld [vmem:[#allocation45_spill] sm:$0xff] }
 0x347   : > { %v2790_v23 = vadd.f32 %v2789_v7, %v2754_v60  ;;  %v2755_v20 = vadd.f32 %v2992_v30, %v2387_v50  ;;  %vm6669_vm4 = vcmp.lt.f32.partialorder %v7019_v11, 3e+38  ;;  %v1247_v49 = vsub.f32 %v7020_v40, %v7013_v24 }
 0x348   : > { %v1248_v31 = vsub.f32 %v7020_v40, %v7016_v57  ;;  %v1103_v46 = vand.u32 2147483647, %v1071_v13  ;;  %v1104_v39 = vand.u32 2147483647, %v1072_v12  ;;  %3061 = vpow2.f32 %v1535_v17 }
 0x349   : > { %v1271_v29 = vand.u32 2147483647, %v1239_v41  ;;  %v1272_v25 = vand.u32 2147483647, %v1240_v48  ;;  %v5409_v28 = vpop.permute.xlu1 %1018  ;;  %vm2499_vm3 = vcmp.eq.f32.partialorder %v4870_v9, %v5273_v38  ;;  %vm2500_vm14 = vcmp.eq.f32.partialorder %v4876_v26, %v5273_v38  ;;  %v7021_v9 = vld [vmem:[#allocation65_spill] sm:$0xff] }
 0x34a   : > { %2199 = vadd.xlane.f32.xlu0 %v7017_v58  ;;  %v5411_v58 = vadd.f32 %v2790_v23, %v2755_v20  ;;  %v1135_v7 = vadd.f32 %v1103_v46, %v5071_v10  ;;  %v1136_v60 = vadd.f32 %v1104_v39, %v5076_v27  ;;  %v1869_v50 = vmax.f32 %v6979_v62, 0.0  ;;  %v7022_v27 = vld [vmem:[#allocation125_spill] sm:$0xff]  ;;  %v7023_v46 = vld [vmem:[#allocation151_spill] sm:$0xff] }
 0x34b   : > { %v5423_v17 = vsel %vm6670_vm13, 1.0, %v6982_v22  ;;  %v5428_v41 = vsel %vm6669_vm4, 1.0, %v6982_v22  ;;  %vm6681_vm10 = vcmp.lt.f32.partialorder %v7021_v9, 3e+38  ;;  %v1279_v48 = vand.u32 2147483647, %v1247_v49 }
 0x34c   : > { %v1280_v26 = vand.u32 2147483647, %v1248_v31  ;;  %v1303_v13 = vadd.f32 %v1271_v29, %v1135_v7  ;;  %v1304_v10 = vadd.f32 %v1272_v25, %v1136_v60  ;;  %v1249_v12 = vsub.f32 %v7022_v27, %v7013_v24  ;;  %v7026_v7 = vld [vmem:[#allocation67_spill] sm:$0xff] }
 0x34d   : > { %v1250_v30 = vsub.f32 %v7022_v27, %v7016_v57  ;;  %v1027_v23 = vpop.permute.xlu1 %1026  ;;  %v2531_v20 = vsel %vm2499_vm3, %v4424_v34, 0.0  ;;  %v2532_v40 = vsel %vm2500_vm14, %v4426_v3, 0.0  ;;  %vm2503_vm4 = vcmp.eq.f32.partialorder %v4930_v5, %v5344_v45  ;;  %v7028_v5 = vld [vmem:[#allocation68_spill] sm:$0xff]  ;;  %v7032_v62 = vld [vmem:[#allocation43_spill] sm:$0xff] }
 0x34e   : > { %vm2504_vm13 = vcmp.eq.f32.partialorder %v7023_v46, %v5344_v45  ;;  %v1079_v49 = vsub.f32 %v1027_v23, %v7009_v55  ;;  %v1080_v31 = vsub.f32 %v1027_v23, %v7010_v54  ;;  %v1431_v29 = vsel %vm1399_vm0, %v1303_v13, 0.0 }
 0x34f   : > { %v1432_v34 = vsel %vm1400_vm12, %v1304_v10, 0.0  ;;  %vm7027_vm3 = vcmp.eq.f32.partialorder %v7026_v7, %v6999_v4  ;;  %vm7029_vm14 = vcmp.eq.f32.partialorder %v7028_v5, %v6999_v4  ;;  %v2167_v39 = vsel %vm2135_vm2, %v1303_v13, 0.0 }
 0x350   : > { %v1799_v3 = vsel %vm7027_vm3, %v1303_v13, 0.0  ;;  %v1800_v60 = vsel %vm7029_vm14, %v1304_v10, 0.0  ;;  %v1111_v27 = vand.u32 2147483647, %v1079_v49  ;;  %v1112_v46 = vand.u32 2147483647, %v1080_v31 }
 0x351   : > { %v1468_v0 = vadd.f32 %v1432_v34, %v1431_v29  ;;  %v1836_v23 = vadd.f32 %v1800_v60, %v1799_v3  ;;  %v1031_v14 = vpop.permute.xlu1 %1030  ;;  %v2168_v25 = vsel %vm2136_vm11, %v1304_v10, 0.0  ;;  %v2535_v47 = vsel %vm2503_vm4, %v1303_v13, 0.0  ;;  %v7057_v3 = vld [vmem:[#allocation127_spill] sm:$0xff] }
 0x352   : > { %v2536_v7 = vsel %vm2504_vm13, %v1304_v10, 0.0  ;;  %v1143_v35 = vadd.f32 %v1111_v27, %v7032_v62  ;;  %v1144_v5 = vadd.f32 %v1112_v46, %v7033_v51  ;;  %v1081_v49 = vsub.f32 %v1031_v14, %v7009_v55  ;;  %v7036_v46 = vld [vmem:[#allocation145_spill] sm:$0xff] }
 0x353   : > { %v1082_v31 = vsub.f32 %v1031_v14, %v7010_v54  ;;  %1469 = vadd.xlane.f32.xlu0 %v1468_v0  ;;  %v5465_v29 = vmul.f32 -0.25, %v1869_v50  ;;  %1837 = vadd.xlane.f32.xlu1 %v1836_v23  ;;  %v2204_v45 = vadd.f32 %v2168_v25, %v2167_v39  ;;  %v5467_v34 = vadd.f32 %v2536_v7, %v2535_v47  ;;  %v7035_v47 = vld [vmem:[#allocation144_spill] sm:$0xff]  ;;  %v7039_v39 = vld [vmem:[#allocation5_spill] sm:$0xff]  ;;  %v7044_v25 = vld [vmem:[#allocation54_spill] sm:$0xff] }
 0x354   : > { %v5472_v38 = vsel %vm6681_vm10, 1.0, %v6982_v22  ;;  %v1311_v13 = vadd.f32 %v1279_v48, %v1143_v35  ;;  %v1312_v62 = vadd.f32 %v1280_v26, %v1144_v5  ;;  %v1113_v10 = vand.u32 2147483647, %v1081_v49  ;;  %v7037_v23 = vld [vmem:[#allocation44_spill] sm:$0xff]  ;;  %v7038_v26 = vld [vmem:[#allocation150_spill] sm:$0xff]  ;;  %v7048_v49 = vld [vmem:[#allocation13_spill] sm:$0xff] }
 0x355   : > { %v1114_v51 = vand.u32 2147483647, %v1082_v31  ;;  %v1281_v60 = vand.u32 2147483647, %v1249_v12  ;;  %v1282_v14 = vand.u32 2147483647, %v1250_v30  ;;  %v5475_v0 = vpop.permute.xlu1 %1042  ;;  %v2566_v50 = vadd.f32 %v2532_v40, %v2531_v20  ;;  %v5477_v27 = vpop.eup %3061 }
 0x356   : > { %7034 = vst [vmem:[#allocation26_spill] sm:$0xff] %v5477_v27  ;;  %vm2501_vm12 = vcmp.eq.f32.partialorder %v7035_v47, %v5307_v21  ;;  %vm2502_vm0 = vcmp.eq.f32.partialorder %v7036_v46, %v5307_v21  ;;  %v1145_v35 = vadd.f32 %v1113_v10, %v7037_v23  ;;  %vm1380_vm11 = vcmp.lt.f32.partialorder %v7039_v39, 3e+38  ;;  %v7040_v12 = vld [vmem:[#allocation92_spill] sm:$0xff]  ;;  %v7041_v30 = vld [vmem:[#allocation66_spill] sm:$0xff]  ;;  %v7042_v20 = vld [vmem:[#allocation53_spill] sm:$0xff] }
 0x357   : > { %v1146_v48 = vadd.f32 %v1114_v51, %v5133_v37  ;;  %2202 = vadd.xlane.f32.xlu0 %v7038_v26  ;;  %vm6719_vm2 = vcmp.lt.f32.partialorder %v7040_v12, 3e+38  ;;  %vm6698_vm4 = vcmp.lt.f32.partialorder %v7041_v30, 3e+38  ;;  %2567 = vadd.xlane.f32.xlu1 %v2566_v50  ;;  %vm7043_vm13 = vcmp.eq.f32.partialorder %v7042_v20, %v7040_v12  ;;  %v7046_v5 = vld [vmem:[#allocation16_spill] sm:$0xff]  ;;  %v7050_v10 = vld [vmem:[#allocation98_spill] sm:$0xff] }
 0x358   : > { %v1807_v40 = vsel %vm7043_vm13, %v1311_v13, 0.0  ;;  %vm7045_vm3 = vcmp.eq.f32.partialorder %v7044_v25, %v7040_v12  ;;  %vm7047_vm14 = vcmp.eq.f32.partialorder %v7046_v5, %v7018_v56  ;;  %vm7049_vm10 = vcmp.eq.f32.partialorder %v7048_v49, %v7018_v56  ;;  %v7051_v23 = vld [vmem:[#allocation99_spill] sm:$0xff]  ;;  %v7058_v47 = vld [vmem:[#allocation94_spill] sm:$0xff]  ;;  %v7062_v46 = vld [vmem:[#allocation69_spill] sm:$0xff] }
 0x359   : > { %v1808_v7 = vsel %vm7045_vm3, %v1312_v62, 0.0  ;;  %v1439_v37 = vsel %vm7047_vm14, %v1311_v13, 0.0  ;;  %v1440_v31 = vsel %vm7049_vm10, %v1312_v62, 0.0  ;;  %vm1749_vm9 = vcmp.lt.f32.partialorder %v7050_v10, 3e+38  ;;  %v7052_v26 = vld [vmem:[#allocation75_spill] sm:$0xff]  ;;  %v5504_v20 = vpop.permute.xlu1 %1050 }
 0x35a   : > { %v1313_v51 = vadd.f32 %v1281_v60, %v1145_v35  ;;  %v1314_v50 = vadd.f32 %v1282_v14, %v1146_v48  ;;  %vm6709_vm7 = vcmp.lt.f32.partialorder %v7051_v23, 3e+38  ;;  %vm6699_vm13 = vcmp.lt.f32.partialorder %v7052_v26, 3e+38  ;;  %v7054_v14 = vld [vmem:[#allocation138_spill] sm:$0xff]  ;;  %v7055_v35 = vld [vmem:[#allocation8_spill] sm:$0xff] }
 0x35b   : > { %v2533_v25 = vsel %vm2501_vm12, %v4564_v42, 0.0  ;;  %v2534_v5 = vsel %vm2502_vm0, %v4602_v59, 0.0  ;;  %v5514_v49 = vadd.f32 %v1808_v7, %v1807_v40  ;;  %v5516_v60 = vadd.f32 %v1440_v31, %v1439_v37  ;;  %1472 = vadd.xlane.f32.xlu0 %v7055_v35  ;;  %v7061_v59 = vld [vmem:[#allocation82_spill] sm:$0xff]  ;;  %v7068_v48 = vld [vmem:[#allocation23_spill] sm:$0xff] }
 0x35c   : > { %vm2511_vm10 = vcmp.eq.f32.partialorder %v7054_v14, %v5242_v52  ;;  %v2175_v56 = vsel %vm2143_vm1, %v1311_v13, 0.0  ;;  %vm7059_vm12 = vcmp.eq.f32.partialorder %v7058_v47, %v7057_v3  ;;  %vm1748_vm3 = vcmp.lt.f32.partialorder %v7060_v19, 3e+38  ;;  %1840 = vadd.xlane.f32.xlu1 %v7061_v59  ;;  %v7064_v7 = vld [vmem:[#allocation70_spill] sm:$0xff]  ;;  %v7070_v21 = vld [vmem:[#allocation139_spill] sm:$0xff] }
 0x35d   : > { %7053 = vst [vmem:[#allocation12_spill] sm:$0xff] %v5516_v60  ;;  %v2176_v42 = vsel %vm7059_vm12, %v1312_v62, 0.0  ;;  %vm7063_vm0 = vcmp.eq.f32.partialorder %v7062_v46, %v6995_v63  ;;  %vm7065_vm14 = vcmp.eq.f32.partialorder %v7064_v7, %v6995_v63  ;;  %v7066_v31 = vld [vmem:[#allocation22_spill] sm:$0xff]  ;;  %vm7069_vm1 = vcmp.eq.f32.partialorder %v7068_v48, %v6992_v53  ;;  %v1215_v27 = vpop.permute.xlu1 %1214  ;;  %v7074_v63 = vld [vmem:[#allocation109_spill] sm:$0xff] }
 0x35e   : > { %v1809_v40 = vsel %vm7063_vm0, %v1313_v51, 0.0  ;;  %v1810_v37 = vsel %vm7065_vm14, %v1314_v50, 0.0  ;;  %vm7067_vm6 = vcmp.eq.f32.partialorder %v7066_v31, %v6992_v53  ;;  %v1442_v47 = vsel %vm7069_vm1, %v1314_v50, 0.0  ;;  %v7076_v53 = vld [vmem:[#allocation142_spill] sm:$0xff] }
 0x35f   : > { %v1441_v35 = vsel %vm7067_vm6, %v1313_v51, 0.0  ;;  %vm2512_vm12 = vcmp.eq.f32.partialorder %v7070_v21, %v5242_v52  ;;  %v2569_v59 = vadd.f32 %v2534_v5, %v2533_v25  ;;  %v5543_v4 = vadd.f32 %v1810_v37, %v1809_v40  ;;  %v7077_v21 = vld [vmem:[#allocation143_spill] sm:$0xff]  ;;  %2205 = vadd.xlane.f32.xlu0 %v2204_v45 }
 0x360   : > { %v5545_v46 = vadd.f32 %v1442_v47, %v1441_v35  ;;  %v5547_v60 = vadd.f32 %v2176_v42, %v2175_v56  ;;  %v2543_v7 = vsel %vm2511_vm10, %v1311_v13, 0.0  ;;  %v2544_v31 = vsel %vm2512_vm12, %v1312_v62, 0.0  ;;  %v7079_v13 = vld [vmem:[#allocation110_spill] sm:$0xff] }
 0x361   : > { %7071 = vst [vmem:[#allocation80_spill] sm:$0xff] %v5543_v4  ;;  %vm7075_vm6 = vcmp.eq.f32.partialorder %v7074_v63, %v4838_v1  ;;  %vm2513_vm0 = vcmp.eq.f32.partialorder %v7076_v53, %v5257_v36  ;;  %vm2514_vm14 = vcmp.eq.f32.partialorder %v7077_v21, %v5257_v36  ;;  %v1257_v25 = vsub.f32 %v1215_v27, %v7013_v24  ;;  %v7116_v4 = vld [vmem:[#allocation47_spill] sm:$0xff] }
 0x362   : > { %7072 = vst [vmem:[#allocation78_spill] sm:$0xff] %v5545_v46  ;;  %7073 = vst [vmem:[#allocation91_spill] sm:$0xff] %v5547_v60  ;;  %v2177_v48 = vsel %vm7075_vm6, %v1313_v51, 0.0  ;;  %v1258_v56 = vsub.f32 %v1215_v27, %v7016_v57  ;;  %2570 = vadd.xlane.f32.xlu1 %v2569_v59  ;;  %v5561_v5 = vadd.f32 %v2544_v31, %v2543_v7  ;;  %v2545_v63 = vsel %vm2513_vm0, %v1313_v51, 0.0  ;;  %v7115_v46 = vld [vmem:[#allocation18_spill] sm:$0xff] }
 0x363   : > { %vm7080_vm10 = vcmp.eq.f32.partialorder %v7079_v13, %v4838_v1  ;;  %v2546_v14 = vsel %vm2514_vm14, %v1314_v50, 0.0  ;;  %v1289_v42 = vand.u32 2147483647, %v1257_v25  ;;  %v1901_v35 = vmul.f32 1.442695, %v5465_v29  ;;  %v7088_v25 = vld [vmem:[#allocation81_spill] sm:$0xff] }
 0x364   : > { %7078 = vst [vmem:[#allocation79_spill] sm:$0xff] %v5561_v5  ;;  %v2178_v62 = vsel %vm7080_vm10, %v1314_v50, 0.0  ;;  %v1290_v40 = vand.u32 2147483647, %v1258_v56  ;;  %v5568_v37 = vadd.f32 %v2546_v14, %v2545_v63  ;;  %v2945_v45 = vsel %vm1380_vm11, 1.0, %v6982_v22  ;;  %v7090_v13 = vld [vmem:[#allocation84_spill] sm:$0xff] }
 0x365   : > { %v5566_v53 = vadd.f32 %v2178_v62, %v2177_v48  ;;  %v2963_v27 = vsel %vm6719_vm2, 1.0, %v6982_v22  ;;  %v5580_v51 = vsel %vm6698_vm4, 1.0, %v6982_v22  ;;  %v7083_v50 = vmax.f32 %v4460_v44, 0.0  ;;  %v7086_v48 = vld [vmem:[#allocation155_spill] sm:$0xff]  ;;  %v7093_v14 = vld [vmem:[#allocation77_spill] sm:$0xff] }
 0x366   : > { %7082 = vst [vmem:[#allocation59_spill] sm:$0xff] %v5568_v37  ;;  %v5585_v59 = vadd.f32 %v1289_v42, %v5375_v61  ;;  %v5588_v29 = vadd.f32 %v1290_v40, %v5378_v2  ;;  %v2962_v7 = vsel %vm1749_vm9, 1.0, %v6982_v22  ;;  %v2961_v31 = vsel %vm1748_vm3, 1.0, %v6982_v22  ;;  %v7087_v2 = vld [vmem:[#allocation83_spill] sm:$0xff]  ;;  %v7095_v40 = vld [vmem:[#allocation38_spill] sm:$0xff] }
 0x367   : > { %7081 = vst [vmem:[#allocation132_spill] sm:$0xff] %v5566_v53  ;;  %v1886_v47 = vmul.f32 -0.25, %v7083_v50  ;;  %vm2116_vm1 = vcmp.lt.f32.partialorder %v7086_v48, 3e+38  ;;  %v2965_v21 = vsel %vm6709_vm7, 1.0, %v6982_v22  ;;  %v2966_v61 = vsel %vm6699_vm13, 1.0, %v6982_v22 }
 0x368   : > { %7084 = vst [vmem:[#allocation124_spill] sm:$0xff] %v5585_v59  ;;  %7085 = vst [vmem:[#allocation125_spill] sm:$0xff] %v5588_v29  ;;  %vm7089_vm12 = vcmp.eq.f32.partialorder %v7087_v2, %v7088_v25  ;;  %vm7091_vm6 = vcmp.eq.f32.partialorder %v7090_v13, %v7088_v25  ;;  %v7092_v63 = vld [vmem:[#allocation39_spill] sm:$0xff]  ;;  %vm7096_vm14 = vcmp.eq.f32.partialorder %v7095_v40, %v7093_v14  ;;  %3063 = vpow2.f32 %v1901_v35  ;;  %v7104_v35 = vld [vmem:[#allocation133_spill] sm:$0xff] }
 0x369   : > { %v1817_v56 = vsel %vm7089_vm12, %v5585_v59, 0.0  ;;  %v1818_v62 = vsel %vm7091_vm6, %v5588_v29, 0.0  ;;  %vm7094_vm0 = vcmp.eq.f32.partialorder %v7092_v63, %v7093_v14  ;;  %v1450_v50 = vsel %vm7096_vm14, %v5588_v29, 0.0  ;;  %v7101_v63 = vld [vmem:[#allocation126_spill] sm:$0xff] }
 0x36a   : > { %v1449_v42 = vsel %vm7094_vm0, %v5585_v59, 0.0  ;;  %v5619_v36 = vadd.f32 %v1818_v62, %v1817_v56  ;;  %vm7099_vm10 = vcmp.eq.f32.partialorder %v4666_v33, %v5139_v32  ;;  %vm7100_vm12 = vcmp.eq.f32.partialorder %v4672_v15, %v5139_v32 }
 0x36b   : > { %v5621_v1 = vadd.f32 %v1450_v50, %v1449_v42  ;;  %v2185_v2 = vsel %vm7099_vm10, %v5585_v59, 0.0  ;;  %v2186_v13 = vsel %vm7100_vm12, %v5588_v29, 0.0  ;;  %v1077_v12 = vsub.f32 %v7101_v63, %v7009_v55  ;;  %v7103_v50 = vld [vmem:[#allocation74_spill] sm:$0xff] }
 0x36c   : > { %7097 = vst [vmem:[#allocation151_spill] sm:$0xff] %v5619_v36  ;;  %v5633_v40 = vadd.f32 %v2186_v13, %v2185_v2  ;;  %v2022_v56 = vadd.f32 %v2963_v27, %v5423_v17  ;;  %v5636_v62 = vmul.f32 1.442695, %v1886_v47  ;;  %v2021_v42 = vadd.f32 %v2962_v7, %v5398_v16  ;;  %v7105_v27 = vld [vmem:[#allocation128_spill] sm:$0xff]  ;;  %v7106_v16 = vld [vmem:[#allocation154_spill] sm:$0xff]  ;;  %v7109_v36 = vld [vmem:[#allocation131_spill] sm:$0xff] }
 0x36d   : > { %7098 = vst [vmem:[#allocation30_spill] sm:$0xff] %v5621_v1  ;;  %v2024_v33 = vadd.f32 %v2965_v21, %v5428_v41  ;;  %vm6700_vm6 = vcmp.lt.f32.partialorder %v7103_v50, 3e+38  ;;  %v2020_v1 = vadd.f32 %v2961_v31, %v2945_v45  ;;  %v2977_v15 = vsel %vm2116_vm1, 1.0, %v6982_v22  ;;  %v7107_v31 = vld [vmem:[#allocation167_spill] sm:$0xff] }
 0x36e   : > { %7102 = vst [vmem:[#allocation28_spill] sm:$0xff] %v5633_v40  ;;  %vm6721_vm0 = vcmp.lt.f32.partialorder %v7104_v35, 3e+38  ;;  %v2025_v2 = vadd.f32 %v2966_v61, %v5472_v38  ;;  %v1078_v17 = vsub.f32 %v7101_v63, %v7010_v54  ;;  %v1083_v47 = vsub.f32 %v7105_v27, %v7009_v55  ;;  %v5654_v7 = vpop.xlane.xlu0 %2451  ;;  %v7108_v63 = vld [vmem:[#allocation137_spill] sm:$0xff] }
 0x36f   : > { %vm6718_vm14 = vcmp.lt.f32.partialorder %v7057_v3, 3e+38  ;;  %vm6708_vm10 = vcmp.lt.f32.partialorder %v7106_v16, 3e+38  ;;  %v1109_v41 = vand.u32 2147483647, %v1077_v12  ;;  %v1084_v45 = vsub.f32 %v7105_v27, %v7010_v54 }
 0x370   : > { %vm6720_vm12 = vcmp.lt.f32.partialorder %v7107_v31, 3e+38  ;;  %v5660_v38 = vsel %vm6700_vm6, 1.0, %v6982_v22  ;;  %v2388_v21 = vadd.f32 %v2977_v15, %v2020_v1  ;;  %vm2484_vm4 = vcmp.lt.f32.partialorder %v5654_v7, 3e+38 }
 0x371   : > { %v2978_v61 = vsel %vm6721_vm0, 1.0, %v6982_v22  ;;  %vm6717_vm13 = vcmp.lt.f32.partialorder %v5242_v52, 3e+38  ;;  %v2993_v12 = vsel %vm2484_vm4, 1.0, %v6982_v22  ;;  %v2979_v13 = vsel %vm6718_vm14, 1.0, %v6982_v22 }
 0x372   : > { %vm6716_vm6 = vcmp.lt.f32.partialorder %v7108_v63, 3e+38  ;;  %v2982_v1 = vsel %vm6708_vm10, 1.0, %v6982_v22  ;;  %v1110_v15 = vand.u32 2147483647, %v1078_v17  ;;  %v2756_v40 = vadd.f32 %v2993_v12, %v2388_v21  ;;  %v5682_v14 = vpop.xlane.xlu0 %2466 }
 0x373   : > { %v1115_v27 = vand.u32 2147483647, %v1083_v47  ;;  %v2994_v29 = vsel %vm6720_vm12, 1.0, %v6982_v22  ;;  %v1116_v59 = vand.u32 2147483647, %v1084_v45  ;;  %v1085_v32 = vsub.f32 %v7109_v36, %v7009_v55  ;;  %7110 = vst [vmem:[#allocation67_spill] sm:$0xff] %v5682_v14 }
 0x374   : > { %v2389_v3 = vadd.f32 %v2978_v61, %v2021_v42  ;;  %v2995_v25 = vsel %vm6717_vm13, 1.0, %v6982_v22  ;;  %v1086_v17 = vsub.f32 %v7109_v36, %v7010_v54  ;;  %v2390_v47 = vadd.f32 %v2979_v13, %v2022_v56  ;;  %v7112_v13 = vld [vmem:[#allocation40_spill] sm:$0xff] }
 0x375   : > { %v2981_v21 = vsel %vm6716_vm6, 1.0, %v6982_v22  ;;  %v2393_v12 = vadd.f32 %v2982_v1, %v2025_v2  ;;  %v2792_v45 = vadd.f32 %v5411_v58, %v2756_v40  ;;  %vm6715_vm10 = vcmp.lt.f32.partialorder %v5309_v43, 3e+38  ;;  %v5706_v40 = vpop.eup %3063 }
 0x376   : > { %v2757_v37 = vadd.f32 %v2994_v29, %v2389_v3  ;;  %vm6714_vm7 = vcmp.lt.f32.partialorder %v5682_v14, 3e+38  ;;  %v1075_v42 = vsub.f32 %v5409_v28, %v7009_v55  ;;  %v1076_v61 = vsub.f32 %v5409_v28, %v7010_v54  ;;  %7111 = vst [vmem:[#allocation68_spill] sm:$0xff] %v5706_v40 }
 0x377   : > { %v2758_v36 = vadd.f32 %v2995_v25, %v2390_v47  ;;  %v2998_v56 = vsel %vm6714_vm7, 1.0, %v6982_v22  ;;  %v1087_v2 = vsub.f32 %v5475_v0, %v7009_v55  ;;  %v1088_v58 = vsub.f32 %v5475_v0, %v7010_v54 }
 0x378   : > { %v2793_v3 = vadd.f32 %v2792_v45, %v2757_v37  ;;  %v2761_v29 = vadd.f32 %v2998_v56, %v2393_v12  ;;  %v1141_v1 = vadd.f32 %v1109_v41, %v7112_v13  ;;  %v1117_v52 = vand.u32 2147483647, %v1085_v32  ;;  %v7113_v37 = vld [vmem:[#allocation42_spill] sm:$0xff]  ;;  %v7114_v45 = vld [vmem:[#allocation21_spill] sm:$0xff] }
 0x379   : > { %v1118_v53 = vand.u32 2147483647, %v1086_v17  ;;  %v2997_v28 = vsel %vm6715_vm10, 1.0, %v6982_v22  ;;  %v1091_v25 = vsub.f32 %v5504_v20, %v7009_v55  ;;  %v1092_v47 = vsub.f32 %v5504_v20, %v7010_v54 }
 0x37a   : > { %v2794_v44 = vadd.f32 %v2793_v3, %v2758_v36  ;;  %v2392_v0 = vadd.f32 %v2981_v21, %v2024_v33  ;;  %v1142_v12 = vadd.f32 %v1110_v15, %v7113_v37  ;;  %v5718_v56 = vadd.f32 %v1115_v27, %v7114_v45  ;;  %v1187_v5 = vpop.permute.xlu0 %1186  ;;  %v7117_v33 = vld [vmem:[#allocation49_spill] sm:$0xff] }
 0x37b   : > { %v1107_v41 = vand.u32 2147483647, %v1075_v42  ;;  %v1108_v32 = vand.u32 2147483647, %v1076_v61  ;;  %v1119_v17 = vand.u32 2147483647, %v1087_v2  ;;  %v1148_v55 = vadd.f32 %v1116_v59, %v7115_v46 }
 0x37c   : > { %v1120_v13 = vand.u32 2147483647, %v1088_v58  ;;  %v2795_v40 = vadd.f32 %v2794_v44, %v5350_v8  ;;  %v2760_v60 = vadd.f32 %v2997_v28, %v2392_v0  ;;  %v5723_v22 = vadd.f32 %v1117_v52, %v7116_v4  ;;  %v7118_v61 = vld [vmem:[#allocation41_spill] sm:$0xff]  ;;  %v7119_v2 = vld [vmem:[#allocation7_spill] sm:$0xff]  ;;  %v7120_v52 = vld [vmem:[#allocation46_spill] sm:$0xff] }
 0x37d   : > { %v1243_v54 = vsub.f32 %v1187_v5, %v7013_v24  ;;  %v1244_v20 = vsub.f32 %v1187_v5, %v7016_v57  ;;  %v5728_v15 = vadd.f32 %v1118_v53, %v7117_v33  ;;  %v1123_v27 = vand.u32 2147483647, %v1091_v25  ;;  %v7121_v59 = vld [vmem:[#allocation19_spill] sm:$0xff]  ;;  %v7123_v37 = vld [vmem:[#allocation165_spill] sm:$0xff] }
 0x37e   : > { %v1124_v21 = vand.u32 2147483647, %v1092_v47  ;;  %v2796_v42 = vadd.f32 %v2795_v40, %v2760_v60  ;;  %v1139_v36 = vadd.f32 %v1107_v41, %v7118_v61  ;;  %v1140_v44 = vadd.f32 %v1108_v32, %v7119_v2  ;;  %v1191_v5 = vpop.permute.xlu0 %1190  ;;  %v7122_v47 = vld [vmem:[#allocation20_spill] sm:$0xff]  ;;  %v7125_v32 = vld [vmem:[#allocation157_spill] sm:$0xff]  ;;  %v7129_v33 = vld [vmem:[#allocation87_spill] sm:$0xff] }
 0x37f   : > { %v1275_v8 = vand.u32 2147483647, %v1243_v54  ;;  %v1276_v58 = vand.u32 2147483647, %v1244_v20  ;;  %v2237_v46 = vmax.f32 %v4724_v18, 0.0  ;;  %v5734_v4 = vadd.f32 %v1119_v17, %v7120_v52  ;;  %v7124_v41 = vld [vmem:[#allocation156_spill] sm:$0xff] }
 0x380   : > { %v5737_v3 = vadd.f32 %v1120_v13, %v7121_v59  ;;  %v5739_v53 = vadd.f32 %v2796_v42, %v2761_v29  ;;  %v1245_v60 = vsub.f32 %v1191_v5, %v7013_v24  ;;  %v1246_v40 = vsub.f32 %v1191_v5, %v7016_v57  ;;  %v7126_v29 = vld [vmem:[#allocation134_spill] sm:$0xff]  ;;  %v7127_v54 = vld [vmem:[#allocation9_spill] sm:$0xff] }
 0x381   : > { %v1307_v28 = vadd.f32 %v1275_v8, %v1139_v36  ;;  %v1308_v25 = vadd.f32 %v1276_v58, %v1140_v44  ;;  %v5744_v0 = vadd.f32 %v1123_v27, %v7122_v47  ;;  %v5747_v45 = vadd.f32 %v1124_v21, %v7123_v37  ;;  %v7131_v21 = vld [vmem:[#allocation135_spill] sm:$0xff]  ;;  %v7132_v36 = vld [vmem:[#allocation33_spill] sm:$0xff]  ;;  %v7138_v37 = vld [vmem:[#allocation120_spill] sm:$0xff] }
 0x382   : > { %vm2507_vm7 = vcmp.eq.f32.partialorder %v7124_v41, %v5654_v7  ;;  %vm2508_vm10 = vcmp.eq.f32.partialorder %v7125_v32, %v5654_v7  ;;  %vm2509_vm6 = vcmp.eq.f32.partialorder %v7126_v29, %v7107_v31  ;;  %v1277_v17 = vand.u32 2147483647, %v1245_v60  ;;  %v1203_v42 = vpop.permute.xlu0 %1202  ;;  %v7134_v44 = vld [vmem:[#allocation37_spill] sm:$0xff]  ;;  %v7136_v58 = vld [vmem:[#allocation119_spill] sm:$0xff] }
 0x383   : > { %v1278_v13 = vand.u32 2147483647, %v1246_v40  ;;  %vm7128_vm13 = vcmp.eq.f32.partialorder %v7127_v54, %v7060_v19  ;;  %vm7130_vm14 = vcmp.eq.f32.partialorder %v7129_v33, %v7060_v19  ;;  %vm2510_vm2 = vcmp.eq.f32.partialorder %v7131_v21, %v7107_v31  ;;  %v7146_v41 = vld [vmem:[#allocation15_spill] sm:$0xff] }
 0x384   : > { %v1803_v20 = vsel %vm7128_vm13, %v1307_v28, 0.0  ;;  %v1804_v27 = vsel %vm7130_vm14, %v1308_v25, 0.0  ;;  %vm7133_vm12 = vcmp.eq.f32.partialorder %v7132_v36, %v7039_v39  ;;  %vm7135_vm0 = vcmp.eq.f32.partialorder %v7134_v44, %v7039_v39  ;;  %v7148_v44 = vld [vmem:[#allocation147_spill] sm:$0xff] }
 0x385   : > { %v1842_v61 = vadd.f32 %v1804_v27, %v1803_v20  ;;  %v1435_v2 = vsel %vm7133_vm12, %v1307_v28, 0.0  ;;  %v1436_v8 = vsel %vm7135_vm0, %v1308_v25, 0.0  ;;  %vm7137_vm13 = vcmp.eq.f32.partialorder %v7136_v58, %v7086_v48  ;;  %v7142_v27 = vld [vmem:[#allocation61_spill] sm:$0xff] }
 0x386   : > { %v2171_v52 = vsel %vm7137_vm13, %v1307_v28, 0.0  ;;  %v1309_v59 = vadd.f32 %v1277_v17, %v1141_v1  ;;  %v1310_v5 = vadd.f32 %v1278_v13, %v1142_v12  ;;  %v1251_v60 = vsub.f32 %v1203_v42, %v7013_v24  ;;  %v7140_v17 = vld [vmem:[#allocation60_spill] sm:$0xff] }
 0x387   : > { %v1252_v40 = vsub.f32 %v1203_v42, %v7016_v57  ;;  %1843 = vadd.xlane.f32.xlu1 %v1842_v61  ;;  %v1474_v47 = vadd.f32 %v1436_v8, %v1435_v2  ;;  %vm7139_vm14 = vcmp.eq.f32.partialorder %v7138_v37, %v7086_v48  ;;  %v2539_v20 = vsel %vm2507_vm7, %v1307_v28, 0.0  ;;  %v1207_v61 = vpop.permute.xlu0 %1206  ;;  %v7144_v2 = vld [vmem:[#allocation14_spill] sm:$0xff] }
 0x388   : > { %v2172_v54 = vsel %vm7139_vm14, %v1308_v25, 0.0  ;;  %v2540_v33 = vsel %vm2508_vm10, %v1308_v25, 0.0  ;;  %v1283_v1 = vand.u32 2147483647, %v1251_v60  ;;  %vm7141_vm0 = vcmp.eq.f32.partialorder %v7140_v17, %v7050_v10  ;;  %v7149_v17 = vld [vmem:[#allocation101_spill] sm:$0xff] }
 0x389   : > { %v1284_v12 = vand.u32 2147483647, %v1252_v40  ;;  %v1805_v13 = vsel %vm7141_vm0, %v1309_v59, 0.0  ;;  %vm7143_vm12 = vcmp.eq.f32.partialorder %v7142_v27, %v7050_v10  ;;  %1475 = vadd.xlane.f32.xlu0 %v1474_v47  ;;  %vm7145_vm7 = vcmp.eq.f32.partialorder %v7144_v2, %v7006_v6  ;;  %v7157_v2 = vld [vmem:[#allocation63_spill] sm:$0xff] }
 0x38a   : > { %v1806_v42 = vsel %vm7143_vm12, %v1310_v5, 0.0  ;;  %v1437_v28 = vsel %vm7145_vm7, %v1309_v59, 0.0  ;;  %vm7147_vm10 = vcmp.eq.f32.partialorder %v7146_v41, %v7006_v6  ;;  %v2210_v32 = vadd.f32 %v2172_v54, %v2171_v52  ;;  %v7151_v52 = vld [vmem:[#allocation103_spill] sm:$0xff]  ;;  %v7159_v41 = vld [vmem:[#allocation25_spill] sm:$0xff] }
 0x38b   : > { %v1845_v36 = vadd.f32 %v1806_v42, %v1805_v13  ;;  %v1438_v25 = vsel %vm7147_vm10, %v1310_v5, 0.0  ;;  %vm2515_vm13 = vcmp.eq.f32.partialorder %v7148_v44, %v5309_v43  ;;  %v1315_v8 = vadd.f32 %v1283_v1, %v5718_v56  ;;  %2573 = vadd.xlane.f32.xlu1 %v5467_v34  ;;  %v7153_v56 = vld [vmem:[#allocation148_spill] sm:$0xff]  ;;  %v7155_v42 = vld [vmem:[#allocation17_spill] sm:$0xff] }
 0x38c   : > { %v1316_v58 = vadd.f32 %v1284_v12, %v1148_v55  ;;  %v1253_v60 = vsub.f32 %v1207_v61, %v7013_v24  ;;  %v1254_v40 = vsub.f32 %v1207_v61, %v7016_v57  ;;  %v1477_v47 = vadd.f32 %v1438_v25, %v1437_v28 }
 0x38d   : > { %v5801_v37 = vadd.f32 %v2540_v33, %v2539_v20  ;;  %vm7150_vm14 = vcmp.eq.f32.partialorder %v7149_v17, %v7104_v35  ;;  %vm7152_vm0 = vcmp.eq.f32.partialorder %v7151_v52, %v7104_v35  ;;  %vm2516_vm12 = vcmp.eq.f32.partialorder %v7153_v56, %v5309_v43  ;;  %v7154_v20 = vld [vmem:[#allocation153_spill] sm:$0xff]  ;;  %v1211_v33 = vpop.permute.xlu0 %1210  ;;  %v7161_v17 = vld [vmem:[#allocation24_spill] sm:$0xff] }
 0x38e   : > { %v2173_v13 = vsel %vm7150_vm14, %v1309_v59, 0.0  ;;  %v2174_v54 = vsel %vm7152_vm0, %v1310_v5, 0.0  ;;  %v1285_v55 = vand.u32 2147483647, %v1253_v60  ;;  %v1286_v1 = vand.u32 2147483647, %v1254_v40  ;;  %2208 = vadd.xlane.f32.xlu0 %v7154_v20 }
 0x38f   : > { %v5811_v12 = vadd.f32 %v2174_v54, %v2173_v13  ;;  %v2541_v34 = vsel %vm2509_vm6, %v1309_v59, 0.0  ;;  %v2542_v27 = vsel %vm2510_vm2, %v1310_v5, 0.0  ;;  %vm7156_vm7 = vcmp.eq.f32.partialorder %v7155_v42, %v7051_v23  ;;  %1846 = vadd.xlane.f32.xlu1 %v1845_v36  ;;  %v7163_v52 = vld [vmem:[#allocation104_spill] sm:$0xff] }
 0x390   : > { %v1811_v61 = vsel %vm7156_vm7, %v1315_v8, 0.0  ;;  %vm7158_vm10 = vcmp.eq.f32.partialorder %v7157_v2, %v7051_v23  ;;  %vm7160_vm14 = vcmp.eq.f32.partialorder %v7159_v41, %v7019_v11  ;;  %v1317_v59 = vadd.f32 %v1285_v55, %v5723_v22  ;;  %v7167_v20 = vld [vmem:[#allocation76_spill] sm:$0xff] }
 0x391   : > { %v1812_v28 = vsel %vm7158_vm10, %v1316_v58, 0.0  ;;  %v1443_v29 = vsel %vm7160_vm14, %v1315_v8, 0.0  ;;  %v1318_v25 = vadd.f32 %v1286_v1, %v5728_v15  ;;  %v1255_v60 = vsub.f32 %v1211_v33, %v7013_v24  ;;  %v7165_v1 = vld [vmem:[#allocation11_spill] sm:$0xff] }
 0x392   : > { %v1256_v21 = vsub.f32 %v1211_v33, %v7016_v57  ;;  %v5833_v5 = vadd.f32 %v2542_v27, %v2541_v34  ;;  %v5835_v40 = vadd.f32 %v1812_v28, %v1811_v61  ;;  %vm7162_vm2 = vcmp.eq.f32.partialorder %v7161_v17, %v7019_v11  ;;  %1478 = vadd.xlane.f32.xlu0 %v1477_v47  ;;  %v1219_v34 = vpop.permute.xlu0 %1218  ;;  %v7169_v27 = vld [vmem:[#allocation31_spill] sm:$0xff]  ;;  %v7171_v61 = vld [vmem:[#allocation29_spill] sm:$0xff] }
 0x393   : > { %v1444_v13 = vsel %vm7162_vm2, %v1316_v58, 0.0  ;;  %vm7164_vm6 = vcmp.eq.f32.partialorder %v7163_v52, %v7108_v63  ;;  %v1287_v22 = vand.u32 2147483647, %v1255_v60  ;;  %vm7166_vm0 = vcmp.eq.f32.partialorder %v7165_v1, %v7052_v26  ;;  %v7173_v28 = vld [vmem:[#allocation105_spill] sm:$0xff] }
 0x394   : > { %v2179_v54 = vsel %vm7164_vm6, %v1315_v8, 0.0  ;;  %v1288_v55 = vand.u32 2147483647, %v1256_v21  ;;  %v5843_v15 = vadd.f32 %v1444_v13, %v1443_v29  ;;  %v1813_v36 = vsel %vm7166_vm0, %v1317_v59, 0.0  ;;  %v7175_v17 = vld [vmem:[#allocation149_spill] sm:$0xff]  ;;  %v7176_v13 = vld [vmem:[#allocation51_spill] sm:$0xff] }
 0x395   : > { %vm7168_vm7 = vcmp.eq.f32.partialorder %v7167_v20, %v7052_v26  ;;  %vm7170_vm10 = vcmp.eq.f32.partialorder %v7169_v27, %v7021_v9  ;;  %vm7172_vm14 = vcmp.eq.f32.partialorder %v7171_v61, %v7021_v9  ;;  %vm7174_vm2 = vcmp.eq.f32.partialorder %v7173_v28, %v7108_v63  ;;  %2576 = vadd.xlane.f32.xlu1 %v7176_v13  ;;  %v7183_v27 = vld [vmem:[#allocation32_spill] sm:$0xff] }
 0x396   : > { %v1814_v33 = vsel %vm7168_vm7, %v1318_v25, 0.0  ;;  %v1445_v42 = vsel %vm7170_vm10, %v1317_v59, 0.0  ;;  %v1446_v2 = vsel %vm7172_vm14, %v1318_v25, 0.0  ;;  %v2180_v41 = vsel %vm7174_vm2, %v1316_v58, 0.0  ;;  %2211 = vadd.xlane.f32.xlu0 %v2210_v32 }
 0x397   : > { %v1319_v29 = vadd.f32 %v1287_v22, %v5734_v4  ;;  %v1320_v47 = vadd.f32 %v1288_v55, %v5737_v3  ;;  %v1259_v60 = vsub.f32 %v1219_v34, %v7013_v24  ;;  %v1260_v21 = vsub.f32 %v1219_v34, %v7016_v57  ;;  %v7177_v55 = vld [vmem:[#allocation72_spill] sm:$0xff]  ;;  %v7179_v57 = vld [vmem:[#allocation73_spill] sm:$0xff] }
 0x398   : > { %vm2122_vm6 = vcmp.lt.f32.partialorder %v7175_v17, 3e+38  ;;  %v5866_v52 = vadd.f32 %v1814_v33, %v1813_v36  ;;  %v5868_v1 = vadd.f32 %v1446_v2, %v1445_v42  ;;  %v5870_v20 = vadd.f32 %v2180_v41, %v2179_v54  ;;  %v7181_v33 = vld [vmem:[#allocation35_spill] sm:$0xff]  ;;  %v5894_v2 = vpop.xlane.xlu1 %2469  ;;  %v7186_v41 = vld [vmem:[#allocation158_spill] sm:$0xff] }
 0x399   : > { %v2547_v4 = vsel %vm2515_vm13, %v1315_v8, 0.0  ;;  %v1291_v22 = vand.u32 2147483647, %v1259_v60  ;;  %v1292_v3 = vand.u32 2147483647, %v1260_v21  ;;  %vm7178_vm0 = vcmp.eq.f32.partialorder %v7177_v55, %v7103_v50  ;;  %7185 = vst [vmem:[#allocation111_spill] sm:$0xff] %v5894_v2  ;;  %1849 = vadd.xlane.f32.xlu1 %v5514_v49 }
 0x39a   : > { %v1815_v24 = vsel %vm7178_vm0, %v1319_v29, 0.0  ;;  %vm7180_vm7 = vcmp.eq.f32.partialorder %v7179_v57, %v7103_v50  ;;  %vm7182_vm10 = vcmp.eq.f32.partialorder %v7181_v33, %v7041_v30  ;;  %vm7184_vm13 = vcmp.eq.f32.partialorder %v7183_v27, %v7041_v30  ;;  %v7187_v60 = vld [vmem:[#allocation159_spill] sm:$0xff]  ;;  %v7188_v21 = vld [vmem:[#allocation161_spill] sm:$0xff]  ;;  %v7195_v55 = vld [vmem:[#allocation162_spill] sm:$0xff] }
 0x39b   : > { %v1816_v34 = vsel %vm7180_vm7, %v1320_v47, 0.0  ;;  %v1447_v54 = vsel %vm7182_vm10, %v1319_v29, 0.0  ;;  %v1448_v44 = vsel %vm7184_vm13, %v1320_v47, 0.0  ;;  %v2548_v8 = vsel %vm2516_vm12, %v1316_v58, 0.0  ;;  %v7191_v58 = vld [vmem:[#allocation114_spill] sm:$0xff]  ;;  %v7201_v27 = vld [vmem:[#allocation121_spill] sm:$0xff] }
 0x39c   : > { %v5881_v36 = vadd.f32 %v1816_v34, %v1815_v24  ;;  %v1323_v42 = vadd.f32 %v1291_v22, %v5744_v0  ;;  %v1324_v61 = vadd.f32 %v1292_v3, %v5747_v45  ;;  %v5896_v32 = vadd.f32 %v1448_v44, %v1447_v54  ;;  %v7189_v0 = vld [vmem:[#allocation113_spill] sm:$0xff]  ;;  %v7193_v22 = vld [vmem:[#allocation116_spill] sm:$0xff]  ;;  %v5926_v54 = vpop.xlane.xlu1 %2475 }
 0x39d   : > { %v5898_v28 = vadd.f32 %v2548_v8, %v2547_v4  ;;  %vm2517_vm14 = vcmp.eq.f32.partialorder %v7186_v41, %v5682_v14  ;;  %vm2518_vm2 = vcmp.eq.f32.partialorder %v7187_v60, %v5682_v14  ;;  %vm2519_vm0 = vcmp.eq.f32.partialorder %v7188_v21, %v5894_v2  ;;  %v7196_v24 = vld [vmem:[#allocation12_spill] sm:$0xff]  ;;  %v7197_v34 = vld [vmem:[#allocation117_spill] sm:$0xff]  ;;  %7199 = vst [vmem:[#allocation112_spill] sm:$0xff] %v5926_v54  ;;  %v7203_v8 = vld [vmem:[#allocation90_spill] sm:$0xff] }
 0x39e   : > { %vm7190_vm12 = vcmp.eq.f32.partialorder %v7189_v0, %v7106_v16  ;;  %vm7192_vm7 = vcmp.eq.f32.partialorder %v7191_v58, %v7106_v16  ;;  %v2549_v13 = vsel %vm2517_vm14, %v1317_v59, 0.0  ;;  %v2550_v4 = vsel %vm2518_vm2, %v1318_v25, 0.0  ;;  %1481 = vadd.xlane.f32.xlu0 %v7196_v24  ;;  %v7205_v60 = vld [vmem:[#allocation34_spill] sm:$0xff]  ;;  %v7206_v0 = vld [vmem:[#allocation88_spill] sm:$0xff]  ;;  %v7208_v58 = vld [vmem:[#allocation163_spill] sm:$0xff]  ;;  %2579 = vadd.xlane.f32.xlu1 %v5801_v37 }
 0x39f   : > { %v2181_v45 = vsel %vm7190_vm12, %v1317_v59, 0.0  ;;  %v2182_v56 = vsel %vm7192_vm7, %v1318_v25, 0.0  ;;  %vm7194_vm10 = vcmp.eq.f32.partialorder %v7193_v22, %v7175_v17  ;;  %vm2520_vm13 = vcmp.eq.f32.partialorder %v7195_v55, %v5894_v2  ;;  %v7200_v25 = vld [vmem:[#allocation89_spill] sm:$0xff]  ;;  %v7210_v22 = vld [vmem:[#allocation36_spill] sm:$0xff]  ;;  %v7213_v21 = vld [vmem:[#allocation122_spill] sm:$0xff] }
 0x3a0   : > { %v2183_v3 = vsel %vm7194_vm10, %v1319_v29, 0.0  ;;  %v5919_v49 = vadd.f32 %v2182_v56, %v2181_v45  ;;  %v5921_v57 = vadd.f32 %v2550_v4, %v2549_v13  ;;  %vm7198_vm12 = vcmp.eq.f32.partialorder %v7197_v34, %v7175_v17  ;;  %v7209_v56 = vld [vmem:[#allocation164_spill] sm:$0xff]  ;;  %v7216_v55 = vld [vmem:[#allocation123_spill] sm:$0xff] }
 0x3a1   : > { %v2184_v33 = vsel %vm7198_vm12, %v1320_v47, 0.0  ;;  %vm7202_vm14 = vcmp.eq.f32.partialorder %v7200_v25, %v7201_v27  ;;  %vm7204_vm2 = vcmp.eq.f32.partialorder %v7203_v8, %v7201_v27  ;;  %vm7207_vm7 = vcmp.eq.f32.partialorder %v7205_v60, %v7206_v0  ;;  %v1455_v25 = vpop.xlane.xlu1 %1454  ;;  %v7218_v8 = vld [vmem:[#allocation80_spill] sm:$0xff]  ;;  %v7232_v17 = vld [vmem:[#allocation79_spill] sm:$0xff] }
 0x3a2   : > { %v5928_v59 = vadd.f32 %v2184_v33, %v2183_v3  ;;  %v1819_v44 = vsel %vm7202_vm14, %v1323_v42, 0.0  ;;  %v1820_v41 = vsel %vm7204_vm2, %v1324_v61, 0.0  ;;  %v1451_v45 = vsel %vm7207_vm7, %v1323_v42, 0.0  ;;  %2214 = vadd.xlane.f32.xlu0 %v5811_v12  ;;  %1852 = vadd.xlane.f32.xlu1 %v7218_v8  ;;  %v7225_v8 = vld [vmem:[#allocation129_spill] sm:$0xff]  ;;  %v7233_v50 = vld [vmem:[#allocation136_spill] sm:$0xff] }
 0x3a3   : > { %3065 = vpow2.f32 %v5636_v62  ;;  %vm2523_vm10 = vcmp.eq.f32.partialorder %v7208_v58, %v5926_v54  ;;  %vm2524_vm12 = vcmp.eq.f32.partialorder %v7209_v56, %v5926_v54  ;;  %v2026_v13 = vadd.f32 %v5660_v38, %v5580_v51  ;;  %v7220_v56 = vld [vmem:[#allocation100_spill] sm:$0xff] }
 0x3a4   : > { %v5947_v4 = vadd.f32 %v1820_v41, %v1819_v44  ;;  %vm7211_vm14 = vcmp.eq.f32.partialorder %v7210_v22, %v7206_v0  ;;  %v2551_v62 = vsel %vm2519_vm0, %v1319_v29, 0.0  ;;  %v2552_v24 = vsel %vm2520_vm13, %v1320_v47, 0.0  ;;  %v7214_v29 = vld [vmem:[#allocation160_spill] sm:$0xff] }
 0x3a5   : > { %v1452_v3 = vsel %vm7211_vm14, %v1324_v61, 0.0  ;;  %v2253_v37 = vmul.f32 -0.25, %v2237_v46  ;;  %v5963_v38 = vadd.f32 %v2552_v24, %v2551_v62  ;;  %v7212_v34 = vmov 0.0   ;;  %v1458_v58 = vpop.xlane.xlu1 %1457 }
 0x3a6   : > { %v5961_v51 = vadd.f32 %v1452_v3, %v1451_v45  ;;  %v2983_v33 = vsel %vm2122_vm6, 1.0, %v7212_v34  ;;  %vm7215_vm0 = vcmp.eq.f32.partialorder %v7213_v21, %v7214_v29  ;;  %vm7217_vm13 = vcmp.eq.f32.partialorder %v7216_v55, %v7214_v29  ;;  %v7219_v3 = vld [vmem:[#allocation78_spill] sm:$0xff]  ;;  %2582 = vadd.xlane.f32.xlu1 %v5833_v5 }
 0x3a7   : > { %v2187_v44 = vsel %vm7215_vm0, %v1323_v42, 0.0  ;;  %v2188_v47 = vsel %vm7217_vm13, %v1324_v61, 0.0  ;;  %v2555_v46 = vsel %vm2523_vm10, %v1323_v42, 0.0  ;;  %v2556_v12 = vsel %vm2524_vm12, %v1324_v61, 0.0  ;;  %1484 = vadd.xlane.f32.xlu0 %v7219_v3  ;;  %v7227_v3 = vld [vmem:[#allocation50_spill] sm:$0xff] }
 0x3a8   : > { %v5981_v41 = vadd.f32 %v2188_v47, %v2187_v44  ;;  %v5983_v60 = vadd.f32 %v2556_v12, %v2555_v46  ;;  %v2394_v45 = vadd.f32 %v2983_v33, %v2026_v13  ;;  %vm6733_vm2 = vcmp.lt.f32.partialorder %v5894_v2, 3e+38  ;;  %v7221_v13 = vld [vmem:[#allocation91_spill] sm:$0xff]  ;;  %v7222_v33 = vld [vmem:[#allocation57_spill] sm:$0xff]  ;;  %v7224_v47 = vld [vmem:[#allocation68_spill] sm:$0xff] }
 0x3a9   : > { %v2269_v22 = vmul.f32 1.442695, %v2253_v37  ;;  %v2999_v42 = vsel %vm6733_vm2, 1.0, %v7212_v34  ;;  %v1565_v24 = vmul.f32 %v7220_v56, %v1455_v25  ;;  %v1503_v37 = vmax.f32 %v7222_v33, 0.0  ;;  %v1823_v21 = vpop.xlane.xlu1 %1822  ;;  %v7223_v44 = vld [vmem:[#allocation95_spill] sm:$0xff]  ;;  %v7229_v25 = vld [vmem:[#allocation26_spill] sm:$0xff] }
 0x3aa   : > { %v2762_v62 = vadd.f32 %v2999_v42, %v2394_v45  ;;  %v1871_v55 = vmax.f32 %v7223_v44, 0.0  ;;  %v1933_v46 = vmul.f32 %v7224_v47, %v1823_v21  ;;  %1855 = vadd.xlane.f32.xlu1 %v5835_v40  ;;  %v2239_v5 = vmax.f32 %v7225_v8, 0.0  ;;  %v7226_v45 = vld [vmem:[#allocation171_spill] sm:$0xff] }
 0x3ab   : > { %3067 = vpow2.f32 %v2269_v22  ;;  %2217 = vadd.xlane.f32.xlu0 %v7221_v13  ;;  %vm7228_vm7 = vcmp.lt.f32.partialorder %v7227_v3, 3e+38  ;;  %v1566_v42 = vmul.f32 %v7229_v25, %v1458_v58  ;;  %v1519_v13 = vmul.f32 -0.25, %v1503_v37  ;;  %v7234_v3 = vld [vmem:[#allocation55_spill] sm:$0xff]  ;;  %v7236_v58 = vld [vmem:[#allocation102_spill] sm:$0xff] }
 0x3ac   : > { %v5992_v61 = vadd.f32 %v5739_v53, %v2762_v62  ;;  %v2606_v53 = vmax.f32 %v7226_v45, 0.0  ;;  %v1581_v22 = vsel %vm7228_vm7, %v1565_v24, 0.0  ;;  %v7230_v62 = vld [vmem:[#allocation6_spill] sm:$0xff]  ;;  %v1887_v47 = vmul.f32 -0.25, %v1871_v55  ;;  %v7239_v55 = vld [vmem:[#allocation56_spill] sm:$0xff] }
 0x3ad   : > { %vm7231_vm10 = vcmp.lt.f32.partialorder %v7230_v62, 3e+38  ;;  %v1826_v21 = vpop.xlane.xlu1 %1825  ;;  %v2255_v14 = vmul.f32 -0.25, %v2239_v5  ;;  %v2238_v16 = vmax.f32 %v7233_v50, 0.0  ;;  %vm7235_vm12 = vcmp.lt.f32.partialorder %v7234_v3, 3e+38 }
 0x3ae   : > { %v1949_v56 = vsel %vm7231_vm10, %v1933_v46, 0.0  ;;  %2585 = vadd.xlane.f32.xlu1 %v7232_v17  ;;  %v2622_v30 = vmul.f32 -0.25, %v2606_v53  ;;  %v1582_v24 = vsel %vm7235_vm12, %v1566_v42, 0.0  ;;  %vm7237_vm14 = vcmp.lt.f32.partialorder %v7236_v58, 3e+38  ;;  %v7238_v46 = vld [vmem:[#allocation132_spill] sm:$0xff] }
 0x3af   : > { %1487 = vadd.xlane.f32.xlu0 %v5843_v15  ;;  %v1965_v2 = vadd.f32 %v1949_v56, %v1581_v22  ;;  %v1537_v15 = vmul.f32 1.442695, %v1519_v13  ;;  %v1905_v17 = vmul.f32 1.442695, %v1887_v47  ;;  %v7240_v5 = vld [vmem:[#allocation97_spill] sm:$0xff]  ;;  %v2254_v56 = vmul.f32 -0.25, %v2238_v16 }
 0x3b0   : > { %v3066_v12 = vpop.eup %3065  ;;  %v1872_v53 = vmax.f32 %v7240_v5, 0.0  ;;  %v2273_v62 = vmul.f32 1.442695, %v2255_v14  ;;  %v7241_v42 = vld [vmem:[#allocation170_spill] sm:$0xff]  ;;  %v2639_v3 = vmul.f32 1.442695, %v2622_v30 }
 0x3b1   : > { %v1934_v40 = vmul.f32 %v3066_v12, %v1826_v21  ;;  %v6017_v22 = vpop.xlane.xlu1 %1460  ;;  %v1504_v12 = vmax.f32 %v7239_v55, 0.0  ;;  %v2607_v21 = vmax.f32 %v7241_v42, 0.0  ;;  %3069 = vpow2.f32 %v1537_v15  ;;  %v7242_v58 = vld [vmem:[#allocation62_spill] sm:$0xff]  ;;  %v7243_v47 = vld [vmem:[#allocation59_spill] sm:$0xff] }
 0x3b2   : > { %1858 = vadd.xlane.f32.xlu1 %v5866_v52  ;;  %3071 = vpow2.f32 %v1905_v17  ;;  %v1888_v52 = vmul.f32 -0.25, %v1872_v53  ;;  %v2271_v43 = vmul.f32 1.442695, %v2254_v56  ;;  %v7244_v14 = vld [vmem:[#allocation166_spill] sm:$0xff]  ;;  %vm7245_vm0 = vcmp.lt.f32.partialorder %v4724_v18, 3e+38 }
 0x3b3   : > { %v1950_v25 = vsel %vm7237_vm14, %v1934_v40, 0.0  ;;  %2220 = vadd.xlane.f32.xlu0 %v7238_v46  ;;  %3073 = vpow2.f32 %v2273_v62  ;;  %v2605_v16 = vmax.f32 %v7244_v14, 0.0  ;;  %v2623_v26 = vmul.f32 -0.25, %v2607_v21  ;;  %v7247_v17 = vld [vmem:[#allocation81_spill] sm:$0xff]  ;;  %v7249_v18 = vld [vmem:[#allocation48_spill] sm:$0xff] }
 0x3b4   : > { %v6015_v37 = vadd.f32 %v1950_v25, %v1582_v24  ;;  %v1520_v24 = vmul.f32 -0.25, %v1504_v12  ;;  %v1505_v25 = vmax.f32 %v7242_v58, 0.0  ;;  %3075 = vpow2.f32 %v2639_v3  ;;  %v7248_v53 = vld [vmem:[#allocation77_spill] sm:$0xff] }
 0x3b5   : > { %v2191_v13 = vpop.xlane.xlu1 %2190  ;;  %vm1755_vm13 = vcmp.lt.f32.partialorder %v7247_v17, 3e+38  ;;  %vm1387_vm7 = vcmp.lt.f32.partialorder %v7248_v53, 3e+38  ;;  %v1907_v62 = vmul.f32 1.442695, %v1888_v52  ;;  %3077 = vpow2.f32 %v2271_v43 }
 0x3b6   : > { %2588 = vadd.xlane.f32.xlu1 %v7243_v47  ;;  %vm6734_vm10 = vcmp.lt.f32.partialorder %v7201_v27, 3e+38  ;;  %vm6735_vm12 = vcmp.lt.f32.partialorder %v7249_v18, 3e+38  ;;  %v2641_v21 = vmul.f32 1.442695, %v2623_v26 }
 0x3b7   : > { %1490 = vadd.xlane.f32.xlu0 %v5868_v1  ;;  %v7246_v1 = vld [vmem:[#allocation108_spill] sm:$0xff]  ;;  %vm6736_vm14 = vcmp.lt.f32.partialorder %v7206_v0, 3e+38  ;;  %v2952_v43 = vsel %vm1387_vm7, 1.0, %v7212_v34  ;;  %v2969_v26 = vsel %vm6734_vm10, 1.0, %v7212_v34 }
 0x3b8   : > { %v3068_v40 = vpop.eup %3067  ;;  %v1873_v15 = vmax.f32 %v7246_v1, 0.0  ;;  %vm6746_vm2 = vcmp.lt.f32.partialorder %v5926_v54, 3e+38 }
 0x3b9   : > { %v2301_v46 = vmul.f32 %v3068_v40, %v2191_v13  ;;  %v1539_v40 = vmul.f32 1.442695, %v1520_v24  ;;  %v1521_v13 = vmul.f32 -0.25, %v1505_v25  ;;  %v6036_v56 = vpop.xlane.xlu1 %1463 }
 0x3ba   : > { %1861 = vadd.xlane.f32.xlu1 %v5881_v36  ;;  %v1889_v3 = vmul.f32 -0.25, %v1873_v15  ;;  %v7250_v36 = vld [vmem:[#allocation130_spill] sm:$0xff] }
 0x3bb   : > { %v2317_v30 = vsel %vm7245_vm0, %v2301_v46, 0.0  ;;  %2223 = vadd.xlane.f32.xlu0 %v5870_v20  ;;  %v2621_v20 = vmul.f32 -0.25, %v2605_v16  ;;  %v2240_v24 = vmax.f32 %v7250_v36, 0.0  ;;  %vm6747_vm0 = vcmp.lt.f32.partialorder %v7214_v29, 3e+38 }
 0x3bc   : > { %v6031_v12 = vadd.f32 %v2317_v30, %v1965_v2  ;;  %v2968_v2 = vsel %vm1755_vm13, 1.0, %v7212_v34  ;;  %3079 = vpow2.f32 %v1539_v40  ;;  %v1541_v25 = vmul.f32 1.442695, %v1521_v13  ;;  %v6065_v40 = vpop.xlane.xlu0 %2472 }
 0x3bd   : > { %3081 = vpow2.f32 %v1907_v62  ;;  %v2027_v46 = vadd.f32 %v2968_v2, %v2952_v43  ;;  %v2637_v47 = vmul.f32 1.442695, %v2621_v20  ;;  %v2985_v52 = vsel %vm6747_vm0, 1.0, %v7212_v34  ;;  %v2197_v15 = vpop.xlane.xlu1 %2196  ;;  %v7251_v20 = vld [vmem:[#allocation168_spill] sm:$0xff] }
 0x3be   : > { %2591 = vadd.xlane.f32.xlu1 %v5898_v28  ;;  %3083 = vpow2.f32 %v2641_v21  ;;  %v2953_v28 = vsel %vm6736_vm14, 1.0, %v7212_v34  ;;  %v1909_v16 = vmul.f32 1.442695, %v1889_v3  ;;  %v2256_v30 = vmul.f32 -0.25, %v2240_v24  ;;  %v3070_v2 = vpop.eup %3069  ;;  %v7253_v21 = vld [vmem:[#allocation151_spill] sm:$0xff]  ;;  %v7254_v43 = vld [vmem:[#allocation124_spill] sm:$0xff] }
 0x3bf   : > { %1493 = vadd.xlane.f32.xlu0 %v5896_v32  ;;  %v2984_v32 = vsel %vm6735_vm12, 1.0, %v7212_v34  ;;  %v2028_v13 = vadd.f32 %v2969_v26, %v2953_v28  ;;  %vm2521_vm10 = vcmp.eq.f32.partialorder %v7251_v20, %v6065_v40  ;;  %vm2491_vm14 = vcmp.lt.f32.partialorder %v6065_v40, 3e+38  ;;  %v3072_v24 = vpop.eup %3071  ;;  %v7255_v26 = vld [vmem:[#allocation125_spill] sm:$0xff] }
 0x3c0   : > { %v2395_v62 = vadd.f32 %v2984_v32, %v2027_v46  ;;  %v3001_v3 = vsel %vm6746_vm2, 1.0, %v7212_v34  ;;  %v2553_v29 = vsel %vm2521_vm10, %v7254_v43, 0.0  ;;  %v3000_v46 = vsel %vm2491_vm14, 1.0, %v7212_v34  ;;  %v3074_v20 = vpop.eup %3073  ;;  %v1829_v17 = vpop.xlane.xlu0 %1828 }
 0x3c1   : > { %v2396_v28 = vadd.f32 %v2985_v52, %v2028_v13  ;;  %3085 = vpow2.f32 %v2637_v47  ;;  %v3076_v54 = vpop.eup %3075  ;;  %v2562_v0 = vpop.xlane.xlu1 %2561  ;;  %v2303_v53 = vmul.f32 %v3074_v20, %v2197_v15  ;;  %v1935_v9 = vmul.f32 %v3072_v24, %v1829_v17 }
 0x3c2   : > { %1864 = vadd.xlane.f32.xlu1 %v7253_v21  ;;  %v7256_v21 = vld [vmem:[#allocation30_spill] sm:$0xff]  ;;  %v2763_v27 = vadd.f32 %v3000_v46, %v2395_v62  ;;  %3087 = vpow2.f32 %v1909_v16  ;;  %v2275_v47 = vmul.f32 1.442695, %v2256_v30  ;;  %vm7257_vm10 = vcmp.lt.f32.partialorder %v7222_v33, 3e+38  ;;  %v7262_v30 = vld [vmem:[#allocation107_spill] sm:$0xff] }
 0x3c3   : > { %2226 = vadd.xlane.f32.xlu0 %v5919_v49  ;;  %v7252_v49 = vld [vmem:[#allocation169_spill] sm:$0xff]  ;;  %v2764_v43 = vadd.f32 %v3001_v3, %v2396_v28  ;;  %3089 = vpow2.f32 %v1541_v25  ;;  %vm7259_vm2 = vcmp.lt.f32.partialorder %v7223_v44, 3e+38  ;;  %vm7260_vm0 = vcmp.lt.f32.partialorder %v7225_v8, 3e+38 }
 0x3c4   : > { %vm2522_vm12 = vcmp.eq.f32.partialorder %v7252_v49, %v6065_v40  ;;  %v1567_v49 = vmul.f32 %v3070_v2, %v6017_v22  ;;  %v2799_v34 = vadd.f32 %v5992_v61, %v2763_v27  ;;  %v1951_v52 = vsel %vm7259_vm2, %v1935_v9, 0.0  ;;  %v2194_v17 = vpop.xlane.xlu0 %2193  ;;  %v7264_v28 = vld [vmem:[#allocation141_spill] sm:$0xff] }
 0x3c5   : > { %v2554_v32 = vsel %vm2522_vm12, %v7255_v26, 0.0  ;;  %v2670_v26 = vmul.f32 %v3076_v54, %v2562_v0  ;;  %vm7258_vm12 = vcmp.lt.f32.partialorder %v7226_v45, 3e+38  ;;  %v3078_v54 = vpop.eup %3077  ;;  %v1835_v0 = vpop.xlane.xlu1 %1834  ;;  %v2319_v27 = vsel %vm7260_vm0, %v2303_v53, 0.0  ;;  %v7261_v45 = vld [vmem:[#allocation64_spill] sm:$0xff] }
 0x3c6   : > { %v2599_v18 = vadd.f32 %v2554_v32, %v2553_v29  ;;  %2594 = vadd.xlane.f32.xlu1 %v5921_v57  ;;  %v1583_v22 = vsel %vm7257_vm10, %v1567_v49, 0.0  ;;  %v6092_v16 = vadd.f32 %v2799_v34, %v2764_v43  ;;  %v2302_v61 = vmul.f32 %v3078_v54, %v2194_v17 }
 0x3c7   : > { %1496 = vadd.xlane.f32.xlu0 %v7256_v21  ;;  %v2686_v29 = vsel %vm7258_vm12, %v2670_v26, 0.0  ;;  %v1967_v57 = vadd.f32 %v1951_v52, %v1583_v22  ;;  %v1506_v25 = vmax.f32 %v7261_v45, 0.0  ;;  %v1874_v44 = vmax.f32 %v7262_v30, 0.0  ;;  %v7268_v21 = vld [vmem:[#allocation173_spill] sm:$0xff] }
 0x3c8   : > { %3091 = vpow2.f32 %v2275_v47  ;;  %vm7263_vm2 = vcmp.lt.f32.partialorder %v7233_v50, 3e+38  ;;  %v2241_v20 = vmax.f32 %v7264_v28, 0.0  ;;  %vm7265_vm0 = vcmp.lt.f32.partialorder %v7239_v55, 3e+38 }
 0x3c9   : > { %v3080_v33 = vpop.eup %3079  ;;  %v2335_v9 = vadd.f32 %v2319_v27, %v1967_v57  ;;  %v2318_v13 = vsel %vm7263_vm2, %v2302_v61, 0.0  ;;  %v2565_v53 = vpop.xlane.xlu1 %2564  ;;  %v1522_v24 = vmul.f32 -0.25, %v1506_v25  ;;  %v1890_v32 = vmul.f32 -0.25, %v1874_v44 }
 0x3ca   : > { %1867 = vadd.xlane.f32.xlu1 %v5947_v4  ;;  %v3082_v15 = vpop.eup %3081  ;;  %v2334_v62 = vadd.f32 %v2318_v13, %v6015_v37  ;;  %v1832_v4 = vpop.xlane.xlu0 %1831  ;;  %vm7266_vm10 = vcmp.lt.f32.partialorder %v7241_v42, 3e+38  ;;  %v7267_v37 = vld [vmem:[#allocation28_spill] sm:$0xff]  ;;  %v2608_v43 = vmax.f32 %v7268_v21, 0.0  ;;  %v2257_v54 = vmul.f32 -0.25, %v2241_v20 }
 0x3cb   : > { %2229 = vadd.xlane.f32.xlu0 %v5928_v59  ;;  %v1568_v59 = vmul.f32 %v3080_v33, %v6036_v56  ;;  %v3084_v8 = vpop.eup %3083  ;;  %v1936_v3 = vmul.f32 %v3082_v15, %v1832_v4  ;;  %v1911_v52 = vmul.f32 1.442695, %v1890_v32  ;;  %vm7269_vm12 = vcmp.lt.f32.partialorder %v7244_v14, 3e+38 }
 0x3cc   : > { %v2671_v2 = vmul.f32 %v3084_v8, %v2565_v53  ;;  %v2702_v46 = vadd.f32 %v2686_v29, %v2334_v62  ;;  %v1543_v29 = vmul.f32 1.442695, %v1522_v24  ;;  %v2624_v57 = vmul.f32 -0.25, %v2608_v43 }
 0x3cd   : > { %v1584_v50 = vsel %vm7265_vm0, %v1568_v59, 0.0  ;;  %v1952_v56 = vsel %vm1744_vm5, %v1936_v3, 0.0  ;;  %v2277_v25 = vmul.f32 1.442695, %v2257_v54  ;;  %vm7270_vm5 = vcmp.lt.f32.partialorder %v7242_v58, 3e+38 }
 0x3ce   : > { %2597 = vadd.xlane.f32.xlu1 %v5963_v38  ;;  %v3086_v49 = vpop.eup %3085  ;;  %v1968_v26 = vadd.f32 %v1952_v56, %v1584_v50  ;;  %v2559_v34 = vpop.xlane.xlu0 %2558  ;;  %3093 = vpow2.f32 %v1543_v29  ;;  %v2643_v44 = vmul.f32 1.442695, %v2624_v57  ;;  %vm7273_vm2 = vcmp.lt.f32.partialorder %v7262_v30, 3e+38  ;;  %v7277_v54 = vld [vmem:[#allocation146_spill] sm:$0xff] }
 0x3cf   : > { %1499 = vadd.xlane.f32.xlu0 %v5961_v51  ;;  %v2687_v51 = vsel %vm7266_vm10, %v2671_v2, 0.0  ;;  %v3088_v47 = vpop.eup %3087  ;;  %v2669_v22 = vmul.f32 %v3086_v49, %v2559_v34  ;;  %3095 = vpow2.f32 %v1911_v52  ;;  %vm7275_vm0 = vcmp.lt.f32.partialorder %v7268_v21, 3e+38 }
 0x3d0   : > { %v2703_v38 = vadd.f32 %v2687_v51, %v2335_v9  ;;  %v3090_v55 = vpop.eup %3089  ;;  %v1937_v42 = vmul.f32 %v3088_v47, %v1835_v0  ;;  %3097 = vpow2.f32 %v2277_v25 }
 0x3d1   : > { %v2685_v5 = vsel %vm7269_vm12, %v2669_v22, 0.0  ;;  %3099 = vpow2.f32 %v2643_v44  ;;  %vm7285_vm12 = vcmp.lt.f32.partialorder %v7277_v54, 3e+38 }
 0x3d2   : > { %2600 = vadd.xlane.f32.xlu1 %v2599_v18  ;;  %v2701_v17 = vadd.f32 %v2685_v5, %v6031_v12  ;;  %v1467_v27 = vpop.xlane.xlu0 %1466  ;;  %v1953_v18 = vsel %vm1745_vm15, %v1937_v42, 0.0  ;;  %vm7272_vm15 = vcmp.lt.f32.partialorder %v7261_v45, 3e+38  ;;  %v2242_v42 = vmax.f32 %v7277_v54, 0.0 }
 0x3d3   : > { %2232 = vadd.xlane.f32.xlu0 %v7267_v37  ;;  %v1569_v61 = vmul.f32 %v3090_v55, %v1467_v27 }
 0x3d4   : > { %v2765_v33 = vadd.f32 %v2702_v46, %v2701_v17  ;;  %v2258_v21 = vmul.f32 -0.25, %v2242_v42  ;;  %v7279_v17 = vld [vmem:[#allocation115_spill] sm:$0xff] }
 0x3d5   : > { %v1585_v0 = vsel %vm7270_vm5, %v1569_v61, 0.0  ;;  %v3092_v14 = vpop.eup %3091  ;;  %v1875_v27 = vmax.f32 %v7279_v17, 0.0  ;;  %v7280_v61 = vld [vmem:[#allocation85_spill] sm:$0xff] }
 0x3d6   : > { %v1969_v15 = vadd.f32 %v1953_v18, %v1585_v0  ;;  %v2200_v12 = vpop.xlane.xlu0 %2199  ;;  %v2766_v59 = vadd.f32 %v2765_v33, %v2703_v38  ;;  %v2610_v33 = vmax.f32 %v7280_v61, 0.0  ;;  %v2279_v18 = vmul.f32 1.442695, %v2258_v21  ;;  %v7281_v0 = vld [vmem:[#allocation152_spill] sm:$0xff] }
 0x3d7   : > { %2235 = vadd.xlane.f32.xlu0 %v5981_v41  ;;  %v7271_v41 = vld [vmem:[#allocation27_spill] sm:$0xff]  ;;  %v2304_v13 = vmul.f32 %v3092_v14, %v2200_v12  ;;  %v2243_v14 = vmax.f32 %v7281_v0, 0.0  ;;  %v1891_v44 = vmul.f32 -0.25, %v1875_v27  ;;  %v7284_v21 = vld [vmem:[#allocation92_spill] sm:$0xff]  ;;  %vm7287_vm5 = vcmp.lt.f32.partialorder %v7280_v61, 3e+38 }
 0x3d8   : > { %v2609_v9 = vmax.f32 %v7271_v41, 0.0  ;;  %vm7276_vm10 = vcmp.lt.f32.partialorder %v7271_v41, 3e+38  ;;  %v1878_v27 = vmax.f32 %v7284_v21, 0.0 }
 0x3d9   : > { %v2320_v8 = vsel %vm2112_vm8, %v2304_v13, 0.0  ;;  %vm7274_vm8 = vcmp.lt.f32.partialorder %v7264_v28, 3e+38  ;;  %v7278_v28 = vld [vmem:[#allocation71_spill] sm:$0xff]  ;;  %v2259_v12 = vmul.f32 -0.25, %v2243_v14  ;;  %v1876_v13 = vmax.f32 %v7060_v19, 0.0 }
 0x3da   : > { %v2625_v1 = vmul.f32 -0.25, %v2609_v9  ;;  %v2336_v53 = vadd.f32 %v2320_v8, %v1968_v26  ;;  %v1507_v57 = vmax.f32 %v7278_v28, 0.0  ;;  %v2626_v9 = vmul.f32 -0.25, %v2610_v33 }
 0x3db   : > { %2603 = vadd.xlane.f32.xlu0 %v5983_v60  ;;  %v3094_v58 = vpop.eup %3093  ;;  %v2613_v14 = vmax.f32 %v7107_v31, 0.0  ;;  %v2248_v19 = vmax.f32 %v7108_v63, 0.0 }
 0x3dc   : > { %v2645_v62 = vmul.f32 1.442695, %v2625_v1  ;;  %v3096_v4 = vpop.eup %3095  ;;  %v1470_v60 = vpop.xlane.xlu0 %1469  ;;  %v1523_v25 = vmul.f32 -0.25, %v1507_v57  ;;  %v2647_v8 = vmul.f32 1.442695, %v2626_v9  ;;  %v7282_v1 = vld [vmem:[#allocation86_spill] sm:$0xff] }
 0x3dd   : > { %v1838_v2 = vpop.xlane.xlu1 %1837  ;;  %v1570_v3 = vmul.f32 %v3094_v58, %v1470_v60  ;;  %v3098_v46 = vpop.eup %3097  ;;  %v2281_v58 = vmul.f32 1.442695, %v2259_v12  ;;  %v1892_v60 = vmul.f32 -0.25, %v1876_v13  ;;  %v7286_v12 = vld [vmem:[#allocation127_spill] sm:$0xff] }
 0x3de   : > { %3101 = vpow2.f32 %v2645_v62  ;;  %v1938_v24 = vmul.f32 %v3096_v4, %v1838_v2  ;;  %v3100_v50 = vpop.eup %3099  ;;  %v1545_v41 = vmul.f32 1.442695, %v1523_v25  ;;  %v2244_v4 = vmax.f32 %v7086_v48, 0.0 }
 0x3df   : > { %v1586_v32 = vsel %vm7272_vm15, %v1570_v3, 0.0  ;;  %3103 = vpow2.f32 %v2279_v18  ;;  %vm7289_vm15 = vcmp.lt.f32.partialorder %v7279_v17, 3e+38 }
 0x3e0   : > { %v1954_v20 = vsel %vm7273_vm2, %v1938_v24, 0.0  ;;  %v2203_v36 = vpop.xlane.xlu0 %2202  ;;  %3105 = vpow2.f32 %v1545_v41  ;;  %v1509_v24 = vmax.f32 %v7006_v6, 0.0  ;;  %vm7290_vm2 = vcmp.lt.f32.partialorder %v7278_v28, 3e+38 }
 0x3e1   : > { %v6130_v51 = vadd.f32 %v1954_v20, %v1586_v32  ;;  %v2568_v56 = vpop.xlane.xlu1 %2567  ;;  %v2305_v37 = vmul.f32 %v3098_v46, %v2203_v36  ;;  %v2260_v46 = vmul.f32 -0.25, %v2244_v4  ;;  %v1877_v20 = vmax.f32 %v7050_v10, 0.0  ;;  %v7302_v10 = vld [vmem:[#allocation66_spill] sm:$0xff] }
 0x3e2   : > { %v2672_v49 = vmul.f32 %v3100_v50, %v2568_v56  ;;  %v1915_v36 = vmul.f32 1.442695, %v1892_v60  ;;  %v2612_v56 = vmax.f32 %v5654_v7, 0.0  ;;  %v1894_v60 = vmul.f32 -0.25, %v1878_v27 }
 0x3e3   : > { %v2321_v43 = vsel %vm7274_vm8, %v2305_v37, 0.0  ;;  %v1525_v37 = vmul.f32 -0.25, %v1509_v24  ;;  %vm7293_vm8 = vcmp.lt.f32.partialorder %v7281_v0, 3e+38 }
 0x3e4   : > { %v2688_v38 = vsel %vm7275_vm0, %v2672_v49, 0.0  ;;  %v2337_v26 = vadd.f32 %v2321_v43, %v1969_v15  ;;  %v1508_v15 = vmax.f32 %v7039_v39, 0.0  ;;  %v1473_v2 = vpop.xlane.xlu0 %1472  ;;  %v2245_v43 = vmax.f32 %v7104_v35, 0.0 }
 0x3e5   : > { %v2704_v45 = vadd.f32 %v2688_v38, %v2336_v53  ;;  %v6136_v34 = vpop.xlane.xlu1 %1840  ;;  %v2611_v53 = vmax.f32 %v7282_v1, 0.0  ;;  %v2283_v38 = vmul.f32 1.442695, %v2260_v46  ;;  %vm7295_vm0 = vcmp.lt.f32.partialorder %v7282_v1, 3e+38 }
 0x3e6   : > { %v1524_v62 = vmul.f32 -0.25, %v1508_v15  ;;  %v2261_v42 = vmul.f32 -0.25, %v2245_v43  ;;  %v1919_v43 = vmul.f32 1.442695, %v1894_v60 }
 0x3e7   : > { %v2767_v47 = vadd.f32 %v2766_v59, %v2704_v45  ;;  %v1913_v59 = vmul.f32 1.442695, %v1891_v44  ;;  %v2627_v3 = vmul.f32 -0.25, %v2611_v53  ;;  %v1893_v45 = vmul.f32 -0.25, %v1877_v20 }
 0x3e8   : > { %v1547_v32 = vmul.f32 1.442695, %v1524_v62  ;;  %v2206_v49 = vpop.xlane.xlu0 %2205 }
 0x3e9   : > { %3107 = vpow2.f32 %v1913_v59  ;;  %v2649_v50 = vmul.f32 1.442695, %v2627_v3  ;;  %v1917_v33 = vmul.f32 1.442695, %v1893_v45  ;;  %v2246_v59 = vmax.f32 %v7286_v12, 0.0 }
 0x3ea   : > { %3109 = vpow2.f32 %v2647_v8  ;;  %v2285_v8 = vmul.f32 1.442695, %v2261_v42 }
 0x3eb   : > { %v3102_v30 = vpop.eup %3101  ;;  %v2571_v22 = vpop.xlane.xlu1 %2570  ;;  %3111 = vpow2.f32 %v2281_v58 }
 0x3ec   : > { %v2673_v29 = vmul.f32 %v3102_v30, %v2571_v22  ;;  %3113 = vpow2.f32 %v1547_v32  ;;  %v1549_v22 = vmul.f32 1.442695, %v1525_v37  ;;  %v2629_v32 = vmul.f32 -0.25, %v2613_v14 }
 0x3ed   : > { %3115 = vpow2.f32 %v1915_v36  ;;  %v7288_v36 = vld [vmem:[#allocation58_spill] sm:$0xff] }
 0x3ee   : > { %v2689_v55 = vsel %vm7276_vm10, %v2673_v29, 0.0  ;;  %3117 = vpow2.f32 %v2649_v50  ;;  %v7283_v29 = vld [vmem:[#allocation52_spill] sm:$0xff]  ;;  %v1511_v50 = vmax.f32 %v7288_v36, 0.0  ;;  %vm7310_vm10 = vcmp.lt.f32.partialorder %v7286_v12, 3e+38 }
 0x3ef   : > { %v2705_v52 = vadd.f32 %v2689_v55, %v2337_v26  ;;  %v3104_v26 = vpop.eup %3103  ;;  %v1510_v55 = vmax.f32 %v7283_v29, 0.0  ;;  %3119 = vpow2.f32 %v2283_v38  ;;  %v7291_v38 = vld [vmem:[#allocation106_spill] sm:$0xff] }
 0x3f0   : > { %v2306_v30 = vmul.f32 %v3104_v26, %v2206_v49  ;;  %v3106_v57 = vpop.eup %3105  ;;  %3121 = vpow2.f32 %v1549_v22  ;;  %v1879_v26 = vmax.f32 %v7291_v38, 0.0  ;;  %v7292_v22 = vld [vmem:[#allocation172_spill] sm:$0xff]  ;;  %v1527_v17 = vmul.f32 -0.25, %v1511_v50 }
 0x3f1   : > { %v6141_v5 = vadd.f32 %v2767_v47, %v2705_v52  ;;  %v2628_v47 = vmul.f32 -0.25, %v2612_v56  ;;  %v1526_v15 = vmul.f32 -0.25, %v1510_v55  ;;  %v1571_v62 = vmul.f32 %v3106_v57, %v1473_v2 }
 0x3f2   : > { %v2322_v9 = vsel %vm7285_vm12, %v2306_v30, 0.0  ;;  %3123 = vpow2.f32 %v1917_v33  ;;  %v2262_v56 = vmul.f32 -0.25, %v2246_v59  ;;  %v2653_v30 = vmul.f32 1.442695, %v2629_v32 }
 0x3f3   : > { %v2651_v44 = vmul.f32 1.442695, %v2628_v47  ;;  %v2338_v3 = vadd.f32 %v2322_v9, %v6130_v51  ;;  %v1551_v20 = vmul.f32 1.442695, %v1526_v15  ;;  %v1587_v51 = vsel %vm7290_vm2, %v1571_v62, 0.0 }
 0x3f4   : > { %v2614_v55 = vmax.f32 %v7292_v22, 0.0  ;;  %v2287_v27 = vmul.f32 1.442695, %v2262_v56  ;;  %v1895_v15 = vmul.f32 -0.25, %v1879_v26  ;;  %v1553_v62 = vmul.f32 1.442695, %v1527_v17 }
 0x3f5   : > { %3125 = vpow2.f32 %v2651_v44  ;;  %v1880_v32 = vmax.f32 %v7051_v23, 0.0  ;;  %v7296_v56 = vld [vmem:[#allocation96_spill] sm:$0xff]  ;;  %vm7313_vm12 = vcmp.lt.f32.partialorder %v7292_v22, 3e+38 }
 0x3f6   : > { %v3108_v18 = vpop.eup %3107  ;;  %3127 = vpow2.f32 %v2285_v8  ;;  %v2630_v8 = vmul.f32 -0.25, %v2614_v55 }
 0x3f7   : > { %v3110_v41 = vpop.eup %3109  ;;  %v1939_v53 = vmul.f32 %v3108_v18, %v6136_v34  ;;  %3129 = vpow2.f32 %v1551_v20  ;;  %v7294_v18 = vld [vmem:[#allocation140_spill] sm:$0xff]  ;;  %v1896_v17 = vmul.f32 -0.25, %v1880_v32  ;;  %v7303_v32 = vld [vmem:[#allocation154_spill] sm:$0xff] }
 0x3f8   : > { %v3112_v4 = vpop.eup %3111  ;;  %v2247_v14 = vmax.f32 %v7294_v18, 0.0  ;;  %3131 = vpow2.f32 %v1919_v43  ;;  %v2655_v50 = vmul.f32 1.442695, %v2630_v8  ;;  %v7299_v8 = vld [vmem:[#allocation75_spill] sm:$0xff]  ;;  %vm7318_vm2 = vcmp.lt.f32.partialorder %v7294_v18, 3e+38 }
 0x3f9   : > { %v1955_v2 = vsel %vm7289_vm15, %v1939_v53, 0.0  ;;  %v3114_v49 = vpop.eup %3113  ;;  %3133 = vpow2.f32 %v2653_v30  ;;  %vm7315_vm15 = vcmp.lt.f32.partialorder %v7288_v36, 3e+38  ;;  %v7320_v36 = vld [vmem:[#allocation48_spill] sm:$0xff] }
 0x3fa   : > { %v3116_v47 = vpop.eup %3115  ;;  %v1971_v28 = vadd.f32 %v1955_v2, %v1587_v51  ;;  %3135 = vpow2.f32 %v2287_v27 }
 0x3fb   : > { %v3118_v57 = vpop.eup %3117  ;;  %3137 = vpow2.f32 %v1553_v62 }
 0x410   : > { %v1844_v52 = vpop.xlane.xlu1 %1843 }
 0x411   : > { %v1940_v44 = vmul.f32 %v3116_v47, %v1844_v52  ;;  %v2263_v52 = vmul.f32 -0.25, %v2247_v14 }
 0x412   : > { %v1476_v25 = vpop.xlane.xlu0 %1475 }
 0x413   : > { %v1572_v9 = vmul.f32 %v3114_v49, %v1476_v25  ;;  %v1956_v25 = vsel %vm1748_vm3, %v1940_v44, 0.0  ;;  %v2289_v26 = vmul.f32 1.442695, %v2263_v52  ;;  %vm7306_vm3 = vcmp.lt.f32.partialorder %v7284_v21, 3e+38 }
 0x414   : > { %v2574_v13 = vpop.xlane.xlu1 %2573 }
 0x415   : > { %v2674_v58 = vmul.f32 %v3110_v41, %v2574_v13 }
 0x417   : > { %v2209_v24 = vpop.xlane.xlu0 %2208  ;;  %v2690_v54 = vsel %vm7287_vm5, %v2674_v58, 0.0  ;;  %v1512_v58 = vmax.f32 %v7019_v11, 0.0  ;;  %vm7314_vm5 = vcmp.lt.f32.partialorder %v7291_v38, 3e+38  ;;  %v7319_v38 = vld [vmem:[#allocation121_spill] sm:$0xff] }
 0x418   : > { %v2307_v46 = vmul.f32 %v3112_v4, %v2209_v24  ;;  %v2706_v37 = vadd.f32 %v2690_v54, %v2338_v3  ;;  %v1847_v34 = vpop.xlane.xlu1 %1846  ;;  %v1588_v24 = vsel %vm1380_vm11, %v1572_v9, 0.0  ;;  %v1921_v54 = vmul.f32 1.442695, %v1895_v15 }
 0x419   : > { %v1528_v49 = vmul.f32 -0.25, %v1512_v58  ;;  %v1972_v43 = vadd.f32 %v1956_v25, %v1588_v24  ;;  %vm7298_vm11 = vcmp.lt.f32.partialorder %v7006_v6, 3e+38  ;;  %v1514_v24 = vmax.f32 %v7302_v10, 0.0 }
 0x41a   : > { %v2769_v61 = vadd.f32 %v6141_v5, %v2706_v37  ;;  %v2323_v42 = vsel %vm7293_vm8, %v2307_v46, 0.0  ;;  %v3120_v5 = vpop.eup %3119  ;;  %v2615_v37 = vmax.f32 %v7296_v56, 0.0  ;;  %3139 = vpow2.f32 %v1921_v54 }
 0x41b   : > { %v1479_v45 = vpop.xlane.xlu0 %1478  ;;  %v2339_v59 = vadd.f32 %v2323_v42, %v1971_v28  ;;  %v3122_v3 = vpop.eup %3121  ;;  %v7297_v42 = vld [vmem:[#allocation65_spill] sm:$0xff]  ;;  %3141 = vpow2.f32 %v2655_v50  ;;  %v1555_v44 = vmul.f32 1.442695, %v1528_v49  ;;  %v2249_v6 = vmax.f32 %v7303_v32, 0.0 }
 0x41c   : > { %v3124_v20 = vpop.eup %3123  ;;  %v1573_v30 = vmul.f32 %v3122_v3, %v1479_v45  ;;  %v2631_v48 = vmul.f32 -0.25, %v2615_v37  ;;  %3143 = vpow2.f32 %v2289_v26  ;;  %vm7321_vm8 = vcmp.lt.f32.partialorder %v7296_v56, 3e+38 }
 0x41d   : > { %v3126_v51 = vpop.eup %3125  ;;  %v1941_v47 = vmul.f32 %v3124_v20, %v1847_v34  ;;  %v2264_v34 = vmul.f32 -0.25, %v2248_v19  ;;  %3145 = vpow2.f32 %v1555_v44 }
 0x41e   : > { %v2577_v33 = vpop.xlane.xlu1 %2576  ;;  %v1589_v15 = vsel %vm7298_vm11, %v1573_v30, 0.0  ;;  %v2657_v58 = vmul.f32 1.442695, %v2631_v48  ;;  %v1530_v30 = vmul.f32 -0.25, %v1514_v24  ;;  %vm7324_vm11 = vcmp.lt.f32.partialorder %v7019_v11, 3e+38 }
 0x41f   : > { %v2675_v41 = vmul.f32 %v3118_v57, %v2577_v33  ;;  %v2212_v13 = vpop.xlane.xlu0 %2211  ;;  %v1513_v57 = vmax.f32 %v7297_v42, 0.0  ;;  %v1957_v45 = vsel %vm1749_vm9, %v1941_v47, 0.0  ;;  %v2291_v50 = vmul.f32 1.442695, %v2264_v34 }
 0x420   : > { %v2308_v53 = vmul.f32 %v3120_v5, %v2212_v13  ;;  %v1923_v13 = vmul.f32 1.442695, %v1896_v17  ;;  %v1973_v54 = vadd.f32 %v1957_v45, %v1589_v15  ;;  %vm7304_vm9 = vcmp.lt.f32.partialorder %v7107_v31, 3e+38 }
 0x421   : > { %v2691_v0 = vsel %vm7295_vm0, %v2675_v41, 0.0  ;;  %vm7323_vm0 = vcmp.lt.f32.partialorder %v7051_v23, 3e+38 }
 0x422   : > { %v2707_v4 = vadd.f32 %v2691_v0, %v2339_v59  ;;  %v1850_v60 = vpop.xlane.xlu1 %1849  ;;  %v2324_v2 = vsel %vm2116_vm1, %v2308_v53, 0.0  ;;  %v1529_v59 = vmul.f32 -0.25, %v1513_v57  ;;  %v1881_v0 = vmax.f32 %v7299_v8, 0.0 }
 0x423   : > { %v2340_v27 = vadd.f32 %v2324_v2, %v1972_v43  ;;  %3147 = vpow2.f32 %v1923_v13  ;;  %v2265_v57 = vmul.f32 -0.25, %v2249_v6  ;;  %vm7307_vm1 = vcmp.lt.f32.partialorder %v7283_v29, 3e+38  ;;  %v7312_v6 = vld [vmem:[#allocation81_spill] sm:$0xff] }
 0x424   : > { %v2770_v1 = vadd.f32 %v2769_v61, %v2707_v4  ;;  %v3128_v61 = vpop.eup %3127  ;;  %v7300_v4 = vld [vmem:[#allocation174_spill] sm:$0xff]  ;;  %v1557_v49 = vmul.f32 1.442695, %v1529_v59  ;;  %v1897_v19 = vmul.f32 -0.25, %v1881_v0  ;;  %3149 = vpow2.f32 %v2657_v58  ;;  %v7311_v58 = vld [vmem:[#allocation149_spill] sm:$0xff] }
 0x425   : > { %v3130_v5 = vpop.eup %3129  ;;  %v2616_v3 = vmax.f32 %v7300_v4, 0.0  ;;  %3151 = vpow2.f32 %v2291_v50  ;;  %v1559_v13 = vmul.f32 1.442695, %v1530_v30  ;;  %v2293_v0 = vmul.f32 1.442695, %v2265_v57 }
 0x426   : > { %v3132_v62 = vpop.eup %3131  ;;  %v1925_v48 = vmul.f32 1.442695, %v1897_v19  ;;  %3153 = vpow2.f32 %v1557_v49 }
 0x427   : > { %v1482_v46 = vpop.xlane.xlu0 %1481  ;;  %v2580_v39 = vpop.xlane.xlu1 %2579  ;;  %v1942_v37 = vmul.f32 %v3132_v62, %v1850_v60 }
 0x428   : > { %v2676_v55 = vmul.f32 %v3126_v51, %v2580_v39  ;;  %v3134_v25 = vpop.eup %3133  ;;  %v1574_v2 = vmul.f32 %v3130_v5, %v1482_v46  ;;  %v7309_v5 = vld [vmem:[#allocation77_spill] sm:$0xff]  ;;  %3155 = vpow2.f32 %v1925_v48 }
 0x429   : > { %v3136_v51 = vpop.eup %3135  ;;  %v1515_v34 = vmax.f32 %v7309_v5, 0.0  ;;  %v2801_v5 = vrot.slane %v6092_v16, 4 }
 0x42a   : > { %v2692_v33 = vsel %vm2484_vm4, %v2676_v55, 0.0  ;;  %vm7301_vm4 = vcmp.lt.f32.partialorder %v7104_v35, 3e+38  ;;  %v2632_v35 = vmul.f32 -0.25, %v2616_v3  ;;  %v7305_v55 = vld [vmem:[#allocation74_spill] sm:$0xff]  ;;  %v3138_v46 = vpop.eup %3137  ;;  %v2250_v3 = vmax.f32 %v7311_v58, 0.0 }
 0x42b   : > { %v2215_v28 = vpop.xlane.xlu0 %2214  ;;  %v2708_v9 = vadd.f32 %v2692_v33, %v2340_v27  ;;  %v1853_v41 = vpop.xlane.xlu1 %1852  ;;  %v1958_v27 = vsel %vm7306_vm3, %v1942_v37, 0.0  ;;  %v7308_v33 = vld [vmem:[#allocation67_spill] sm:$0xff]  ;;  %v1531_v12 = vmul.f32 -0.25, %v1515_v34  ;;  %vm7328_vm3 = vcmp.lt.f32.partialorder %v7299_v8, 3e+38 }
 0x42c   : > { %v2309_v14 = vmul.f32 %v3128_v61, %v2215_v28  ;;  %v1882_v61 = vmax.f32 %v7305_v55, 0.0  ;;  %v1590_v28 = vsel %vm7307_vm1, %v1574_v2, 0.0  ;;  %v2659_v45 = vmul.f32 1.442695, %v2632_v35  ;;  %v7316_v35 = vld [vmem:[#allocation88_spill] sm:$0xff] }
 0x42d   : > { %v2771_v53 = vadd.f32 %v2770_v1, %v2708_v9  ;;  %v3140_v9 = vpop.eup %3139  ;;  %v1974_v62 = vadd.f32 %v1958_v27, %v1590_v28  ;;  %vm7329_vm1 = vcmp.lt.f32.partialorder %v7297_v42, 3e+38 }
 0x42e   : > { %v2325_v52 = vsel %vm7301_vm4, %v2309_v14, 0.0  ;;  %v2617_v14 = vmax.f32 %v7308_v33, 0.0  ;;  %v3142_v59 = vpop.eup %3141  ;;  %v1898_v21 = vmul.f32 -0.25, %v1882_v61  ;;  %3157 = vpow2.f32 %v2659_v45 }
 0x42f   : > { %v2583_v20 = vpop.xlane.xlu1 %2582  ;;  %v2341_v43 = vadd.f32 %v2325_v52, %v1973_v54  ;;  %v1943_v52 = vmul.f32 %v3140_v9, %v1853_v41  ;;  %v3144_v24 = vpop.eup %3143  ;;  %v1883_v54 = vmax.f32 %v7312_v6, 0.0  ;;  %3159 = vpow2.f32 %v2293_v0 }
 0x430   : > { %v1485_v7 = vpop.xlane.xlu0 %1484  ;;  %v2677_v1 = vmul.f32 %v3134_v25, %v2583_v20  ;;  %v2633_v20 = vmul.f32 -0.25, %v2617_v14  ;;  %v2266_v41 = vmul.f32 -0.25, %v2250_v3  ;;  %3161 = vpow2.f32 %v1559_v13 }
 0x431   : > { %v1575_v25 = vmul.f32 %v3138_v46, %v1485_v7  ;;  %v1959_v7 = vsel %vm7314_vm5, %v1943_v52, 0.0  ;;  %v7317_v46 = vld [vmem:[#allocation111_spill] sm:$0xff]  ;;  %v1884_v14 = vmax.f32 %v7319_v38, 0.0  ;;  %v2251_v9 = vmax.f32 %v7320_v36, 0.0 }
 0x432   : > { %v2693_v26 = vsel %vm7304_vm9, %v2677_v1, 0.0  ;;  %v2661_v30 = vmul.f32 1.442695, %v2633_v20  ;;  %v2618_v27 = vmax.f32 %v7317_v46, 0.0  ;;  %v2619_v52 = vmax.f32 %v6065_v40, 0.0 }
 0x433   : > { %v2709_v17 = vadd.f32 %v2693_v26, %v2341_v43  ;;  %v1856_v60 = vpop.xlane.xlu1 %1855  ;;  %v3146_v43 = vpop.eup %3145  ;;  %v1516_v26 = vmax.f32 %v7316_v35, 0.0  ;;  %v2267_v20 = vmul.f32 -0.25, %v2251_v9  ;;  %vm7325_vm4 = vcmp.lt.f32.partialorder %v7108_v63, 3e+38 }
 0x434   : > { %v2218_v39 = vpop.xlane.xlu0 %2217  ;;  %v3148_v57 = vpop.eup %3147  ;;  %v2634_v18 = vmul.f32 -0.25, %v2618_v27  ;;  %vm7327_vm9 = vcmp.lt.f32.partialorder %v7300_v4, 3e+38  ;;  %vm7332_vm5 = vcmp.lt.f32.partialorder %v7305_v55, 3e+38 }
 0x435   : > { %v2310_v47 = vmul.f32 %v3136_v51, %v2218_v39  ;;  %v2772_v31 = vadd.f32 %v2771_v53, %v2709_v17  ;;  %v1927_v51 = vmul.f32 1.442695, %v1898_v21  ;;  %v1591_v39 = vsel %vm7315_vm15, %v1575_v25, 0.0  ;;  %v3150_v48 = vpop.eup %3149 }
 0x436   : > { %v1561_v17 = vmul.f32 1.442695, %v1531_v12  ;;  %v1975_v34 = vadd.f32 %v1959_v7, %v1591_v39  ;;  %v3152_v0 = vpop.eup %3151  ;;  %v1532_v13 = vmul.f32 -0.25, %v1516_v26  ;;  %vm7333_vm15 = vcmp.lt.f32.partialorder %v7302_v10, 3e+38 }
 0x437   : > { %v2326_v15 = vsel %vm7310_vm10, %v2310_v47, 0.0  ;;  %v2586_v29 = vpop.xlane.xlu1 %2585  ;;  %v1899_v47 = vmul.f32 -0.25, %v1883_v54  ;;  %3163 = vpow2.f32 %v1927_v51  ;;  %v1900_v54 = vmul.f32 -0.25, %v1884_v14 }
 0x438   : > { %v1488_v44 = vpop.xlane.xlu0 %1487  ;;  %v2678_v53 = vmul.f32 %v3142_v59, %v2586_v29  ;;  %v2342_v50 = vadd.f32 %v2326_v15, %v1974_v62  ;;  %v2295_v15 = vmul.f32 1.442695, %v2266_v41  ;;  %v1944_v59 = vmul.f32 %v3148_v57, %v1856_v60 }
 0x439   : > { %v1929_v62 = vmul.f32 1.442695, %v1899_v47  ;;  %3165 = vpow2.f32 %v2661_v30  ;;  %v2635_v41 = vmul.f32 -0.25, %v2619_v52  ;;  %v1931_v26 = vmul.f32 1.442695, %v1900_v54  ;;  %v7326_v30 = vld [vmem:[#allocation112_spill] sm:$0xff] }
 0x43a   : > { %v2694_v2 = vsel %vm7313_vm12, %v2678_v53, 0.0  ;;  %3167 = vpow2.f32 %v2295_v15  ;;  %v1960_v12 = vsel %vm7323_vm0, %v1944_v59, 0.0  ;;  %v2297_v47 = vmul.f32 1.442695, %v2267_v20 }
 0x43b   : > { %v2710_v49 = vadd.f32 %v2694_v2, %v2342_v50  ;;  %v1859_v19 = vpop.xlane.xlu1 %1858  ;;  %3169 = vpow2.f32 %v1561_v17  ;;  %v2620_v23 = vmax.f32 %v7326_v30, 0.0  ;;  %vm7330_vm10 = vcmp.lt.f32.partialorder %v7303_v32, 3e+38 }
 0x43c   : > { %v2221_v37 = vpop.xlane.xlu0 %2220  ;;  %3171 = vpow2.f32 %v1929_v62  ;;  %vm7331_vm12 = vcmp.lt.f32.partialorder %v7308_v33, 3e+38  ;;  %vm7339_vm0 = vcmp.lt.f32.partialorder %v7326_v30, 3e+38 }
 0x43d   : > { %v2311_v1 = vmul.f32 %v3144_v24, %v2221_v37  ;;  %v2773_v61 = vadd.f32 %v2772_v31, %v2710_v49  ;;  %v1576_v31 = vmul.f32 %v3146_v43, %v1488_v44  ;;  %v3154_v24 = vpop.eup %3153  ;;  %v7322_v44 = vld [vmem:[#allocation160_spill] sm:$0xff]  ;;  %v2663_v43 = vmul.f32 1.442695, %v2634_v18 }
 0x43e   : > { %v2252_v37 = vmax.f32 %v7322_v44, 0.0  ;;  %v3156_v49 = vpop.eup %3155  ;;  %v2636_v59 = vmul.f32 -0.25, %v2620_v23 }
 0x43f   : > { %v2327_v28 = vsel %vm7318_vm2, %v2311_v1, 0.0  ;;  %v2589_v45 = vpop.xlane.xlu1 %2588  ;;  %v1592_v2 = vsel %vm7324_vm11, %v1576_v31, 0.0  ;;  %v1563_v1 = vmul.f32 1.442695, %v1532_v13  ;;  %v3158_v39 = vpop.eup %3157  ;;  %vm7334_vm2 = vcmp.lt.f32.partialorder %v7317_v46, 3e+38 }
 0x440   : > { %v1491_v22 = vpop.xlane.xlu0 %1490  ;;  %v2679_v21 = vmul.f32 %v3150_v48, %v2589_v45  ;;  %v2343_v29 = vadd.f32 %v2327_v28, %v1975_v34  ;;  %v1976_v57 = vadd.f32 %v1960_v12, %v1592_v2  ;;  %v2268_v11 = vmul.f32 -0.25, %v2252_v37 }
 0x441   : > { %v1945_v28 = vmul.f32 %v3156_v49, %v1859_v19  ;;  %v1577_v17 = vmul.f32 %v3154_v24, %v1491_v22  ;;  %3173 = vpow2.f32 %v1563_v1  ;;  %v2665_v34 = vmul.f32 1.442695, %v2635_v41 }
 0x442   : > { %v2695_v25 = vsel %vm7321_vm8, %v2679_v21, 0.0  ;;  %3175 = vpow2.f32 %v2663_v43  ;;  %v2299_v19 = vmul.f32 1.442695, %v2268_v11  ;;  %v2667_v18 = vmul.f32 1.442695, %v2636_v59 }
 0x443   : > { %v2711_v50 = vadd.f32 %v2695_v25, %v2343_v29  ;;  %v1862_v60 = vpop.xlane.xlu1 %1861  ;;  %3177 = vpow2.f32 %v1931_v26  ;;  %v1961_v22 = vsel %vm7328_vm3, %v1945_v28, 0.0  ;;  %v1593_v13 = vsel %vm7329_vm1, %v1577_v17, 0.0 }
 0x444   : > { %v2224_v3 = vpop.xlane.xlu0 %2223  ;;  %3179 = vpow2.f32 %v2297_v47  ;;  %v1977_v52 = vadd.f32 %v1961_v22, %v1593_v13  ;;  %vm7338_vm8 = vcmp.lt.f32.partialorder %v7322_v44, 3e+38 }
 0x445   : > { %v2312_v53 = vmul.f32 %v3152_v0, %v2224_v3  ;;  %v2774_v51 = vadd.f32 %v2773_v61, %v2711_v50  ;;  %v3160_v61 = vpop.eup %3159  ;;  %3181 = vpow2.f32 %v2665_v34 }
 0x446   : > { %v3162_v15 = vpop.eup %3161  ;;  %3183 = vpow2.f32 %v2299_v19 }
 0x447   : > { %v2328_v7 = vsel %vm7325_vm4, %v2312_v53, 0.0  ;;  %v2592_v27 = vpop.xlane.xlu1 %2591  ;;  %v3164_v0 = vpop.eup %3163  ;;  %3185 = vpow2.f32 %v2667_v18 }
 0x448   : > { %v1494_v56 = vpop.xlane.xlu0 %1493  ;;  %v2680_v48 = vmul.f32 %v3158_v39, %v2592_v27  ;;  %v2344_v14 = vadd.f32 %v2328_v7, %v1976_v57  ;;  %v3166_v3 = vpop.eup %3165  ;;  %v1946_v53 = vmul.f32 %v3164_v0, %v1862_v60 }
 0x449   : > { %v1578_v24 = vmul.f32 %v3162_v15, %v1494_v56  ;;  %v3168_v20 = vpop.eup %3167 }
 0x44a   : > { %v2696_v63 = vsel %vm7327_vm9, %v2680_v48, 0.0  ;;  %v3170_v37 = vpop.eup %3169 }
 0x44b   : > { %v2712_v31 = vadd.f32 %v2696_v63, %v2344_v14  ;;  %v1865_v21 = vpop.xlane.xlu1 %1864  ;;  %v3172_v2 = vpop.eup %3171  ;;  %v1594_v60 = vsel %vm7333_vm15, %v1578_v24, 0.0 }
 0x44c   : > { %v2227_v9 = vpop.xlane.xlu0 %2226  ;;  %v1947_v56 = vmul.f32 %v3172_v2, %v1865_v21 }
 0x44d   : > { %v2313_v45 = vmul.f32 %v3160_v61, %v2227_v9  ;;  %v2775_v62 = vadd.f32 %v2774_v51, %v2712_v31  ;;  %v1962_v51 = vsel %vm7332_vm5, %v1946_v53, 0.0 }
 0x44e   : > { %v3174_v7 = vpop.eup %3173  ;;  %v1978_v26 = vadd.f32 %v1962_v51, %v1594_v60  ;;  %v1963_v57 = vsel %vm1755_vm13, %v1947_v56, 0.0  ;;  %vm7336_vm13 = vcmp.lt.f32.partialorder %v7319_v38, 3e+38 }
 0x44f   : > { %v2329_v4 = vsel %vm7330_vm10, %v2313_v45, 0.0  ;;  %v2595_v25 = vpop.xlane.xlu1 %2594  ;;  %v3176_v39 = vpop.eup %3175 }
 0x450   : > { %v1497_v29 = vpop.xlane.xlu0 %1496  ;;  %v2681_v54 = vmul.f32 %v3166_v3, %v2595_v25  ;;  %v2345_v8 = vadd.f32 %v2329_v4, %v1977_v52  ;;  %v3178_v23 = vpop.eup %3177 }
 0x451   : > { %v1579_v49 = vmul.f32 %v3170_v37, %v1497_v29  ;;  %v3180_v27 = vpop.eup %3179  ;;  %v2802_v29 = vadd.f32 %v2801_v5, %v6092_v16 }
 0x452   : > { %v2697_v42 = vsel %vm7331_vm12, %v2681_v54, 0.0  ;;  %v3182_v14 = vpop.eup %3181 }
 0x453   : > { %v2713_v1 = vadd.f32 %v2697_v42, %v2345_v8  ;;  %v1868_v32 = vpop.xlane.xlu1 %1867  ;;  %v1595_v55 = vsel %vm1387_vm7, %v1579_v49, 0.0  ;;  %v3184_v15 = vpop.eup %3183  ;;  %vm7337_vm7 = vcmp.lt.f32.partialorder %v7316_v35, 3e+38  ;;  %v2803_v35 = vrot.slane %v2802_v29, 2  ;;  %v7340_v42 = vld [vmem:[#allocation10_spill] sm:$0xff] }
 0x454   : > { %v2230_v50 = vpop.xlane.xlu0 %2229  ;;  %v1948_v17 = vmul.f32 %v3178_v23, %v1868_v32  ;;  %v1979_v9 = vadd.f32 %v1963_v57, %v1595_v55  ;;  %v3186_v13 = vpop.eup %3185  ;;  %vm2809_vm11 = vcmp.eq.s32.totalorder %v7340_v42, 0 }
 0x455   : > { %v2314_v12 = vmul.f32 %v3168_v20, %v2230_v50  ;;  %v2776_v43 = vadd.f32 %v2775_v62, %v2713_v1  ;;  %v2804_v24 = vadd.f32 %v2803_v35, %v2802_v29 }
 0x456   : > { %v1964_v0 = vsel %vm7336_vm13, %v1948_v17, 0.0 }
 0x457   : > { %v2330_v33 = vsel %vm2122_vm6, %v2314_v12, 0.0  ;;  %v2598_v47 = vpop.xlane.xlu1 %2597  ;;  %vm7335_vm6 = vcmp.lt.f32.partialorder %v7320_v36, 3e+38  ;;  %v2805_v44 = vrot.slane %v2804_v24, 1 }
 0x458   : > { %v1500_v41 = vpop.xlane.xlu0 %1499  ;;  %v2682_v10 = vmul.f32 %v3176_v39, %v2598_v47  ;;  %v2346_v11 = vadd.f32 %v2330_v33, %v1978_v26 }
 0x459   : > { %v1580_v48 = vmul.f32 %v3174_v7, %v1500_v41  ;;  %v2806_v50 = vadd.f32 %v2805_v44, %v2804_v24 }
 0x45a   : > { %v2698_v58 = vsel %vm7334_vm2, %v2682_v10, 0.0 }
 0x45b   : > { %v2714_v34 = vadd.f32 %v2698_v58, %v2346_v11  ;;  %v2601_v63 = vpop.xlane.xlu1 %2600  ;;  %v1596_v46 = vsel %vm7337_vm7, %v1580_v48, 0.0 }
 0x45c   : > { %v2233_v28 = vpop.xlane.xlu0 %2232  ;;  %v2683_v45 = vmul.f32 %v3182_v14, %v2601_v63  ;;  %v1980_v3 = vadd.f32 %v1964_v0, %v1596_v46 }
 0x45d   : > { %v2315_v61 = vmul.f32 %v3180_v27, %v2233_v28  ;;  %v2777_v59 = vadd.f32 %v2776_v43, %v2714_v34 }
 0x45e   : > { %v2699_v19 = vsel %vm2491_vm14, %v2683_v45, 0.0  ;;  %vm2810_vm14 = vcmp.eq.s32.totalorder %v7340_v42, 1 }
 0x45f   : > { %v2331_v6 = vsel %vm7335_vm6, %v2315_v61, 0.0  ;;  %v2811_v12 = vsel %vm2810_vm14, %v2806_v50, 0.0 }
 0x460   : > { %v2347_v31 = vadd.f32 %v2331_v6, %v1979_v9  ;;  %v2236_v21 = vpop.xlane.xlu0 %2235 }
 0x461   : > { %v2316_v22 = vmul.f32 %v3184_v15, %v2236_v21 }
 0x462   : > { %v2715_v36 = vadd.f32 %v2699_v19, %v2347_v31 }
 0x463   : > { %v2332_v62 = vsel %vm7338_vm8, %v2316_v22, 0.0 }
 0x464   : > { %v2778_v4 = vadd.f32 %v2777_v59, %v2715_v36  ;;  %v2604_v18 = vpop.xlane.xlu0 %2603  ;;  %v2348_v52 = vadd.f32 %v2332_v62, %v1980_v3 }
 0x465   : > { %v2684_v38 = vmul.f32 %v3186_v13, %v2604_v18 }
 0x467   : > { %v2700_v40 = vsel %vm7339_vm0, %v2684_v38, 0.0 }
 0x468   : > { %v2716_v25 = vadd.f32 %v2700_v40, %v2348_v52 }
 0x46a   : > { %v2779_v53 = vadd.f32 %v2778_v4, %v2716_v25 }
 0x46c   : > { %v2780_v54 = vrot.slane %v2779_v53, 4 }
 0x46e   : > { %v2781_v20 = vadd.f32 %v2780_v54, %v2779_v53 }
 0x470   : > { %v2782_v8 = vrot.slane %v2781_v20, 2 }
 0x472   : > { %v2783_v16 = vadd.f32 %v2782_v8, %v2781_v20 }
 0x474   : > { %v2784_v37 = vrot.slane %v2783_v16, 1 }
 0x476   : > { %v2785_v30 = vadd.f32 %v2784_v37, %v2783_v16 }
 0x478   : > { %v2812_v2 = vsel %vm2809_vm11, %v2785_v30, %v2811_v12 }
 0x479   : > { %2813 = vst [vmem:[%s277_s18] sm:$0xff] %v2812_v2 }
 0x47a   : > { %3210 = shalt.err (!%p3207_p3)
}
 0x47b   : > { %s3211_s12 = scalar_lea.hbm %s6280_s28, 128  ;;  %s3215_s15 = scalar_lea.hbm %s6321_s6, 256 }
 0x47c   : > { %p3212_p4 = scmp.ne.s32.totalorder %s6280_s28, %s3211_s12  ;;  %p3216_p9 = scmp.lt.s32.totalorder %s6280_s28, %s6321_s6 }
 0x47d   : > { %p3217_p10 = scmp.lt.s32.totalorder %s3215_s15, %s3211_s12 }
 0x47e   : > { %p3213_p7 = pnand %p3212_p4, %p3337_p5 }
 0x47f   : > { %p3218_p11 = por %p3217_p10, %p3216_p9 }
 0x480   : > { %p3214_p8 = pneg %p3213_p7 }
 0x482   : > { %p3219_p12 = pnand %p3218_p11, %p3214_p8 }
 0x484   : > { %3222 = shalt.err (!%p3219_p12)
}
 0x485   : > { %3008 = dma.vmem_to_hbm [thread:$0]  (%p3337_p5), %s2829_s19, 128, %s6280_s28, %s2815_s29  }
 0x486 PF: > { %p3014_p13 = scmp.ge.s32.totalorder %s3257_s24, 2  ;;  %s2840_s18 = sand.u32 1, %s3245_s21  }
 0x487   : > { %s2841_s20 = scalar_lea.sflag [#allocation3], %s2840_s18 }
 0x488   : > { %p3011_p0 = pnand %p3014_p13, %p3341_p6 }
 0x48a   : > { %p3012_p1 = pneg %p3011_p0 }
 0x48c   : > { %3240 = dma.done.wait (%p3012_p1), %s2841_s20, 128  }
 0x48d   : > { %3242 = vsyncadd (%p3012_p1), %s2841_s20, 4294967168  ;;  %p16_p2 = scmp.ge.s32.totalorder %s3324_s27, 4   ;;  %s7341_s21 = smov %s3249_s22 }
 0x48e   : > { %s7342_s22 = smov %s3253_s23  ;;  %s7343_s23 = smov %s3335_s30 }
 0x48f   : > { %s7344_s24 = smov %s3324_s27  ;;  %18 = sbr.rel (!%p16_p2) target bundleno = 3 (0x3), region = 85 }
 0x494   :  { %2846 = vsyncpa [#allocation3], 1 }
 0x495   :  { %2848 = vsyncpa [#allocation3 + $0x1], 1 }

</bundles_post_ra>
